<compile_context>
chip_gen: v7x
topology: tpu7x:2x2x1
jax: 0.10.0
libtpu: 0.0.40
codegen_flags: <defaults>
</compile_context>

<pallas_src>
import math
from itertools import chain

import numpy as np
import jax
import jax.numpy as jnp
from jax.experimental import pallas as pl
from jax.experimental.pallas import tpu as pltpu

# ----------------- synthetic "BERT" configuration -----------------
HIDDEN = 32
NUM_HEADS = 2
HEAD_DIM = HIDDEN // NUM_HEADS
INTERMEDIATE = 64
NUM_BERT_LAYERS = 2
MAX_POSITION_EMBEDDINGS = 64
WP_VOCAB = 64            # word-piece vocab size
WORD_VOCAB = 20          # word-level vocab size
WORD_PAD_IDX = 0         # vocab.padding_idx
WORD_UNK_IDX = 1         # vocab.unknown_idx
WP_PAD_IDX = 0           # '[PAD]'
WP_UNK_IDX = 1           # '[UNK]'
CLS_IDX = 2              # '[CLS]'
SEP_IDX = 3              # '[SEP]'
LAYERS = [-1]            # layers='-1'
LN_EPS = 1e-12

HP = 128                 # lane-padded hidden (HIDDEN -> 128)
# vector-slab row layout (per layer): 0=bo  1=ln1_g  2=ln1_b  3=bi  4=bo2
#                                     5=ln2_g  6=ln2_b ; layer-0 extra rows:
#                                     8=emb_ln_g  9=emb_ln_b
VROW_BO, VROW_L1G, VROW_L1B, VROW_BI, VROW_BO2, VROW_L2G, VROW_L2B = 0, 1, 2, 3, 4, 5, 6
VROW_EMBG, VROW_EMBB = 8, 9


# ----------------- Pallas kernel factory -----------------
def _make_kernel(bps, seq):
    """bps = batch rows handled per grid step, seq = (padded) word-piece length."""
    inv_h = 1.0 / HIDDEN
    bf16 = jnp.bfloat16
    gelu_c = math.sqrt(2.0 / math.pi)

    def ln(x, g, b):
        # single-pass LayerNorm; padded lanes of x are exactly 0 and padded
        # gamma/beta are 0, so dividing by HIDDEN (not 128) is exact and padded
        # output lanes stay 0.
        s1 = jnp.sum(x, axis=-1, keepdims=True)
        s2 = jnp.sum(x * x, axis=-1, keepdims=True)
        mu = s1 * inv_h
        var = jnp.maximum(s2 * inv_h - mu * mu, 0.0)
        return (x - mu) * jax.lax.rsqrt(var + LN_EPS) * g + b

    def gelu(x):
        # TODO(synk): HF BertModel uses the erf GELU; tanh approximation differs ~1e-3 rel.
        return 0.5 * x * (1.0 + jnp.tanh(gelu_c * (x + 0.044715 * x * x * x)))

    def kernel(oh_ref, bias_ref, pool_ref, wemb_ref, pos_ref,
               wqkv_ref, bqkv_ref, vecs_ref, wffn_ref, out_ref):
        wemb = wemb_ref[...]                     # (V, 128) f32
        pos = pos_ref[...]                       # (S, 128) f32 (pos + type0)
        v0 = vecs_ref[0]                         # (16, 128) f32
        emb_g = v0[VROW_EMBG:VROW_EMBG + 1]
        emb_b = v0[VROW_EMBB:VROW_EMBB + 1]

        for bb in range(bps):                    # static unroll over batch rows
            # embedding "gather" as a one-hot matmul (exact, tiny) + pos/type add
            x = jnp.dot(oh_ref[bb], wemb, preferred_element_type=jnp.float32) + pos
            x = ln(x, emb_g, emb_b)              # (S, 128), lanes >= HIDDEN are 0
            bias2d = jnp.broadcast_to(bias_ref[bb], (seq, seq))

            for l in range(NUM_BERT_LAYERS):     # static unroll over layers
                vl = vecs_ref[l]                 # (16, 128)
                # fused QKV (+ per-head V@Wo fusion); scale folded into Q weights
                qkv = jnp.dot(x.astype(bf16), wqkv_ref[l],
                              preferred_element_type=jnp.float32) + bqkv_ref[l]
                attn = None
                for h in range(NUM_HEADS):       # static unroll over heads
                    base = h * 3 * HP            # all slices 128-lane aligned
                    qh = qkv[:, base:base + HP].astype(bf16)
                    kh = qkv[:, base + HP:base + 2 * HP].astype(bf16)
                    vh = qkv[:, base + 2 * HP:base + 3 * HP].astype(bf16)
                    scores = jax.lax.dot_general(
                        qh, kh, (((1,), (1,)), ((), ())),
                        preferred_element_type=jnp.float32) + bias2d
                    m = jnp.max(scores, axis=-1, keepdims=True)
                    e = jnp.exp(scores - m)
                    p = e * pl.reciprocal(jnp.sum(e, axis=-1, keepdims=True),
                                          approx=True)
                    # vh already carries Wv @ Wo_head, so this IS the attn output
                    contrib = jnp.dot(p.astype(bf16), vh,
                                      preferred_element_type=jnp.float32)
                    attn = contrib if attn is None else attn + contrib
                attn = attn + vl[VROW_BO:VROW_BO + 1]
                x = ln(x + attn, vl[VROW_L1G:VROW_L1G + 1], vl[VROW_L1B:VROW_L1B + 1])

                wf = wffn_ref[l]                 # (256, 128) bf16: [wi ; wo2]
                inter = gelu(jnp.dot(x.astype(bf16), wf[0:HP],
                                     preferred_element_type=jnp.float32)
                             + vl[VROW_BI:VROW_BI + 1])
                ffn = jnp.dot(inter.astype(bf16), wf[HP:2 * HP],
                              preferred_element_type=jnp.float32) \
                    + vl[VROW_BO2:VROW_BO2 + 1]
                x = ln(x + ffn, vl[VROW_L2G:VROW_L2G + 1], vl[VROW_L2B:VROW_L2B + 1])

            # 'first'-pooling fused into the kernel: 0/1 gather matrix built on
            # host also zeroes padded words, so this writes the final output.
            out_ref[bb] = jnp.dot(pool_ref[bb], x, preferred_element_type=jnp.float32)

    return kernel


def _batch_per_grid_step(batch_size):
    # v7x-class chips have 2 TensorCores -> shard batch rows across them.
    # v5e/v6e are single-TC: grid=(B,) would only add per-step overhead, so
    # process the whole batch in one grid step there.
    try:
        kind = jax.devices()[0].device_kind.lower()
    except Exception:
        kind = ""
    n_tc = 2 if "v7" in kind else 1
    if n_tc > 1 and batch_size % n_tc == 0:
        return batch_size // n_tc
    return batch_size


def run_bert_encoder(onehot, attn_bias, pool_mat, pos_type, packed):
    B, S, V = onehot.shape
    W = pool_mat.shape[1]
    L = NUM_BERT_LAYERS
    bps = _batch_per_grid_step(B)
    G = B // bps
    kernel = _make_kernel(bps, S)

    def shared(shape):
        nd = len(shape)
        return pl.BlockSpec(shape, lambda g, _n=nd: (0,) * _n)

    in_specs = [
        pl.BlockSpec((bps, S, V), lambda g: (g, 0, 0)),       # one-hot word-piece ids
        pl.BlockSpec((bps, 1, S), lambda g: (g, 0, 0)),       # additive attention bias
        pl.BlockSpec((bps, W, S), lambda g: (g, 0, 0)),       # 'first'-pooling matrix
        shared((V, HP)),                                      # word-piece embedding table
        shared((S, HP)),                                      # pos + type-0 embedding slab
        shared((L, HP, NUM_HEADS * 3 * HP)),                  # fused QKV(+Wo) weights (bf16)
        shared((L, 1, NUM_HEADS * 3 * HP)),                   # fused QKV(+Wo) biases
        shared((L, 16, HP)),                                  # packed small vectors
        shared((L, 2 * HP, HP)),                              # FFN weights [wi; wo2] (bf16)
    ]
    return pl.pallas_call(
        kernel,
        out_shape=jax.ShapeDtypeStruct((B, W, HP), jnp.float32),
        grid=(G,),
        in_specs=in_specs,
        out_specs=pl.BlockSpec((bps, W, HP), lambda g: (g, 0, 0)),
        compiler_params=pltpu.CompilerParams(dimension_semantics=("parallel",)),
    )(jnp.asarray(onehot), jnp.asarray(attn_bias), jnp.asarray(pool_mat),
      packed['word_emb'], jnp.asarray(pos_type),
      packed['wqkv'], packed['bqkv'], packed['vecs'], packed['wffn'])


# ----------------- deterministic synthetic parameters -----------------
def init_params(key):
    def nrm(k, shape):
        return 0.02 * jax.random.normal(k, shape, jnp.float32)

    keys = jax.random.split(key, 3 + NUM_BERT_LAYERS)
    params = {
        'word_emb': nrm(keys[0], (WP_VOCAB, HIDDEN)),
        'pos_emb': nrm(keys[1], (MAX_POSITION_EMBEDDINGS, HIDDEN)),
        'type_emb': nrm(keys[2], (2, HIDDEN)),
        'emb_ln_g': jnp.ones((1, HIDDEN), jnp.float32),
        'emb_ln_b': jnp.zeros((1, HIDDEN), jnp.float32),
        'layers': [],
    }
    for l in range(NUM_BERT_LAYERS):
        lk = jax.random.split(keys[3 + l], 6)
        params['layers'].append({
            'wq': nrm(lk[0], (HIDDEN, HIDDEN)), 'bq': jnp.zeros((1, HIDDEN), jnp.float32),
            'wk': nrm(lk[1], (HIDDEN, HIDDEN)), 'bk': jnp.zeros((1, HIDDEN), jnp.float32),
            'wv': nrm(lk[2], (HIDDEN, HIDDEN)), 'bv': jnp.zeros((1, HIDDEN), jnp.float32),
            'wo': nrm(lk[3], (HIDDEN, HIDDEN)), 'bo': jnp.zeros((1, HIDDEN), jnp.float32),
            'ln1_g': jnp.ones((1, HIDDEN), jnp.float32), 'ln1_b': jnp.zeros((1, HIDDEN), jnp.float32),
            'wi': nrm(lk[4], (HIDDEN, INTERMEDIATE)), 'bi': jnp.zeros((1, INTERMEDIATE), jnp.float32),
            'wo2': nrm(lk[5], (INTERMEDIATE, HIDDEN)), 'bo2': jnp.zeros((1, HIDDEN), jnp.float32),
            'ln2_g': jnp.ones((1, HIDDEN), jnp.float32), 'ln2_b': jnp.zeros((1, HIDDEN), jnp.float32),
        })
    return params


def pack_params(params):
    """Lane-pad to 128, fuse Q|K|(V@Wo) head-major (each block 128-lane aligned),
    fold the 1/sqrt(d) scale into Q, cast big weights to bf16, and pack all small
    vectors into two slabs."""
    L = NUM_BERT_LAYERS
    H = HIDDEN
    scale = 1.0 / math.sqrt(HEAD_DIM)

    wqkv = np.zeros((L, HP, NUM_HEADS * 3 * HP), np.float32)
    bqkv = np.zeros((L, 1, NUM_HEADS * 3 * HP), np.float32)
    vecs = np.zeros((L, 16, HP), np.float32)
    wffn = np.zeros((L, 2 * HP, HP), np.float32)

    for l, lp in enumerate(params['layers']):
        wq, wk, wv = (np.asarray(lp[n]) for n in ('wq', 'wk', 'wv'))
        bq, bk, bv = (np.asarray(lp[n])[0] for n in ('bq', 'bk', 'bv'))
        wo = np.asarray(lp['wo'])
        bo = np.asarray(lp['bo'])[0]
        for h in range(NUM_HEADS):
            lo = h * HEAD_DIM
            base = h * 3 * HP
            # Q (softmax scale folded in)
            wqkv[l, :H, base:base + HEAD_DIM] = wq[:, lo:lo + HEAD_DIM] * scale
            bqkv[l, 0, base:base + HEAD_DIM] = bq[lo:lo + HEAD_DIM] * scale
            # K
            wqkv[l, :H, base + HP:base + HP + HEAD_DIM] = wk[:, lo:lo + HEAD_DIM]
            bqkv[l, 0, base + HP:base + HP + HEAD_DIM] = bk[lo:lo + HEAD_DIM]
            # V fused with this head's rows of the output projection (exact:
            # (p @ (x Wv + bv)) Wo_h == p @ (x (Wv Wo_h) + bv Wo_h))
            wo_h = wo[lo:lo + HEAD_DIM, :]
            wqkv[l, :H, base + 2 * HP:base + 2 * HP + H] = wv[:, lo:lo + HEAD_DIM] @ wo_h
            bqkv[l, 0, base + 2 * HP:base + 2 * HP + H] = bv[lo:lo + HEAD_DIM] @ wo_h
        vecs[l, VROW_BO, :H] = bo
        vecs[l, VROW_L1G, :H] = np.asarray(lp['ln1_g'])[0]
        vecs[l, VROW_L1B, :H] = np.asarray(lp['ln1_b'])[0]
        vecs[l, VROW_BI, :INTERMEDIATE] = np.asarray(lp['bi'])[0]
        vecs[l, VROW_BO2, :H] = np.asarray(lp['bo2'])[0]
        vecs[l, VROW_L2G, :H] = np.asarray(lp['ln2_g'])[0]
        vecs[l, VROW_L2B, :H] = np.asarray(lp['ln2_b'])[0]
        wffn[l, :H, :INTERMEDIATE] = np.asarray(lp['wi'])
        wffn[l, HP:HP + INTERMEDIATE, :H] = np.asarray(lp['wo2'])

    vecs[0, VROW_EMBG, :H] = np.asarray(params['emb_ln_g'])[0]
    vecs[0, VROW_EMBB, :H] = np.asarray(params['emb_ln_b'])[0]

    word_emb = np.zeros((WP_VOCAB, HP), np.float32)
    word_emb[:, :H] = np.asarray(params['word_emb'])
    pos_emb_pad = np.zeros((MAX_POSITION_EMBEDDINGS, HP), np.float32)
    pos_emb_pad[:, :H] = np.asarray(params['pos_emb'])
    type0_pad = np.zeros((HP,), np.float32)
    type0_pad[:H] = np.asarray(params['type_emb'])[0]

    return {
        'wqkv': jnp.asarray(wqkv, jnp.bfloat16),
        'bqkv': jnp.asarray(bqkv),
        'vecs': jnp.asarray(vecs),
        'wffn': jnp.asarray(wffn, jnp.bfloat16),
        'word_emb': jnp.asarray(word_emb),
        'pos_emb_pad': pos_emb_pad,     # numpy; sliced to S per forward call
        'type0_pad': type0_pad,
    }


# synthetic word -> word-piece mapping (deterministic; stands in for the tokenizer)
def build_word_to_wordpieces():
    w2wp = []
    for w in range(WORD_VOCAB):
        if w == WORD_PAD_IDX:
            w2wp.append([WP_PAD_IDX])
        elif w == WORD_UNK_IDX:
            w2wp.append([WP_UNK_IDX])
        elif w % 3 == 0:
            w2wp.append([4 + (2 * w) % (WP_VOCAB - 4), 4 + (2 * w + 1) % (WP_VOCAB - 4)])
        else:
            w2wp.append([4 + (2 * w) % (WP_VOCAB - 4)])
    lengths = np.array([len(p) for p in w2wp], dtype=np.int32)
    return w2wp, lengths


# ----------------- full _WordBertModel.forward equivalent -----------------
def word_bert_forward(words_np, params, packed, word_to_wordpieces, word_pieces_lengths_np):
    assert set(LAYERS) <= {-1, NUM_BERT_LAYERS - 1}, \
        "fused kernel materializes only the final encoder layer (layers='-1')"
    # TODO(synk): only pool_method='first', include_cls_sep=False, auto_truncate=False paths implemented.
    words_np = np.asarray(words_np)
    B, max_word_len = words_np.shape
    word_mask = words_np != WORD_PAD_IDX
    seq_len = word_mask.sum(-1)
    batch_wpl = word_pieces_lengths_np[words_np] * word_mask          # masked_fill(~mask, 0)
    wpl_per_batch = batch_wpl.sum(-1)
    word_piece_length = int(wpl_per_batch.max())
    assert word_piece_length + 2 <= MAX_POSITION_EMBEDDINGS           # auto_truncate=False path

    # Build word-piece ids / attention masks (host glue, as in the torch code).
    S0 = word_piece_length + 2
    S = max(8, ((S0 + 7) // 8) * 8)   # pad seq to sublane multiple; extras are attention-masked pads
    word_pieces = np.full((B, S), WP_PAD_IDX, dtype=np.int32)
    attn_masks = np.zeros((B, S), dtype=np.float32)
    for i in range(B):
        pieces_i = list(chain(*[word_to_wordpieces[w] for w in words_np[i, :seq_len[i]]]))
        if pieces_i:
            word_pieces[i, 1:wpl_per_batch[i] + 1] = np.asarray(pieces_i, dtype=np.int32)
        attn_masks[i, :wpl_per_batch[i] + 2] = 1.0
    word_pieces[:, 0] = CLS_IDX
    word_pieces[np.arange(B), wpl_per_batch + 1] = SEP_IDX
    # '[SEP]' is not in the word vocab -> token_type_ids are all zero, so the type
    # embedding contribution is just type_emb[0], folded into the position slab.

    # Kernel-side embedding gather: one-hot ids (0/1, exact) multiplied with the
    # VMEM-resident word-piece table inside the kernel.
    onehot = np.zeros((B, S, WP_VOCAB), np.float32)
    onehot[np.arange(B)[:, None], np.arange(S)[None, :], word_pieces] = 1.0
    attn_bias = ((1.0 - attn_masks) * -10000.0)[:, None, :]           # (B,1,S)
    pos_type = packed['pos_emb_pad'][:S] + packed['type0_pad'][None, :]

    # 'first'-pooling (pool_method='first', include_cls_sep=False) as a 0/1 gather
    # matrix: row j selects word-piece 1+cum_first[i,j]; padded words -> zero rows.
    seq_len_max = int(seq_len.max())
    cum = np.zeros((B, max_word_len + 1), dtype=np.int64)
    cum[:, 1:] = np.cumsum(batch_wpl, axis=-1)
    cum_first = cum[:, :seq_len_max].copy()
    cum_first[cum_first >= word_piece_length] = 0
    pool_mat = np.zeros((B, max_word_len, S), np.float32)
    for i in range(B):
        for j in range(seq_len_max):
            if word_mask[i, j]:
                pool_mat[i, j, 1 + int(cum_first[i, j])] = 1.0

    # One fused Pallas call: embedding gather + LN + all encoder layers + pooling.
    pooled = run_bert_encoder(onehot, attn_bias, pool_mat, pos_type, packed)   # (B, W, 128)

    out_last = pooled[..., :HIDDEN]                                    # drop lane padding
    outputs = jnp.stack([out_last for _ in LAYERS], axis=0)            # (num_layers, B, W, H)
    return outputs


if __name__ == "__main__":
    key = jax.random.PRNGKey(0)
    pkey, wkey = jax.random.split(key)
    params = init_params(pkey)
    packed = pack_params(params)
    w2wp, wp_lengths = build_word_to_wordpieces()

    # words: batch_size x max_len (LongTensor in torch); pad idx = 0
    B, max_word_len = 2, 8
    words = np.asarray(jax.random.randint(wkey, (B, max_word_len), 2, WORD_VOCAB)
                       ).astype(np.int32)          # .astype copies -> writable host array
    words[0, 6:] = WORD_PAD_IDX
    words[1, 4:] = WORD_PAD_IDX

    outputs = word_bert_forward(words, params, packed, w2wp, wp_lengths)
    outputs = jax.block_until_ready(outputs)

    assert outputs.shape == (len(LAYERS), B, max_word_len, HIDDEN)
    assert bool(jnp.all(jnp.isfinite(outputs)))
    # padded words must be zeroed out, as in the torch reference
    assert float(jnp.abs(outputs[0, 0, 6:]).sum()) == 0.0
    print("KERNEL_OK")
</pallas_src>

<mosaic_0001>
module attributes {stable_mosaic.version = 11 : i64} {
  func.func @kernel(%arg0: i32, %arg1: memref<2x16x64xf32, #tpu.memory_space<vmem>>, %arg2: memref<2x1x16xf32, #tpu.memory_space<vmem>>, %arg3: memref<2x8x16xf32, #tpu.memory_space<vmem>>, %arg4: memref<64x128xf32, #tpu.memory_space<vmem>>, %arg5: memref<16x128xf32, #tpu.memory_space<vmem>>, %arg6: memref<2x128x768xbf16, #tpu.memory_space<vmem>>, %arg7: memref<2x1x768xf32, #tpu.memory_space<vmem>>, %arg8: memref<2x16x128xf32, #tpu.memory_space<vmem>>, %arg9: memref<2x256x128xbf16, #tpu.memory_space<vmem>>, %arg10: memref<2x8x128xf32, #tpu.memory_space<vmem>>) attributes {dimension_semantics = [#tpu.dimension_semantics<parallel>], iteration_bounds = array<i64: 1>, scalar_prefetch = 0 : i64, scratch_operands = 0 : i64, tpu.core_type = #tpu.core_type<tc>, window_params = [{transform_indices = @transform_0, window_bounds = array<i64: 2, 16, 64>}, {transform_indices = @transform_1, window_bounds = array<i64: 2, 1, 16>}, {transform_indices = @transform_2, window_bounds = array<i64: 2, 8, 16>}, {pipeline_mode = #tpu.pipeline_mode<synchronous>, transform_indices = @transform_3, window_bounds = array<i64: 64, 128>}, {pipeline_mode = #tpu.pipeline_mode<synchronous>, transform_indices = @transform_4, window_bounds = array<i64: 16, 128>}, {pipeline_mode = #tpu.pipeline_mode<synchronous>, transform_indices = @transform_5, window_bounds = array<i64: 2, 128, 768>}, {pipeline_mode = #tpu.pipeline_mode<synchronous>, transform_indices = @transform_6, window_bounds = array<i64: 2, 1, 768>}, {pipeline_mode = #tpu.pipeline_mode<synchronous>, transform_indices = @transform_7, window_bounds = array<i64: 2, 16, 128>}, {pipeline_mode = #tpu.pipeline_mode<synchronous>, transform_indices = @transform_8, window_bounds = array<i64: 2, 256, 128>}, {transform_indices = @transform_9, window_bounds = array<i64: 2, 8, 128>}]} {
    %c0 = arith.constant 0 : index
    %c0_0 = arith.constant 0 : index
    %0 = vector.load %arg4[%c0, %c0_0] : memref<64x128xf32, #tpu.memory_space<vmem>>, vector<64x128xf32>
    %c0_1 = arith.constant 0 : index
    %c0_2 = arith.constant 0 : index
    %1 = vector.load %arg5[%c0_1, %c0_2] : memref<16x128xf32, #tpu.memory_space<vmem>>, vector<16x128xf32>
    %c0_3 = arith.constant 0 : index
    %c0_4 = arith.constant 0 : index
    %c0_5 = arith.constant 0 : index
    %2 = vector.load %arg8[%c0_3, %c0_4, %c0_5] : memref<2x16x128xf32, #tpu.memory_space<vmem>>, vector<1x16x128xf32>
    %3 = vector.shape_cast %2 : vector<1x16x128xf32> to vector<16x128xf32>
    %4 = vector.extract_strided_slice %3 {offsets = [8, 0], sizes = [1, 128], strides = [1, 1]} : vector<16x128xf32> to vector<1x128xf32>
    %5 = vector.extract_strided_slice %3 {offsets = [9, 0], sizes = [1, 128], strides = [1, 1]} : vector<16x128xf32> to vector<1x128xf32>
    %c0_6 = arith.constant 0 : index
    %c0_7 = arith.constant 0 : index
    %c0_8 = arith.constant 0 : index
    %6 = vector.load %arg1[%c0_6, %c0_7, %c0_8] : memref<2x16x64xf32, #tpu.memory_space<vmem>>, vector<1x16x64xf32>
    %7 = vector.shape_cast %6 : vector<1x16x64xf32> to vector<16x64xf32>
    %cst = arith.constant dense<0.000000e+00> : vector<16x128xf32>
    %8 = tpu.matmul %7, %0, %cst {dimension_numbers = #tpu.dot_dimension_numbers<[1], [0], [0], [1], [0, 0, 1, 1], [], []>} : vector<16x64xf32>, vector<64x128xf32>, vector<16x128xf32> -> vector<16x128xf32>
    %9 = arith.addf %8, %1 : vector<16x128xf32>
    %cst_9 = arith.constant dense<0.000000e+00> : vector<16xf32>
    %10 = vector.multi_reduction <add>, %9, %cst_9 [1] : vector<16x128xf32> to vector<16xf32>
    %11 = vector.shape_cast %10 : vector<16xf32> to vector<16x1xf32>
    %12 = arith.mulf %9, %9 : vector<16x128xf32>
    %cst_10 = arith.constant dense<0.000000e+00> : vector<16xf32>
    %13 = vector.multi_reduction <add>, %12, %cst_10 [1] : vector<16x128xf32> to vector<16xf32>
    %14 = vector.shape_cast %13 : vector<16xf32> to vector<16x1xf32>
    %cst_11 = arith.constant 3.125000e-02 : f32
    %15 = vector.broadcast %cst_11 : f32 to vector<16x1xf32>
    %16 = arith.mulf %11, %15 : vector<16x1xf32>
    %cst_12 = arith.constant 3.125000e-02 : f32
    %17 = vector.broadcast %cst_12 : f32 to vector<16x1xf32>
    %18 = arith.mulf %14, %17 : vector<16x1xf32>
    %19 = arith.mulf %16, %16 : vector<16x1xf32>
    %20 = arith.subf %18, %19 : vector<16x1xf32>
    %cst_13 = arith.constant 0.000000e+00 : f32
    %21 = vector.broadcast %cst_13 : f32 to vector<16x1xf32>
    %22 = arith.maximumf %20, %21 : vector<16x1xf32>
    %23 = vector.broadcast %16 : vector<16x1xf32> to vector<16x128xf32>
    %24 = arith.subf %9, %23 : vector<16x128xf32>
    %cst_14 = arith.constant 9.99999996E-13 : f32
    %25 = vector.broadcast %cst_14 : f32 to vector<16x1xf32>
    %26 = arith.addf %22, %25 : vector<16x1xf32>
    %27 = math.rsqrt %26 : vector<16x1xf32>
    %28 = vector.broadcast %27 : vector<16x1xf32> to vector<16x128xf32>
    %29 = arith.mulf %24, %28 : vector<16x128xf32>
    %30 = vector.broadcast %4 : vector<1x128xf32> to vector<16x128xf32>
    %31 = arith.mulf %29, %30 : vector<16x128xf32>
    %32 = vector.broadcast %5 : vector<1x128xf32> to vector<16x128xf32>
    %33 = arith.addf %31, %32 : vector<16x128xf32>
    %c0_15 = arith.constant 0 : index
    %c0_16 = arith.constant 0 : index
    %c0_17 = arith.constant 0 : index
    %34 = vector.load %arg2[%c0_15, %c0_16, %c0_17] : memref<2x1x16xf32, #tpu.memory_space<vmem>>, vector<1x1x16xf32>
    %35 = vector.shape_cast %34 : vector<1x1x16xf32> to vector<1x16xf32>
    %36 = vector.shape_cast %35 : vector<1x16xf32> to vector<1x16xf32>
    %37 = vector.broadcast %36 : vector<1x16xf32> to vector<16x16xf32>
    %c0_18 = arith.constant 0 : index
    %c0_19 = arith.constant 0 : index
    %c0_20 = arith.constant 0 : index
    %38 = vector.load %arg8[%c0_18, %c0_19, %c0_20] : memref<2x16x128xf32, #tpu.memory_space<vmem>>, vector<1x16x128xf32>
    %39 = vector.shape_cast %38 : vector<1x16x128xf32> to vector<16x128xf32>
    %40 = arith.truncf %33 : vector<16x128xf32> to vector<16x128xbf16>
    %c0_21 = arith.constant 0 : index
    %c0_22 = arith.constant 0 : index
    %c0_23 = arith.constant 0 : index
    %41 = vector.load %arg6[%c0_21, %c0_22, %c0_23] : memref<2x128x768xbf16, #tpu.memory_space<vmem>>, vector<1x128x768xbf16>
    %42 = vector.shape_cast %41 : vector<1x128x768xbf16> to vector<128x768xbf16>
    %cst_24 = arith.constant dense<0.000000e+00> : vector<16x768xf32>
    %43 = tpu.matmul %40, %42, %cst_24 {dimension_numbers = #tpu.dot_dimension_numbers<[1], [0], [0], [1], [0, 0, 1, 1], [], []>} : vector<16x128xbf16>, vector<128x768xbf16>, vector<16x768xf32> -> vector<16x768xf32>
    %c0_25 = arith.constant 0 : index
    %c0_26 = arith.constant 0 : index
    %c0_27 = arith.constant 0 : index
    %44 = vector.load %arg7[%c0_25, %c0_26, %c0_27] : memref<2x1x768xf32, #tpu.memory_space<vmem>>, vector<1x1x768xf32>
    %45 = vector.shape_cast %44 : vector<1x1x768xf32> to vector<1x768xf32>
    %46 = vector.broadcast %45 : vector<1x768xf32> to vector<16x768xf32>
    %47 = arith.addf %43, %46 : vector<16x768xf32>
    %48 = vector.extract_strided_slice %47 {offsets = [0, 0], sizes = [16, 128], strides = [1, 1]} : vector<16x768xf32> to vector<16x128xf32>
    %49 = arith.truncf %48 : vector<16x128xf32> to vector<16x128xbf16>
    %50 = vector.extract_strided_slice %47 {offsets = [0, 128], sizes = [16, 128], strides = [1, 1]} : vector<16x768xf32> to vector<16x128xf32>
    %51 = arith.truncf %50 : vector<16x128xf32> to vector<16x128xbf16>
    %52 = vector.extract_strided_slice %47 {offsets = [0, 256], sizes = [16, 128], strides = [1, 1]} : vector<16x768xf32> to vector<16x128xf32>
    %53 = arith.truncf %52 : vector<16x128xf32> to vector<16x128xbf16>
    %cst_28 = arith.constant dense<0.000000e+00> : vector<16x16xf32>
    %54 = tpu.matmul %49, %51, %cst_28 {dimension_numbers = #tpu.dot_dimension_numbers<[1], [1], [0], [0], [0, 0, 1, 0], [], []>} : vector<16x128xbf16>, vector<16x128xbf16>, vector<16x16xf32> -> vector<16x16xf32>
    %55 = arith.addf %54, %37 : vector<16x16xf32>
    %cst_29 = arith.constant dense<0xFF800000> : vector<16xf32>
    %56 = vector.multi_reduction <maximumf>, %55, %cst_29 [1] : vector<16x16xf32> to vector<16xf32>
    %57 = vector.shape_cast %56 : vector<16xf32> to vector<16x1xf32>
    %58 = vector.broadcast %57 : vector<16x1xf32> to vector<16x16xf32>
    %59 = arith.subf %55, %58 : vector<16x16xf32>
    %60 = math.exp %59 : vector<16x16xf32>
    %cst_30 = arith.constant dense<0.000000e+00> : vector<16xf32>
    %61 = vector.multi_reduction <add>, %60, %cst_30 [1] : vector<16x16xf32> to vector<16xf32>
    %62 = vector.shape_cast %61 : vector<16xf32> to vector<16x1xf32>
    %63 = tpu.reciprocal %62 {approx = true} : vector<16x1xf32> -> vector<16x1xf32>
    %64 = vector.broadcast %63 : vector<16x1xf32> to vector<16x16xf32>
    %65 = arith.mulf %60, %64 : vector<16x16xf32>
    %66 = arith.truncf %65 : vector<16x16xf32> to vector<16x16xbf16>
    %cst_31 = arith.constant dense<0.000000e+00> : vector<16x128xf32>
    %67 = tpu.matmul %66, %53, %cst_31 {dimension_numbers = #tpu.dot_dimension_numbers<[1], [0], [0], [1], [0, 0, 1, 1], [], []>} : vector<16x16xbf16>, vector<16x128xbf16>, vector<16x128xf32> -> vector<16x128xf32>
    %68 = vector.extract_strided_slice %47 {offsets = [0, 384], sizes = [16, 128], strides = [1, 1]} : vector<16x768xf32> to vector<16x128xf32>
    %69 = arith.truncf %68 : vector<16x128xf32> to vector<16x128xbf16>
    %70 = vector.extract_strided_slice %47 {offsets = [0, 512], sizes = [16, 128], strides = [1, 1]} : vector<16x768xf32> to vector<16x128xf32>
    %71 = arith.truncf %70 : vector<16x128xf32> to vector<16x128xbf16>
    %72 = vector.extract_strided_slice %47 {offsets = [0, 640], sizes = [16, 128], strides = [1, 1]} : vector<16x768xf32> to vector<16x128xf32>
    %73 = arith.truncf %72 : vector<16x128xf32> to vector<16x128xbf16>
    %cst_32 = arith.constant dense<0.000000e+00> : vector<16x16xf32>
    %74 = tpu.matmul %69, %71, %cst_32 {dimension_numbers = #tpu.dot_dimension_numbers<[1], [1], [0], [0], [0, 0, 1, 0], [], []>} : vector<16x128xbf16>, vector<16x128xbf16>, vector<16x16xf32> -> vector<16x16xf32>
    %75 = arith.addf %74, %37 : vector<16x16xf32>
    %cst_33 = arith.constant dense<0xFF800000> : vector<16xf32>
    %76 = vector.multi_reduction <maximumf>, %75, %cst_33 [1] : vector<16x16xf32> to vector<16xf32>
    %77 = vector.shape_cast %76 : vector<16xf32> to vector<16x1xf32>
    %78 = vector.broadcast %77 : vector<16x1xf32> to vector<16x16xf32>
    %79 = arith.subf %75, %78 : vector<16x16xf32>
    %80 = math.exp %79 : vector<16x16xf32>
    %cst_34 = arith.constant dense<0.000000e+00> : vector<16xf32>
    %81 = vector.multi_reduction <add>, %80, %cst_34 [1] : vector<16x16xf32> to vector<16xf32>
    %82 = vector.shape_cast %81 : vector<16xf32> to vector<16x1xf32>
    %83 = tpu.reciprocal %82 {approx = true} : vector<16x1xf32> -> vector<16x1xf32>
    %84 = vector.broadcast %83 : vector<16x1xf32> to vector<16x16xf32>
    %85 = arith.mulf %80, %84 : vector<16x16xf32>
    %86 = arith.truncf %85 : vector<16x16xf32> to vector<16x16xbf16>
    %cst_35 = arith.constant dense<0.000000e+00> : vector<16x128xf32>
    %87 = tpu.matmul %86, %73, %cst_35 {dimension_numbers = #tpu.dot_dimension_numbers<[1], [0], [0], [1], [0, 0, 1, 1], [], []>} : vector<16x16xbf16>, vector<16x128xbf16>, vector<16x128xf32> -> vector<16x128xf32>
    %88 = arith.addf %67, %87 : vector<16x128xf32>
    %89 = vector.extract_strided_slice %39 {offsets = [0, 0], sizes = [1, 128], strides = [1, 1]} : vector<16x128xf32> to vector<1x128xf32>
    %90 = vector.broadcast %89 : vector<1x128xf32> to vector<16x128xf32>
    %91 = arith.addf %88, %90 : vector<16x128xf32>
    %92 = arith.addf %33, %91 : vector<16x128xf32>
    %93 = vector.extract_strided_slice %39 {offsets = [1, 0], sizes = [1, 128], strides = [1, 1]} : vector<16x128xf32> to vector<1x128xf32>
    %94 = vector.extract_strided_slice %39 {offsets = [2, 0], sizes = [1, 128], strides = [1, 1]} : vector<16x128xf32> to vector<1x128xf32>
    %cst_36 = arith.constant dense<0.000000e+00> : vector<16xf32>
    %95 = vector.multi_reduction <add>, %92, %cst_36 [1] : vector<16x128xf32> to vector<16xf32>
    %96 = vector.shape_cast %95 : vector<16xf32> to vector<16x1xf32>
    %97 = arith.mulf %92, %92 : vector<16x128xf32>
    %cst_37 = arith.constant dense<0.000000e+00> : vector<16xf32>
    %98 = vector.multi_reduction <add>, %97, %cst_37 [1] : vector<16x128xf32> to vector<16xf32>
    %99 = vector.shape_cast %98 : vector<16xf32> to vector<16x1xf32>
    %cst_38 = arith.constant 3.125000e-02 : f32
    %100 = vector.broadcast %cst_38 : f32 to vector<16x1xf32>
    %101 = arith.mulf %96, %100 : vector<16x1xf32>
    %cst_39 = arith.constant 3.125000e-02 : f32
    %102 = vector.broadcast %cst_39 : f32 to vector<16x1xf32>
    %103 = arith.mulf %99, %102 : vector<16x1xf32>
    %104 = arith.mulf %101, %101 : vector<16x1xf32>
    %105 = arith.subf %103, %104 : vector<16x1xf32>
    %cst_40 = arith.constant 0.000000e+00 : f32
    %106 = vector.broadcast %cst_40 : f32 to vector<16x1xf32>
    %107 = arith.maximumf %105, %106 : vector<16x1xf32>
    %108 = vector.broadcast %101 : vector<16x1xf32> to vector<16x128xf32>
    %109 = arith.subf %92, %108 : vector<16x128xf32>
    %cst_41 = arith.constant 9.99999996E-13 : f32
    %110 = vector.broadcast %cst_41 : f32 to vector<16x1xf32>
    %111 = arith.addf %107, %110 : vector<16x1xf32>
    %112 = math.rsqrt %111 : vector<16x1xf32>
    %113 = vector.broadcast %112 : vector<16x1xf32> to vector<16x128xf32>
    %114 = arith.mulf %109, %113 : vector<16x128xf32>
    %115 = vector.broadcast %93 : vector<1x128xf32> to vector<16x128xf32>
    %116 = arith.mulf %114, %115 : vector<16x128xf32>
    %117 = vector.broadcast %94 : vector<1x128xf32> to vector<16x128xf32>
    %118 = arith.addf %116, %117 : vector<16x128xf32>
    %c0_42 = arith.constant 0 : index
    %c0_43 = arith.constant 0 : index
    %c0_44 = arith.constant 0 : index
    %119 = vector.load %arg9[%c0_42, %c0_43, %c0_44] : memref<2x256x128xbf16, #tpu.memory_space<vmem>>, vector<1x256x128xbf16>
    %120 = vector.shape_cast %119 : vector<1x256x128xbf16> to vector<256x128xbf16>
    %121 = arith.truncf %118 : vector<16x128xf32> to vector<16x128xbf16>
    %122 = vector.extract_strided_slice %120 {offsets = [0, 0], sizes = [128, 128], strides = [1, 1]} : vector<256x128xbf16> to vector<128x128xbf16>
    %cst_45 = arith.constant dense<0.000000e+00> : vector<16x128xf32>
    %123 = tpu.matmul %121, %122, %cst_45 {dimension_numbers = #tpu.dot_dimension_numbers<[1], [0], [0], [1], [0, 0, 1, 1], [], []>} : vector<16x128xbf16>, vector<128x128xbf16>, vector<16x128xf32> -> vector<16x128xf32>
    %124 = vector.extract_strided_slice %39 {offsets = [3, 0], sizes = [1, 128], strides = [1, 1]} : vector<16x128xf32> to vector<1x128xf32>
    %125 = vector.broadcast %124 : vector<1x128xf32> to vector<16x128xf32>
    %126 = arith.addf %123, %125 : vector<16x128xf32>
    %cst_46 = arith.constant 5.000000e-01 : f32
    %127 = vector.broadcast %cst_46 : f32 to vector<16x128xf32>
    %128 = arith.mulf %127, %126 : vector<16x128xf32>
    %cst_47 = arith.constant 4.471500e-02 : f32
    %129 = vector.broadcast %cst_47 : f32 to vector<16x128xf32>
    %130 = arith.mulf %129, %126 : vector<16x128xf32>
    %131 = arith.mulf %130, %126 : vector<16x128xf32>
    %132 = arith.mulf %131, %126 : vector<16x128xf32>
    %133 = arith.addf %126, %132 : vector<16x128xf32>
    %cst_48 = arith.constant 0.797884583 : f32
    %134 = vector.broadcast %cst_48 : f32 to vector<16x128xf32>
    %135 = arith.mulf %134, %133 : vector<16x128xf32>
    %136 = math.tanh %135 : vector<16x128xf32>
    %cst_49 = arith.constant 1.000000e+00 : f32
    %137 = vector.broadcast %cst_49 : f32 to vector<16x128xf32>
    %138 = arith.addf %137, %136 : vector<16x128xf32>
    %139 = arith.mulf %128, %138 : vector<16x128xf32>
    %140 = arith.truncf %139 : vector<16x128xf32> to vector<16x128xbf16>
    %141 = vector.extract_strided_slice %120 {offsets = [128, 0], sizes = [128, 128], strides = [1, 1]} : vector<256x128xbf16> to vector<128x128xbf16>
    %cst_50 = arith.constant dense<0.000000e+00> : vector<16x128xf32>
    %142 = tpu.matmul %140, %141, %cst_50 {dimension_numbers = #tpu.dot_dimension_numbers<[1], [0], [0], [1], [0, 0, 1, 1], [], []>} : vector<16x128xbf16>, vector<128x128xbf16>, vector<16x128xf32> -> vector<16x128xf32>
    %143 = vector.extract_strided_slice %39 {offsets = [4, 0], sizes = [1, 128], strides = [1, 1]} : vector<16x128xf32> to vector<1x128xf32>
    %144 = vector.broadcast %143 : vector<1x128xf32> to vector<16x128xf32>
    %145 = arith.addf %142, %144 : vector<16x128xf32>
    %146 = arith.addf %118, %145 : vector<16x128xf32>
    %147 = vector.extract_strided_slice %39 {offsets = [5, 0], sizes = [1, 128], strides = [1, 1]} : vector<16x128xf32> to vector<1x128xf32>
    %148 = vector.extract_strided_slice %39 {offsets = [6, 0], sizes = [1, 128], strides = [1, 1]} : vector<16x128xf32> to vector<1x128xf32>
    %cst_51 = arith.constant dense<0.000000e+00> : vector<16xf32>
    %149 = vector.multi_reduction <add>, %146, %cst_51 [1] : vector<16x128xf32> to vector<16xf32>
    %150 = vector.shape_cast %149 : vector<16xf32> to vector<16x1xf32>
    %151 = arith.mulf %146, %146 : vector<16x128xf32>
    %cst_52 = arith.constant dense<0.000000e+00> : vector<16xf32>
    %152 = vector.multi_reduction <add>, %151, %cst_52 [1] : vector<16x128xf32> to vector<16xf32>
    %153 = vector.shape_cast %152 : vector<16xf32> to vector<16x1xf32>
    %cst_53 = arith.constant 3.125000e-02 : f32
    %154 = vector.broadcast %cst_53 : f32 to vector<16x1xf32>
    %155 = arith.mulf %150, %154 : vector<16x1xf32>
    %cst_54 = arith.constant 3.125000e-02 : f32
    %156 = vector.broadcast %cst_54 : f32 to vector<16x1xf32>
    %157 = arith.mulf %153, %156 : vector<16x1xf32>
    %158 = arith.mulf %155, %155 : vector<16x1xf32>
    %159 = arith.subf %157, %158 : vector<16x1xf32>
    %cst_55 = arith.constant 0.000000e+00 : f32
    %160 = vector.broadcast %cst_55 : f32 to vector<16x1xf32>
    %161 = arith.maximumf %159, %160 : vector<16x1xf32>
    %162 = vector.broadcast %155 : vector<16x1xf32> to vector<16x128xf32>
    %163 = arith.subf %146, %162 : vector<16x128xf32>
    %cst_56 = arith.constant 9.99999996E-13 : f32
    %164 = vector.broadcast %cst_56 : f32 to vector<16x1xf32>
    %165 = arith.addf %161, %164 : vector<16x1xf32>
    %166 = math.rsqrt %165 : vector<16x1xf32>
    %167 = vector.broadcast %166 : vector<16x1xf32> to vector<16x128xf32>
    %168 = arith.mulf %163, %167 : vector<16x128xf32>
    %169 = vector.broadcast %147 : vector<1x128xf32> to vector<16x128xf32>
    %170 = arith.mulf %168, %169 : vector<16x128xf32>
    %171 = vector.broadcast %148 : vector<1x128xf32> to vector<16x128xf32>
    %172 = arith.addf %170, %171 : vector<16x128xf32>
    %c1 = arith.constant 1 : index
    %c0_57 = arith.constant 0 : index
    %c0_58 = arith.constant 0 : index
    %173 = vector.load %arg8[%c1, %c0_57, %c0_58] : memref<2x16x128xf32, #tpu.memory_space<vmem>>, vector<1x16x128xf32>
    %174 = vector.shape_cast %173 : vector<1x16x128xf32> to vector<16x128xf32>
    %175 = arith.truncf %172 : vector<16x128xf32> to vector<16x128xbf16>
    %c1_59 = arith.constant 1 : index
    %c0_60 = arith.constant 0 : index
    %c0_61 = arith.constant 0 : index
    %176 = vector.load %arg6[%c1_59, %c0_60, %c0_61] : memref<2x128x768xbf16, #tpu.memory_space<vmem>>, vector<1x128x768xbf16>
    %177 = vector.shape_cast %176 : vector<1x128x768xbf16> to vector<128x768xbf16>
    %cst_62 = arith.constant dense<0.000000e+00> : vector<16x768xf32>
    %178 = tpu.matmul %175, %177, %cst_62 {dimension_numbers = #tpu.dot_dimension_numbers<[1], [0], [0], [1], [0, 0, 1, 1], [], []>} : vector<16x128xbf16>, vector<128x768xbf16>, vector<16x768xf32> -> vector<16x768xf32>
    %c1_63 = arith.constant 1 : index
    %c0_64 = arith.constant 0 : index
    %c0_65 = arith.constant 0 : index
    %179 = vector.load %arg7[%c1_63, %c0_64, %c0_65] : memref<2x1x768xf32, #tpu.memory_space<vmem>>, vector<1x1x768xf32>
    %180 = vector.shape_cast %179 : vector<1x1x768xf32> to vector<1x768xf32>
    %181 = vector.broadcast %180 : vector<1x768xf32> to vector<16x768xf32>
    %182 = arith.addf %178, %181 : vector<16x768xf32>
    %183 = vector.extract_strided_slice %182 {offsets = [0, 0], sizes = [16, 128], strides = [1, 1]} : vector<16x768xf32> to vector<16x128xf32>
    %184 = arith.truncf %183 : vector<16x128xf32> to vector<16x128xbf16>
    %185 = vector.extract_strided_slice %182 {offsets = [0, 128], sizes = [16, 128], strides = [1, 1]} : vector<16x768xf32> to vector<16x128xf32>
    %186 = arith.truncf %185 : vector<16x128xf32> to vector<16x128xbf16>
    %187 = vector.extract_strided_slice %182 {offsets = [0, 256], sizes = [16, 128], strides = [1, 1]} : vector<16x768xf32> to vector<16x128xf32>
    %188 = arith.truncf %187 : vector<16x128xf32> to vector<16x128xbf16>
    %cst_66 = arith.constant dense<0.000000e+00> : vector<16x16xf32>
    %189 = tpu.matmul %184, %186, %cst_66 {dimension_numbers = #tpu.dot_dimension_numbers<[1], [1], [0], [0], [0, 0, 1, 0], [], []>} : vector<16x128xbf16>, vector<16x128xbf16>, vector<16x16xf32> -> vector<16x16xf32>
    %190 = arith.addf %189, %37 : vector<16x16xf32>
    %cst_67 = arith.constant dense<0xFF800000> : vector<16xf32>
    %191 = vector.multi_reduction <maximumf>, %190, %cst_67 [1] : vector<16x16xf32> to vector<16xf32>
    %192 = vector.shape_cast %191 : vector<16xf32> to vector<16x1xf32>
    %193 = vector.broadcast %192 : vector<16x1xf32> to vector<16x16xf32>
    %194 = arith.subf %190, %193 : vector<16x16xf32>
    %195 = math.exp %194 : vector<16x16xf32>
    %cst_68 = arith.constant dense<0.000000e+00> : vector<16xf32>
    %196 = vector.multi_reduction <add>, %195, %cst_68 [1] : vector<16x16xf32> to vector<16xf32>
    %197 = vector.shape_cast %196 : vector<16xf32> to vector<16x1xf32>
    %198 = tpu.reciprocal %197 {approx = true} : vector<16x1xf32> -> vector<16x1xf32>
    %199 = vector.broadcast %198 : vector<16x1xf32> to vector<16x16xf32>
    %200 = arith.mulf %195, %199 : vector<16x16xf32>
    %201 = arith.truncf %200 : vector<16x16xf32> to vector<16x16xbf16>
    %cst_69 = arith.constant dense<0.000000e+00> : vector<16x128xf32>
    %202 = tpu.matmul %201, %188, %cst_69 {dimension_numbers = #tpu.dot_dimension_numbers<[1], [0], [0], [1], [0, 0, 1, 1], [], []>} : vector<16x16xbf16>, vector<16x128xbf16>, vector<16x128xf32> -> vector<16x128xf32>
    %203 = vector.extract_strided_slice %182 {offsets = [0, 384], sizes = [16, 128], strides = [1, 1]} : vector<16x768xf32> to vector<16x128xf32>
    %204 = arith.truncf %203 : vector<16x128xf32> to vector<16x128xbf16>
    %205 = vector.extract_strided_slice %182 {offsets = [0, 512], sizes = [16, 128], strides = [1, 1]} : vector<16x768xf32> to vector<16x128xf32>
    %206 = arith.truncf %205 : vector<16x128xf32> to vector<16x128xbf16>
    %207 = vector.extract_strided_slice %182 {offsets = [0, 640], sizes = [16, 128], strides = [1, 1]} : vector<16x768xf32> to vector<16x128xf32>
    %208 = arith.truncf %207 : vector<16x128xf32> to vector<16x128xbf16>
    %cst_70 = arith.constant dense<0.000000e+00> : vector<16x16xf32>
    %209 = tpu.matmul %204, %206, %cst_70 {dimension_numbers = #tpu.dot_dimension_numbers<[1], [1], [0], [0], [0, 0, 1, 0], [], []>} : vector<16x128xbf16>, vector<16x128xbf16>, vector<16x16xf32> -> vector<16x16xf32>
    %210 = arith.addf %209, %37 : vector<16x16xf32>
    %cst_71 = arith.constant dense<0xFF800000> : vector<16xf32>
    %211 = vector.multi_reduction <maximumf>, %210, %cst_71 [1] : vector<16x16xf32> to vector<16xf32>
    %212 = vector.shape_cast %211 : vector<16xf32> to vector<16x1xf32>
    %213 = vector.broadcast %212 : vector<16x1xf32> to vector<16x16xf32>
    %214 = arith.subf %210, %213 : vector<16x16xf32>
    %215 = math.exp %214 : vector<16x16xf32>
    %cst_72 = arith.constant dense<0.000000e+00> : vector<16xf32>
    %216 = vector.multi_reduction <add>, %215, %cst_72 [1] : vector<16x16xf32> to vector<16xf32>
    %217 = vector.shape_cast %216 : vector<16xf32> to vector<16x1xf32>
    %218 = tpu.reciprocal %217 {approx = true} : vector<16x1xf32> -> vector<16x1xf32>
    %219 = vector.broadcast %218 : vector<16x1xf32> to vector<16x16xf32>
    %220 = arith.mulf %215, %219 : vector<16x16xf32>
    %221 = arith.truncf %220 : vector<16x16xf32> to vector<16x16xbf16>
    %cst_73 = arith.constant dense<0.000000e+00> : vector<16x128xf32>
    %222 = tpu.matmul %221, %208, %cst_73 {dimension_numbers = #tpu.dot_dimension_numbers<[1], [0], [0], [1], [0, 0, 1, 1], [], []>} : vector<16x16xbf16>, vector<16x128xbf16>, vector<16x128xf32> -> vector<16x128xf32>
    %223 = arith.addf %202, %222 : vector<16x128xf32>
    %224 = vector.extract_strided_slice %174 {offsets = [0, 0], sizes = [1, 128], strides = [1, 1]} : vector<16x128xf32> to vector<1x128xf32>
    %225 = vector.broadcast %224 : vector<1x128xf32> to vector<16x128xf32>
    %226 = arith.addf %223, %225 : vector<16x128xf32>
    %227 = arith.addf %172, %226 : vector<16x128xf32>
    %228 = vector.extract_strided_slice %174 {offsets = [1, 0], sizes = [1, 128], strides = [1, 1]} : vector<16x128xf32> to vector<1x128xf32>
    %229 = vector.extract_strided_slice %174 {offsets = [2, 0], sizes = [1, 128], strides = [1, 1]} : vector<16x128xf32> to vector<1x128xf32>
    %cst_74 = arith.constant dense<0.000000e+00> : vector<16xf32>
    %230 = vector.multi_reduction <add>, %227, %cst_74 [1] : vector<16x128xf32> to vector<16xf32>
    %231 = vector.shape_cast %230 : vector<16xf32> to vector<16x1xf32>
    %232 = arith.mulf %227, %227 : vector<16x128xf32>
    %cst_75 = arith.constant dense<0.000000e+00> : vector<16xf32>
    %233 = vector.multi_reduction <add>, %232, %cst_75 [1] : vector<16x128xf32> to vector<16xf32>
    %234 = vector.shape_cast %233 : vector<16xf32> to vector<16x1xf32>
    %cst_76 = arith.constant 3.125000e-02 : f32
    %235 = vector.broadcast %cst_76 : f32 to vector<16x1xf32>
    %236 = arith.mulf %231, %235 : vector<16x1xf32>
    %cst_77 = arith.constant 3.125000e-02 : f32
    %237 = vector.broadcast %cst_77 : f32 to vector<16x1xf32>
    %238 = arith.mulf %234, %237 : vector<16x1xf32>
    %239 = arith.mulf %236, %236 : vector<16x1xf32>
    %240 = arith.subf %238, %239 : vector<16x1xf32>
    %cst_78 = arith.constant 0.000000e+00 : f32
    %241 = vector.broadcast %cst_78 : f32 to vector<16x1xf32>
    %242 = arith.maximumf %240, %241 : vector<16x1xf32>
    %243 = vector.broadcast %236 : vector<16x1xf32> to vector<16x128xf32>
    %244 = arith.subf %227, %243 : vector<16x128xf32>
    %cst_79 = arith.constant 9.99999996E-13 : f32
    %245 = vector.broadcast %cst_79 : f32 to vector<16x1xf32>
    %246 = arith.addf %242, %245 : vector<16x1xf32>
    %247 = math.rsqrt %246 : vector<16x1xf32>
    %248 = vector.broadcast %247 : vector<16x1xf32> to vector<16x128xf32>
    %249 = arith.mulf %244, %248 : vector<16x128xf32>
    %250 = vector.broadcast %228 : vector<1x128xf32> to vector<16x128xf32>
    %251 = arith.mulf %249, %250 : vector<16x128xf32>
    %252 = vector.broadcast %229 : vector<1x128xf32> to vector<16x128xf32>
    %253 = arith.addf %251, %252 : vector<16x128xf32>
    %c1_80 = arith.constant 1 : index
    %c0_81 = arith.constant 0 : index
    %c0_82 = arith.constant 0 : index
    %254 = vector.load %arg9[%c1_80, %c0_81, %c0_82] : memref<2x256x128xbf16, #tpu.memory_space<vmem>>, vector<1x256x128xbf16>
    %255 = vector.shape_cast %254 : vector<1x256x128xbf16> to vector<256x128xbf16>
    %256 = arith.truncf %253 : vector<16x128xf32> to vector<16x128xbf16>
    %257 = vector.extract_strided_slice %255 {offsets = [0, 0], sizes = [128, 128], strides = [1, 1]} : vector<256x128xbf16> to vector<128x128xbf16>
    %cst_83 = arith.constant dense<0.000000e+00> : vector<16x128xf32>
    %258 = tpu.matmul %256, %257, %cst_83 {dimension_numbers = #tpu.dot_dimension_numbers<[1], [0], [0], [1], [0, 0, 1, 1], [], []>} : vector<16x128xbf16>, vector<128x128xbf16>, vector<16x128xf32> -> vector<16x128xf32>
    %259 = vector.extract_strided_slice %174 {offsets = [3, 0], sizes = [1, 128], strides = [1, 1]} : vector<16x128xf32> to vector<1x128xf32>
    %260 = vector.broadcast %259 : vector<1x128xf32> to vector<16x128xf32>
    %261 = arith.addf %258, %260 : vector<16x128xf32>
    %cst_84 = arith.constant 5.000000e-01 : f32
    %262 = vector.broadcast %cst_84 : f32 to vector<16x128xf32>
    %263 = arith.mulf %262, %261 : vector<16x128xf32>
    %cst_85 = arith.constant 4.471500e-02 : f32
    %264 = vector.broadcast %cst_85 : f32 to vector<16x128xf32>
    %265 = arith.mulf %264, %261 : vector<16x128xf32>
    %266 = arith.mulf %265, %261 : vector<16x128xf32>
    %267 = arith.mulf %266, %261 : vector<16x128xf32>
    %268 = arith.addf %261, %267 : vector<16x128xf32>
    %cst_86 = arith.constant 0.797884583 : f32
    %269 = vector.broadcast %cst_86 : f32 to vector<16x128xf32>
    %270 = arith.mulf %269, %268 : vector<16x128xf32>
    %271 = math.tanh %270 : vector<16x128xf32>
    %cst_87 = arith.constant 1.000000e+00 : f32
    %272 = vector.broadcast %cst_87 : f32 to vector<16x128xf32>
    %273 = arith.addf %272, %271 : vector<16x128xf32>
    %274 = arith.mulf %263, %273 : vector<16x128xf32>
    %275 = arith.truncf %274 : vector<16x128xf32> to vector<16x128xbf16>
    %276 = vector.extract_strided_slice %255 {offsets = [128, 0], sizes = [128, 128], strides = [1, 1]} : vector<256x128xbf16> to vector<128x128xbf16>
    %cst_88 = arith.constant dense<0.000000e+00> : vector<16x128xf32>
    %277 = tpu.matmul %275, %276, %cst_88 {dimension_numbers = #tpu.dot_dimension_numbers<[1], [0], [0], [1], [0, 0, 1, 1], [], []>} : vector<16x128xbf16>, vector<128x128xbf16>, vector<16x128xf32> -> vector<16x128xf32>
    %278 = vector.extract_strided_slice %174 {offsets = [4, 0], sizes = [1, 128], strides = [1, 1]} : vector<16x128xf32> to vector<1x128xf32>
    %279 = vector.broadcast %278 : vector<1x128xf32> to vector<16x128xf32>
    %280 = arith.addf %277, %279 : vector<16x128xf32>
    %281 = arith.addf %253, %280 : vector<16x128xf32>
    %282 = vector.extract_strided_slice %174 {offsets = [5, 0], sizes = [1, 128], strides = [1, 1]} : vector<16x128xf32> to vector<1x128xf32>
    %283 = vector.extract_strided_slice %174 {offsets = [6, 0], sizes = [1, 128], strides = [1, 1]} : vector<16x128xf32> to vector<1x128xf32>
    %cst_89 = arith.constant dense<0.000000e+00> : vector<16xf32>
    %284 = vector.multi_reduction <add>, %281, %cst_89 [1] : vector<16x128xf32> to vector<16xf32>
    %285 = vector.shape_cast %284 : vector<16xf32> to vector<16x1xf32>
    %286 = arith.mulf %281, %281 : vector<16x128xf32>
    %cst_90 = arith.constant dense<0.000000e+00> : vector<16xf32>
    %287 = vector.multi_reduction <add>, %286, %cst_90 [1] : vector<16x128xf32> to vector<16xf32>
    %288 = vector.shape_cast %287 : vector<16xf32> to vector<16x1xf32>
    %cst_91 = arith.constant 3.125000e-02 : f32
    %289 = vector.broadcast %cst_91 : f32 to vector<16x1xf32>
    %290 = arith.mulf %285, %289 : vector<16x1xf32>
    %cst_92 = arith.constant 3.125000e-02 : f32
    %291 = vector.broadcast %cst_92 : f32 to vector<16x1xf32>
    %292 = arith.mulf %288, %291 : vector<16x1xf32>
    %293 = arith.mulf %290, %290 : vector<16x1xf32>
    %294 = arith.subf %292, %293 : vector<16x1xf32>
    %cst_93 = arith.constant 0.000000e+00 : f32
    %295 = vector.broadcast %cst_93 : f32 to vector<16x1xf32>
    %296 = arith.maximumf %294, %295 : vector<16x1xf32>
    %297 = vector.broadcast %290 : vector<16x1xf32> to vector<16x128xf32>
    %298 = arith.subf %281, %297 : vector<16x128xf32>
    %cst_94 = arith.constant 9.99999996E-13 : f32
    %299 = vector.broadcast %cst_94 : f32 to vector<16x1xf32>
    %300 = arith.addf %296, %299 : vector<16x1xf32>
    %301 = math.rsqrt %300 : vector<16x1xf32>
    %302 = vector.broadcast %301 : vector<16x1xf32> to vector<16x128xf32>
    %303 = arith.mulf %298, %302 : vector<16x128xf32>
    %304 = vector.broadcast %282 : vector<1x128xf32> to vector<16x128xf32>
    %305 = arith.mulf %303, %304 : vector<16x128xf32>
    %306 = vector.broadcast %283 : vector<1x128xf32> to vector<16x128xf32>
    %307 = arith.addf %305, %306 : vector<16x128xf32>
    %c0_95 = arith.constant 0 : index
    %c0_96 = arith.constant 0 : index
    %c0_97 = arith.constant 0 : index
    %308 = vector.load %arg3[%c0_95, %c0_96, %c0_97] : memref<2x8x16xf32, #tpu.memory_space<vmem>>, vector<1x8x16xf32>
    %309 = vector.shape_cast %308 : vector<1x8x16xf32> to vector<8x16xf32>
    %cst_98 = arith.constant dense<0.000000e+00> : vector<8x128xf32>
    %310 = tpu.matmul %309, %307, %cst_98 {dimension_numbers = #tpu.dot_dimension_numbers<[1], [0], [0], [1], [0, 0, 1, 1], [], []>} : vector<8x16xf32>, vector<16x128xf32>, vector<8x128xf32> -> vector<8x128xf32>
    %c0_99 = arith.constant 0 : index
    %c0_100 = arith.constant 0 : index
    %c0_101 = arith.constant 0 : index
    %311 = vector.load %arg10[%c0_99, %c0_100, %c0_101] : memref<2x8x128xf32, #tpu.memory_space<vmem>>, vector<1x8x128xf32>
    %312 = vector.shape_cast %311 : vector<1x8x128xf32> to vector<8x128xf32>
    %313 = vector.shape_cast %310 : vector<8x128xf32> to vector<1x8x128xf32>
    tpu.vector_store %arg10[%c0_99, %c0_100, %c0_101], %313 {strides = array<i32>} : memref<2x8x128xf32, #tpu.memory_space<vmem>>, vector<1x8x128xf32>,
    %c1_102 = arith.constant 1 : index
    %c0_103 = arith.constant 0 : index
    %c0_104 = arith.constant 0 : index
    %314 = vector.load %arg1[%c1_102, %c0_103, %c0_104] : memref<2x16x64xf32, #tpu.memory_space<vmem>>, vector<1x16x64xf32>
    %315 = vector.shape_cast %314 : vector<1x16x64xf32> to vector<16x64xf32>
    %cst_105 = arith.constant dense<0.000000e+00> : vector<16x128xf32>
    %316 = tpu.matmul %315, %0, %cst_105 {dimension_numbers = #tpu.dot_dimension_numbers<[1], [0], [0], [1], [0, 0, 1, 1], [], []>} : vector<16x64xf32>, vector<64x128xf32>, vector<16x128xf32> -> vector<16x128xf32>
    %317 = arith.addf %316, %1 : vector<16x128xf32>
    %cst_106 = arith.constant dense<0.000000e+00> : vector<16xf32>
    %318 = vector.multi_reduction <add>, %317, %cst_106 [1] : vector<16x128xf32> to vector<16xf32>
    %319 = vector.shape_cast %318 : vector<16xf32> to vector<16x1xf32>
    %320 = arith.mulf %317, %317 : vector<16x128xf32>
    %cst_107 = arith.constant dense<0.000000e+00> : vector<16xf32>
    %321 = vector.multi_reduction <add>, %320, %cst_107 [1] : vector<16x128xf32> to vector<16xf32>
    %322 = vector.shape_cast %321 : vector<16xf32> to vector<16x1xf32>
    %cst_108 = arith.constant 3.125000e-02 : f32
    %323 = vector.broadcast %cst_108 : f32 to vector<16x1xf32>
    %324 = arith.mulf %319, %323 : vector<16x1xf32>
    %cst_109 = arith.constant 3.125000e-02 : f32
    %325 = vector.broadcast %cst_109 : f32 to vector<16x1xf32>
    %326 = arith.mulf %322, %325 : vector<16x1xf32>
    %327 = arith.mulf %324, %324 : vector<16x1xf32>
    %328 = arith.subf %326, %327 : vector<16x1xf32>
    %cst_110 = arith.constant 0.000000e+00 : f32
    %329 = vector.broadcast %cst_110 : f32 to vector<16x1xf32>
    %330 = arith.maximumf %328, %329 : vector<16x1xf32>
    %331 = vector.broadcast %324 : vector<16x1xf32> to vector<16x128xf32>
    %332 = arith.subf %317, %331 : vector<16x128xf32>
    %cst_111 = arith.constant 9.99999996E-13 : f32
    %333 = vector.broadcast %cst_111 : f32 to vector<16x1xf32>
    %334 = arith.addf %330, %333 : vector<16x1xf32>
    %335 = math.rsqrt %334 : vector<16x1xf32>
    %336 = vector.broadcast %335 : vector<16x1xf32> to vector<16x128xf32>
    %337 = arith.mulf %332, %336 : vector<16x128xf32>
    %338 = vector.broadcast %4 : vector<1x128xf32> to vector<16x128xf32>
    %339 = arith.mulf %337, %338 : vector<16x128xf32>
    %340 = vector.broadcast %5 : vector<1x128xf32> to vector<16x128xf32>
    %341 = arith.addf %339, %340 : vector<16x128xf32>
    %c1_112 = arith.constant 1 : index
    %c0_113 = arith.constant 0 : index
    %c0_114 = arith.constant 0 : index
    %342 = vector.load %arg2[%c1_112, %c0_113, %c0_114] : memref<2x1x16xf32, #tpu.memory_space<vmem>>, vector<1x1x16xf32>
    %343 = vector.shape_cast %342 : vector<1x1x16xf32> to vector<1x16xf32>
    %344 = vector.shape_cast %343 : vector<1x16xf32> to vector<1x16xf32>
    %345 = vector.broadcast %344 : vector<1x16xf32> to vector<16x16xf32>
    %c0_115 = arith.constant 0 : index
    %c0_116 = arith.constant 0 : index
    %c0_117 = arith.constant 0 : index
    %346 = vector.load %arg8[%c0_115, %c0_116, %c0_117] : memref<2x16x128xf32, #tpu.memory_space<vmem>>, vector<1x16x128xf32>
    %347 = vector.shape_cast %346 : vector<1x16x128xf32> to vector<16x128xf32>
    %348 = arith.truncf %341 : vector<16x128xf32> to vector<16x128xbf16>
    %c0_118 = arith.constant 0 : index
    %c0_119 = arith.constant 0 : index
    %c0_120 = arith.constant 0 : index
    %349 = vector.load %arg6[%c0_118, %c0_119, %c0_120] : memref<2x128x768xbf16, #tpu.memory_space<vmem>>, vector<1x128x768xbf16>
    %350 = vector.shape_cast %349 : vector<1x128x768xbf16> to vector<128x768xbf16>
    %cst_121 = arith.constant dense<0.000000e+00> : vector<16x768xf32>
    %351 = tpu.matmul %348, %350, %cst_121 {dimension_numbers = #tpu.dot_dimension_numbers<[1], [0], [0], [1], [0, 0, 1, 1], [], []>} : vector<16x128xbf16>, vector<128x768xbf16>, vector<16x768xf32> -> vector<16x768xf32>
    %c0_122 = arith.constant 0 : index
    %c0_123 = arith.constant 0 : index
    %c0_124 = arith.constant 0 : index
    %352 = vector.load %arg7[%c0_122, %c0_123, %c0_124] : memref<2x1x768xf32, #tpu.memory_space<vmem>>, vector<1x1x768xf32>
    %353 = vector.shape_cast %352 : vector<1x1x768xf32> to vector<1x768xf32>
    %354 = vector.broadcast %353 : vector<1x768xf32> to vector<16x768xf32>
    %355 = arith.addf %351, %354 : vector<16x768xf32>
    %356 = vector.extract_strided_slice %355 {offsets = [0, 0], sizes = [16, 128], strides = [1, 1]} : vector<16x768xf32> to vector<16x128xf32>
    %357 = arith.truncf %356 : vector<16x128xf32> to vector<16x128xbf16>
    %358 = vector.extract_strided_slice %355 {offsets = [0, 128], sizes = [16, 128], strides = [1, 1]} : vector<16x768xf32> to vector<16x128xf32>
    %359 = arith.truncf %358 : vector<16x128xf32> to vector<16x128xbf16>
    %360 = vector.extract_strided_slice %355 {offsets = [0, 256], sizes = [16, 128], strides = [1, 1]} : vector<16x768xf32> to vector<16x128xf32>
    %361 = arith.truncf %360 : vector<16x128xf32> to vector<16x128xbf16>
    %cst_125 = arith.constant dense<0.000000e+00> : vector<16x16xf32>
    %362 = tpu.matmul %357, %359, %cst_125 {dimension_numbers = #tpu.dot_dimension_numbers<[1], [1], [0], [0], [0, 0, 1, 0], [], []>} : vector<16x128xbf16>, vector<16x128xbf16>, vector<16x16xf32> -> vector<16x16xf32>
    %363 = arith.addf %362, %345 : vector<16x16xf32>
    %cst_126 = arith.constant dense<0xFF800000> : vector<16xf32>
    %364 = vector.multi_reduction <maximumf>, %363, %cst_126 [1] : vector<16x16xf32> to vector<16xf32>
    %365 = vector.shape_cast %364 : vector<16xf32> to vector<16x1xf32>
    %366 = vector.broadcast %365 : vector<16x1xf32> to vector<16x16xf32>
    %367 = arith.subf %363, %366 : vector<16x16xf32>
    %368 = math.exp %367 : vector<16x16xf32>
    %cst_127 = arith.constant dense<0.000000e+00> : vector<16xf32>
    %369 = vector.multi_reduction <add>, %368, %cst_127 [1] : vector<16x16xf32> to vector<16xf32>
    %370 = vector.shape_cast %369 : vector<16xf32> to vector<16x1xf32>
    %371 = tpu.reciprocal %370 {approx = true} : vector<16x1xf32> -> vector<16x1xf32>
    %372 = vector.broadcast %371 : vector<16x1xf32> to vector<16x16xf32>
    %373 = arith.mulf %368, %372 : vector<16x16xf32>
    %374 = arith.truncf %373 : vector<16x16xf32> to vector<16x16xbf16>
    %cst_128 = arith.constant dense<0.000000e+00> : vector<16x128xf32>
    %375 = tpu.matmul %374, %361, %cst_128 {dimension_numbers = #tpu.dot_dimension_numbers<[1], [0], [0], [1], [0, 0, 1, 1], [], []>} : vector<16x16xbf16>, vector<16x128xbf16>, vector<16x128xf32> -> vector<16x128xf32>
    %376 = vector.extract_strided_slice %355 {offsets = [0, 384], sizes = [16, 128], strides = [1, 1]} : vector<16x768xf32> to vector<16x128xf32>
    %377 = arith.truncf %376 : vector<16x128xf32> to vector<16x128xbf16>
    %378 = vector.extract_strided_slice %355 {offsets = [0, 512], sizes = [16, 128], strides = [1, 1]} : vector<16x768xf32> to vector<16x128xf32>
    %379 = arith.truncf %378 : vector<16x128xf32> to vector<16x128xbf16>
    %380 = vector.extract_strided_slice %355 {offsets = [0, 640], sizes = [16, 128], strides = [1, 1]} : vector<16x768xf32> to vector<16x128xf32>
    %381 = arith.truncf %380 : vector<16x128xf32> to vector<16x128xbf16>
    %cst_129 = arith.constant dense<0.000000e+00> : vector<16x16xf32>
    %382 = tpu.matmul %377, %379, %cst_129 {dimension_numbers = #tpu.dot_dimension_numbers<[1], [1], [0], [0], [0, 0, 1, 0], [], []>} : vector<16x128xbf16>, vector<16x128xbf16>, vector<16x16xf32> -> vector<16x16xf32>
    %383 = arith.addf %382, %345 : vector<16x16xf32>
    %cst_130 = arith.constant dense<0xFF800000> : vector<16xf32>
    %384 = vector.multi_reduction <maximumf>, %383, %cst_130 [1] : vector<16x16xf32> to vector<16xf32>
    %385 = vector.shape_cast %384 : vector<16xf32> to vector<16x1xf32>
    %386 = vector.broadcast %385 : vector<16x1xf32> to vector<16x16xf32>
    %387 = arith.subf %383, %386 : vector<16x16xf32>
    %388 = math.exp %387 : vector<16x16xf32>
    %cst_131 = arith.constant dense<0.000000e+00> : vector<16xf32>
    %389 = vector.multi_reduction <add>, %388, %cst_131 [1] : vector<16x16xf32> to vector<16xf32>
    %390 = vector.shape_cast %389 : vector<16xf32> to vector<16x1xf32>
    %391 = tpu.reciprocal %390 {approx = true} : vector<16x1xf32> -> vector<16x1xf32>
    %392 = vector.broadcast %391 : vector<16x1xf32> to vector<16x16xf32>
    %393 = arith.mulf %388, %392 : vector<16x16xf32>
    %394 = arith.truncf %393 : vector<16x16xf32> to vector<16x16xbf16>
    %cst_132 = arith.constant dense<0.000000e+00> : vector<16x128xf32>
    %395 = tpu.matmul %394, %381, %cst_132 {dimension_numbers = #tpu.dot_dimension_numbers<[1], [0], [0], [1], [0, 0, 1, 1], [], []>} : vector<16x16xbf16>, vector<16x128xbf16>, vector<16x128xf32> -> vector<16x128xf32>
    %396 = arith.addf %375, %395 : vector<16x128xf32>
    %397 = vector.extract_strided_slice %347 {offsets = [0, 0], sizes = [1, 128], strides = [1, 1]} : vector<16x128xf32> to vector<1x128xf32>
    %398 = vector.broadcast %397 : vector<1x128xf32> to vector<16x128xf32>
    %399 = arith.addf %396, %398 : vector<16x128xf32>
    %400 = arith.addf %341, %399 : vector<16x128xf32>
    %401 = vector.extract_strided_slice %347 {offsets = [1, 0], sizes = [1, 128], strides = [1, 1]} : vector<16x128xf32> to vector<1x128xf32>
    %402 = vector.extract_strided_slice %347 {offsets = [2, 0], sizes = [1, 128], strides = [1, 1]} : vector<16x128xf32> to vector<1x128xf32>
    %cst_133 = arith.constant dense<0.000000e+00> : vector<16xf32>
    %403 = vector.multi_reduction <add>, %400, %cst_133 [1] : vector<16x128xf32> to vector<16xf32>
    %404 = vector.shape_cast %403 : vector<16xf32> to vector<16x1xf32>
    %405 = arith.mulf %400, %400 : vector<16x128xf32>
    %cst_134 = arith.constant dense<0.000000e+00> : vector<16xf32>
    %406 = vector.multi_reduction <add>, %405, %cst_134 [1] : vector<16x128xf32> to vector<16xf32>
    %407 = vector.shape_cast %406 : vector<16xf32> to vector<16x1xf32>
    %cst_135 = arith.constant 3.125000e-02 : f32
    %408 = vector.broadcast %cst_135 : f32 to vector<16x1xf32>
    %409 = arith.mulf %404, %408 : vector<16x1xf32>
    %cst_136 = arith.constant 3.125000e-02 : f32
    %410 = vector.broadcast %cst_136 : f32 to vector<16x1xf32>
    %411 = arith.mulf %407, %410 : vector<16x1xf32>
    %412 = arith.mulf %409, %409 : vector<16x1xf32>
    %413 = arith.subf %411, %412 : vector<16x1xf32>
    %cst_137 = arith.constant 0.000000e+00 : f32
    %414 = vector.broadcast %cst_137 : f32 to vector<16x1xf32>
    %415 = arith.maximumf %413, %414 : vector<16x1xf32>
    %416 = vector.broadcast %409 : vector<16x1xf32> to vector<16x128xf32>
    %417 = arith.subf %400, %416 : vector<16x128xf32>
    %cst_138 = arith.constant 9.99999996E-13 : f32
    %418 = vector.broadcast %cst_138 : f32 to vector<16x1xf32>
    %419 = arith.addf %415, %418 : vector<16x1xf32>
    %420 = math.rsqrt %419 : vector<16x1xf32>
    %421 = vector.broadcast %420 : vector<16x1xf32> to vector<16x128xf32>
    %422 = arith.mulf %417, %421 : vector<16x128xf32>
    %423 = vector.broadcast %401 : vector<1x128xf32> to vector<16x128xf32>
    %424 = arith.mulf %422, %423 : vector<16x128xf32>
    %425 = vector.broadcast %402 : vector<1x128xf32> to vector<16x128xf32>
    %426 = arith.addf %424, %425 : vector<16x128xf32>
    %c0_139 = arith.constant 0 : index
    %c0_140 = arith.constant 0 : index
    %c0_141 = arith.constant 0 : index
    %427 = vector.load %arg9[%c0_139, %c0_140, %c0_141] : memref<2x256x128xbf16, #tpu.memory_space<vmem>>, vector<1x256x128xbf16>
    %428 = vector.shape_cast %427 : vector<1x256x128xbf16> to vector<256x128xbf16>
    %429 = arith.truncf %426 : vector<16x128xf32> to vector<16x128xbf16>
    %430 = vector.extract_strided_slice %428 {offsets = [0, 0], sizes = [128, 128], strides = [1, 1]} : vector<256x128xbf16> to vector<128x128xbf16>
    %cst_142 = arith.constant dense<0.000000e+00> : vector<16x128xf32>
    %431 = tpu.matmul %429, %430, %cst_142 {dimension_numbers = #tpu.dot_dimension_numbers<[1], [0], [0], [1], [0, 0, 1, 1], [], []>} : vector<16x128xbf16>, vector<128x128xbf16>, vector<16x128xf32> -> vector<16x128xf32>
    %432 = vector.extract_strided_slice %347 {offsets = [3, 0], sizes = [1, 128], strides = [1, 1]} : vector<16x128xf32> to vector<1x128xf32>
    %433 = vector.broadcast %432 : vector<1x128xf32> to vector<16x128xf32>
    %434 = arith.addf %431, %433 : vector<16x128xf32>
    %cst_143 = arith.constant 5.000000e-01 : f32
    %435 = vector.broadcast %cst_143 : f32 to vector<16x128xf32>
    %436 = arith.mulf %435, %434 : vector<16x128xf32>
    %cst_144 = arith.constant 4.471500e-02 : f32
    %437 = vector.broadcast %cst_144 : f32 to vector<16x128xf32>
    %438 = arith.mulf %437, %434 : vector<16x128xf32>
    %439 = arith.mulf %438, %434 : vector<16x128xf32>
    %440 = arith.mulf %439, %434 : vector<16x128xf32>
    %441 = arith.addf %434, %440 : vector<16x128xf32>
    %cst_145 = arith.constant 0.797884583 : f32
    %442 = vector.broadcast %cst_145 : f32 to vector<16x128xf32>
    %443 = arith.mulf %442, %441 : vector<16x128xf32>
    %444 = math.tanh %443 : vector<16x128xf32>
    %cst_146 = arith.constant 1.000000e+00 : f32
    %445 = vector.broadcast %cst_146 : f32 to vector<16x128xf32>
    %446 = arith.addf %445, %444 : vector<16x128xf32>
    %447 = arith.mulf %436, %446 : vector<16x128xf32>
    %448 = arith.truncf %447 : vector<16x128xf32> to vector<16x128xbf16>
    %449 = vector.extract_strided_slice %428 {offsets = [128, 0], sizes = [128, 128], strides = [1, 1]} : vector<256x128xbf16> to vector<128x128xbf16>
    %cst_147 = arith.constant dense<0.000000e+00> : vector<16x128xf32>
    %450 = tpu.matmul %448, %449, %cst_147 {dimension_numbers = #tpu.dot_dimension_numbers<[1], [0], [0], [1], [0, 0, 1, 1], [], []>} : vector<16x128xbf16>, vector<128x128xbf16>, vector<16x128xf32> -> vector<16x128xf32>
    %451 = vector.extract_strided_slice %347 {offsets = [4, 0], sizes = [1, 128], strides = [1, 1]} : vector<16x128xf32> to vector<1x128xf32>
    %452 = vector.broadcast %451 : vector<1x128xf32> to vector<16x128xf32>
    %453 = arith.addf %450, %452 : vector<16x128xf32>
    %454 = arith.addf %426, %453 : vector<16x128xf32>
    %455 = vector.extract_strided_slice %347 {offsets = [5, 0], sizes = [1, 128], strides = [1, 1]} : vector<16x128xf32> to vector<1x128xf32>
    %456 = vector.extract_strided_slice %347 {offsets = [6, 0], sizes = [1, 128], strides = [1, 1]} : vector<16x128xf32> to vector<1x128xf32>
    %cst_148 = arith.constant dense<0.000000e+00> : vector<16xf32>
    %457 = vector.multi_reduction <add>, %454, %cst_148 [1] : vector<16x128xf32> to vector<16xf32>
    %458 = vector.shape_cast %457 : vector<16xf32> to vector<16x1xf32>
    %459 = arith.mulf %454, %454 : vector<16x128xf32>
    %cst_149 = arith.constant dense<0.000000e+00> : vector<16xf32>
    %460 = vector.multi_reduction <add>, %459, %cst_149 [1] : vector<16x128xf32> to vector<16xf32>
    %461 = vector.shape_cast %460 : vector<16xf32> to vector<16x1xf32>
    %cst_150 = arith.constant 3.125000e-02 : f32
    %462 = vector.broadcast %cst_150 : f32 to vector<16x1xf32>
    %463 = arith.mulf %458, %462 : vector<16x1xf32>
    %cst_151 = arith.constant 3.125000e-02 : f32
    %464 = vector.broadcast %cst_151 : f32 to vector<16x1xf32>
    %465 = arith.mulf %461, %464 : vector<16x1xf32>
    %466 = arith.mulf %463, %463 : vector<16x1xf32>
    %467 = arith.subf %465, %466 : vector<16x1xf32>
    %cst_152 = arith.constant 0.000000e+00 : f32
    %468 = vector.broadcast %cst_152 : f32 to vector<16x1xf32>
    %469 = arith.maximumf %467, %468 : vector<16x1xf32>
    %470 = vector.broadcast %463 : vector<16x1xf32> to vector<16x128xf32>
    %471 = arith.subf %454, %470 : vector<16x128xf32>
    %cst_153 = arith.constant 9.99999996E-13 : f32
    %472 = vector.broadcast %cst_153 : f32 to vector<16x1xf32>
    %473 = arith.addf %469, %472 : vector<16x1xf32>
    %474 = math.rsqrt %473 : vector<16x1xf32>
    %475 = vector.broadcast %474 : vector<16x1xf32> to vector<16x128xf32>
    %476 = arith.mulf %471, %475 : vector<16x128xf32>
    %477 = vector.broadcast %455 : vector<1x128xf32> to vector<16x128xf32>
    %478 = arith.mulf %476, %477 : vector<16x128xf32>
    %479 = vector.broadcast %456 : vector<1x128xf32> to vector<16x128xf32>
    %480 = arith.addf %478, %479 : vector<16x128xf32>
    %c1_154 = arith.constant 1 : index
    %c0_155 = arith.constant 0 : index
    %c0_156 = arith.constant 0 : index
    %481 = vector.load %arg8[%c1_154, %c0_155, %c0_156] : memref<2x16x128xf32, #tpu.memory_space<vmem>>, vector<1x16x128xf32>
    %482 = vector.shape_cast %481 : vector<1x16x128xf32> to vector<16x128xf32>
    %483 = arith.truncf %480 : vector<16x128xf32> to vector<16x128xbf16>
    %c1_157 = arith.constant 1 : index
    %c0_158 = arith.constant 0 : index
    %c0_159 = arith.constant 0 : index
    %484 = vector.load %arg6[%c1_157, %c0_158, %c0_159] : memref<2x128x768xbf16, #tpu.memory_space<vmem>>, vector<1x128x768xbf16>
    %485 = vector.shape_cast %484 : vector<1x128x768xbf16> to vector<128x768xbf16>
    %cst_160 = arith.constant dense<0.000000e+00> : vector<16x768xf32>
    %486 = tpu.matmul %483, %485, %cst_160 {dimension_numbers = #tpu.dot_dimension_numbers<[1], [0], [0], [1], [0, 0, 1, 1], [], []>} : vector<16x128xbf16>, vector<128x768xbf16>, vector<16x768xf32> -> vector<16x768xf32>
    %c1_161 = arith.constant 1 : index
    %c0_162 = arith.constant 0 : index
    %c0_163 = arith.constant 0 : index
    %487 = vector.load %arg7[%c1_161, %c0_162, %c0_163] : memref<2x1x768xf32, #tpu.memory_space<vmem>>, vector<1x1x768xf32>
    %488 = vector.shape_cast %487 : vector<1x1x768xf32> to vector<1x768xf32>
    %489 = vector.broadcast %488 : vector<1x768xf32> to vector<16x768xf32>
    %490 = arith.addf %486, %489 : vector<16x768xf32>
    %491 = vector.extract_strided_slice %490 {offsets = [0, 0], sizes = [16, 128], strides = [1, 1]} : vector<16x768xf32> to vector<16x128xf32>
    %492 = arith.truncf %491 : vector<16x128xf32> to vector<16x128xbf16>
    %493 = vector.extract_strided_slice %490 {offsets = [0, 128], sizes = [16, 128], strides = [1, 1]} : vector<16x768xf32> to vector<16x128xf32>
    %494 = arith.truncf %493 : vector<16x128xf32> to vector<16x128xbf16>
    %495 = vector.extract_strided_slice %490 {offsets = [0, 256], sizes = [16, 128], strides = [1, 1]} : vector<16x768xf32> to vector<16x128xf32>
    %496 = arith.truncf %495 : vector<16x128xf32> to vector<16x128xbf16>
    %cst_164 = arith.constant dense<0.000000e+00> : vector<16x16xf32>
    %497 = tpu.matmul %492, %494, %cst_164 {dimension_numbers = #tpu.dot_dimension_numbers<[1], [1], [0], [0], [0, 0, 1, 0], [], []>} : vector<16x128xbf16>, vector<16x128xbf16>, vector<16x16xf32> -> vector<16x16xf32>
    %498 = arith.addf %497, %345 : vector<16x16xf32>
    %cst_165 = arith.constant dense<0xFF800000> : vector<16xf32>
    %499 = vector.multi_reduction <maximumf>, %498, %cst_165 [1] : vector<16x16xf32> to vector<16xf32>
    %500 = vector.shape_cast %499 : vector<16xf32> to vector<16x1xf32>
    %501 = vector.broadcast %500 : vector<16x1xf32> to vector<16x16xf32>
    %502 = arith.subf %498, %501 : vector<16x16xf32>
    %503 = math.exp %502 : vector<16x16xf32>
    %cst_166 = arith.constant dense<0.000000e+00> : vector<16xf32>
    %504 = vector.multi_reduction <add>, %503, %cst_166 [1] : vector<16x16xf32> to vector<16xf32>
    %505 = vector.shape_cast %504 : vector<16xf32> to vector<16x1xf32>
    %506 = tpu.reciprocal %505 {approx = true} : vector<16x1xf32> -> vector<16x1xf32>
    %507 = vector.broadcast %506 : vector<16x1xf32> to vector<16x16xf32>
    %508 = arith.mulf %503, %507 : vector<16x16xf32>
    %509 = arith.truncf %508 : vector<16x16xf32> to vector<16x16xbf16>
    %cst_167 = arith.constant dense<0.000000e+00> : vector<16x128xf32>
    %510 = tpu.matmul %509, %496, %cst_167 {dimension_numbers = #tpu.dot_dimension_numbers<[1], [0], [0], [1], [0, 0, 1, 1], [], []>} : vector<16x16xbf16>, vector<16x128xbf16>, vector<16x128xf32> -> vector<16x128xf32>
    %511 = vector.extract_strided_slice %490 {offsets = [0, 384], sizes = [16, 128], strides = [1, 1]} : vector<16x768xf32> to vector<16x128xf32>
    %512 = arith.truncf %511 : vector<16x128xf32> to vector<16x128xbf16>
    %513 = vector.extract_strided_slice %490 {offsets = [0, 512], sizes = [16, 128], strides = [1, 1]} : vector<16x768xf32> to vector<16x128xf32>
    %514 = arith.truncf %513 : vector<16x128xf32> to vector<16x128xbf16>
    %515 = vector.extract_strided_slice %490 {offsets = [0, 640], sizes = [16, 128], strides = [1, 1]} : vector<16x768xf32> to vector<16x128xf32>
    %516 = arith.truncf %515 : vector<16x128xf32> to vector<16x128xbf16>
    %cst_168 = arith.constant dense<0.000000e+00> : vector<16x16xf32>
    %517 = tpu.matmul %512, %514, %cst_168 {dimension_numbers = #tpu.dot_dimension_numbers<[1], [1], [0], [0], [0, 0, 1, 0], [], []>} : vector<16x128xbf16>, vector<16x128xbf16>, vector<16x16xf32> -> vector<16x16xf32>
    %518 = arith.addf %517, %345 : vector<16x16xf32>
    %cst_169 = arith.constant dense<0xFF800000> : vector<16xf32>
    %519 = vector.multi_reduction <maximumf>, %518, %cst_169 [1] : vector<16x16xf32> to vector<16xf32>
    %520 = vector.shape_cast %519 : vector<16xf32> to vector<16x1xf32>
    %521 = vector.broadcast %520 : vector<16x1xf32> to vector<16x16xf32>
    %522 = arith.subf %518, %521 : vector<16x16xf32>
    %523 = math.exp %522 : vector<16x16xf32>
    %cst_170 = arith.constant dense<0.000000e+00> : vector<16xf32>
    %524 = vector.multi_reduction <add>, %523, %cst_170 [1] : vector<16x16xf32> to vector<16xf32>
    %525 = vector.shape_cast %524 : vector<16xf32> to vector<16x1xf32>
    %526 = tpu.reciprocal %525 {approx = true} : vector<16x1xf32> -> vector<16x1xf32>
    %527 = vector.broadcast %526 : vector<16x1xf32> to vector<16x16xf32>
    %528 = arith.mulf %523, %527 : vector<16x16xf32>
    %529 = arith.truncf %528 : vector<16x16xf32> to vector<16x16xbf16>
    %cst_171 = arith.constant dense<0.000000e+00> : vector<16x128xf32>
    %530 = tpu.matmul %529, %516, %cst_171 {dimension_numbers = #tpu.dot_dimension_numbers<[1], [0], [0], [1], [0, 0, 1, 1], [], []>} : vector<16x16xbf16>, vector<16x128xbf16>, vector<16x128xf32> -> vector<16x128xf32>
    %531 = arith.addf %510, %530 : vector<16x128xf32>
    %532 = vector.extract_strided_slice %482 {offsets = [0, 0], sizes = [1, 128], strides = [1, 1]} : vector<16x128xf32> to vector<1x128xf32>
    %533 = vector.broadcast %532 : vector<1x128xf32> to vector<16x128xf32>
    %534 = arith.addf %531, %533 : vector<16x128xf32>
    %535 = arith.addf %480, %534 : vector<16x128xf32>
    %536 = vector.extract_strided_slice %482 {offsets = [1, 0], sizes = [1, 128], strides = [1, 1]} : vector<16x128xf32> to vector<1x128xf32>
    %537 = vector.extract_strided_slice %482 {offsets = [2, 0], sizes = [1, 128], strides = [1, 1]} : vector<16x128xf32> to vector<1x128xf32>
    %cst_172 = arith.constant dense<0.000000e+00> : vector<16xf32>
    %538 = vector.multi_reduction <add>, %535, %cst_172 [1] : vector<16x128xf32> to vector<16xf32>
    %539 = vector.shape_cast %538 : vector<16xf32> to vector<16x1xf32>
    %540 = arith.mulf %535, %535 : vector<16x128xf32>
    %cst_173 = arith.constant dense<0.000000e+00> : vector<16xf32>
    %541 = vector.multi_reduction <add>, %540, %cst_173 [1] : vector<16x128xf32> to vector<16xf32>
    %542 = vector.shape_cast %541 : vector<16xf32> to vector<16x1xf32>
    %cst_174 = arith.constant 3.125000e-02 : f32
    %543 = vector.broadcast %cst_174 : f32 to vector<16x1xf32>
    %544 = arith.mulf %539, %543 : vector<16x1xf32>
    %cst_175 = arith.constant 3.125000e-02 : f32
    %545 = vector.broadcast %cst_175 : f32 to vector<16x1xf32>
    %546 = arith.mulf %542, %545 : vector<16x1xf32>
    %547 = arith.mulf %544, %544 : vector<16x1xf32>
    %548 = arith.subf %546, %547 : vector<16x1xf32>
    %cst_176 = arith.constant 0.000000e+00 : f32
    %549 = vector.broadcast %cst_176 : f32 to vector<16x1xf32>
    %550 = arith.maximumf %548, %549 : vector<16x1xf32>
    %551 = vector.broadcast %544 : vector<16x1xf32> to vector<16x128xf32>
    %552 = arith.subf %535, %551 : vector<16x128xf32>
    %cst_177 = arith.constant 9.99999996E-13 : f32
    %553 = vector.broadcast %cst_177 : f32 to vector<16x1xf32>
    %554 = arith.addf %550, %553 : vector<16x1xf32>
    %555 = math.rsqrt %554 : vector<16x1xf32>
    %556 = vector.broadcast %555 : vector<16x1xf32> to vector<16x128xf32>
    %557 = arith.mulf %552, %556 : vector<16x128xf32>
    %558 = vector.broadcast %536 : vector<1x128xf32> to vector<16x128xf32>
    %559 = arith.mulf %557, %558 : vector<16x128xf32>
    %560 = vector.broadcast %537 : vector<1x128xf32> to vector<16x128xf32>
    %561 = arith.addf %559, %560 : vector<16x128xf32>
    %c1_178 = arith.constant 1 : index
    %c0_179 = arith.constant 0 : index
    %c0_180 = arith.constant 0 : index
    %562 = vector.load %arg9[%c1_178, %c0_179, %c0_180] : memref<2x256x128xbf16, #tpu.memory_space<vmem>>, vector<1x256x128xbf16>
    %563 = vector.shape_cast %562 : vector<1x256x128xbf16> to vector<256x128xbf16>
    %564 = arith.truncf %561 : vector<16x128xf32> to vector<16x128xbf16>
    %565 = vector.extract_strided_slice %563 {offsets = [0, 0], sizes = [128, 128], strides = [1, 1]} : vector<256x128xbf16> to vector<128x128xbf16>
    %cst_181 = arith.constant dense<0.000000e+00> : vector<16x128xf32>
    %566 = tpu.matmul %564, %565, %cst_181 {dimension_numbers = #tpu.dot_dimension_numbers<[1], [0], [0], [1], [0, 0, 1, 1], [], []>} : vector<16x128xbf16>, vector<128x128xbf16>, vector<16x128xf32> -> vector<16x128xf32>
    %567 = vector.extract_strided_slice %482 {offsets = [3, 0], sizes = [1, 128], strides = [1, 1]} : vector<16x128xf32> to vector<1x128xf32>
    %568 = vector.broadcast %567 : vector<1x128xf32> to vector<16x128xf32>
    %569 = arith.addf %566, %568 : vector<16x128xf32>
    %cst_182 = arith.constant 5.000000e-01 : f32
    %570 = vector.broadcast %cst_182 : f32 to vector<16x128xf32>
    %571 = arith.mulf %570, %569 : vector<16x128xf32>
    %cst_183 = arith.constant 4.471500e-02 : f32
    %572 = vector.broadcast %cst_183 : f32 to vector<16x128xf32>
    %573 = arith.mulf %572, %569 : vector<16x128xf32>
    %574 = arith.mulf %573, %569 : vector<16x128xf32>
    %575 = arith.mulf %574, %569 : vector<16x128xf32>
    %576 = arith.addf %569, %575 : vector<16x128xf32>
    %cst_184 = arith.constant 0.797884583 : f32
    %577 = vector.broadcast %cst_184 : f32 to vector<16x128xf32>
    %578 = arith.mulf %577, %576 : vector<16x128xf32>
    %579 = math.tanh %578 : vector<16x128xf32>
    %cst_185 = arith.constant 1.000000e+00 : f32
    %580 = vector.broadcast %cst_185 : f32 to vector<16x128xf32>
    %581 = arith.addf %580, %579 : vector<16x128xf32>
    %582 = arith.mulf %571, %581 : vector<16x128xf32>
    %583 = arith.truncf %582 : vector<16x128xf32> to vector<16x128xbf16>
    %584 = vector.extract_strided_slice %563 {offsets = [128, 0], sizes = [128, 128], strides = [1, 1]} : vector<256x128xbf16> to vector<128x128xbf16>
    %cst_186 = arith.constant dense<0.000000e+00> : vector<16x128xf32>
    %585 = tpu.matmul %583, %584, %cst_186 {dimension_numbers = #tpu.dot_dimension_numbers<[1], [0], [0], [1], [0, 0, 1, 1], [], []>} : vector<16x128xbf16>, vector<128x128xbf16>, vector<16x128xf32> -> vector<16x128xf32>
    %586 = vector.extract_strided_slice %482 {offsets = [4, 0], sizes = [1, 128], strides = [1, 1]} : vector<16x128xf32> to vector<1x128xf32>
    %587 = vector.broadcast %586 : vector<1x128xf32> to vector<16x128xf32>
    %588 = arith.addf %585, %587 : vector<16x128xf32>
    %589 = arith.addf %561, %588 : vector<16x128xf32>
    %590 = vector.extract_strided_slice %482 {offsets = [5, 0], sizes = [1, 128], strides = [1, 1]} : vector<16x128xf32> to vector<1x128xf32>
    %591 = vector.extract_strided_slice %482 {offsets = [6, 0], sizes = [1, 128], strides = [1, 1]} : vector<16x128xf32> to vector<1x128xf32>
    %cst_187 = arith.constant dense<0.000000e+00> : vector<16xf32>
    %592 = vector.multi_reduction <add>, %589, %cst_187 [1] : vector<16x128xf32> to vector<16xf32>
    %593 = vector.shape_cast %592 : vector<16xf32> to vector<16x1xf32>
    %594 = arith.mulf %589, %589 : vector<16x128xf32>
    %cst_188 = arith.constant dense<0.000000e+00> : vector<16xf32>
    %595 = vector.multi_reduction <add>, %594, %cst_188 [1] : vector<16x128xf32> to vector<16xf32>
    %596 = vector.shape_cast %595 : vector<16xf32> to vector<16x1xf32>
    %cst_189 = arith.constant 3.125000e-02 : f32
    %597 = vector.broadcast %cst_189 : f32 to vector<16x1xf32>
    %598 = arith.mulf %593, %597 : vector<16x1xf32>
    %cst_190 = arith.constant 3.125000e-02 : f32
    %599 = vector.broadcast %cst_190 : f32 to vector<16x1xf32>
    %600 = arith.mulf %596, %599 : vector<16x1xf32>
    %601 = arith.mulf %598, %598 : vector<16x1xf32>
    %602 = arith.subf %600, %601 : vector<16x1xf32>
    %cst_191 = arith.constant 0.000000e+00 : f32
    %603 = vector.broadcast %cst_191 : f32 to vector<16x1xf32>
    %604 = arith.maximumf %602, %603 : vector<16x1xf32>
    %605 = vector.broadcast %598 : vector<16x1xf32> to vector<16x128xf32>
    %606 = arith.subf %589, %605 : vector<16x128xf32>
    %cst_192 = arith.constant 9.99999996E-13 : f32
    %607 = vector.broadcast %cst_192 : f32 to vector<16x1xf32>
    %608 = arith.addf %604, %607 : vector<16x1xf32>
    %609 = math.rsqrt %608 : vector<16x1xf32>
    %610 = vector.broadcast %609 : vector<16x1xf32> to vector<16x128xf32>
    %611 = arith.mulf %606, %610 : vector<16x128xf32>
    %612 = vector.broadcast %590 : vector<1x128xf32> to vector<16x128xf32>
    %613 = arith.mulf %611, %612 : vector<16x128xf32>
    %614 = vector.broadcast %591 : vector<1x128xf32> to vector<16x128xf32>
    %615 = arith.addf %613, %614 : vector<16x128xf32>
    %c1_193 = arith.constant 1 : index
    %c0_194 = arith.constant 0 : index
    %c0_195 = arith.constant 0 : index
    %616 = vector.load %arg3[%c1_193, %c0_194, %c0_195] : memref<2x8x16xf32, #tpu.memory_space<vmem>>, vector<1x8x16xf32>
    %617 = vector.shape_cast %616 : vector<1x8x16xf32> to vector<8x16xf32>
    %cst_196 = arith.constant dense<0.000000e+00> : vector<8x128xf32>
    %618 = tpu.matmul %617, %615, %cst_196 {dimension_numbers = #tpu.dot_dimension_numbers<[1], [0], [0], [1], [0, 0, 1, 1], [], []>} : vector<8x16xf32>, vector<16x128xf32>, vector<8x128xf32> -> vector<8x128xf32>
    %c1_197 = arith.constant 1 : index
    %c0_198 = arith.constant 0 : index
    %c0_199 = arith.constant 0 : index
    %619 = vector.load %arg10[%c1_197, %c0_198, %c0_199] : memref<2x8x128xf32, #tpu.memory_space<vmem>>, vector<1x8x128xf32>
    %620 = vector.shape_cast %619 : vector<1x8x128xf32> to vector<8x128xf32>
    %621 = vector.shape_cast %618 : vector<8x128xf32> to vector<1x8x128xf32>
    tpu.vector_store %arg10[%c1_197, %c0_198, %c0_199], %621 {strides = array<i32>} : memref<2x8x128xf32, #tpu.memory_space<vmem>>, vector<1x8x128xf32>,
    return
  }
  func.func @transform_0(%arg0: i32) -> (i32, i32, i32) {
    %c0_i32 = arith.constant 0 : i32
    %c0_i32_0 = arith.constant 0 : i32
    %c0_i32_1 = arith.constant 0 : i32
    return %arg0, %c0_i32, %c0_i32_0 : i32, i32, i32
  }
  func.func @transform_1(%arg0: i32) -> (i32, i32, i32) {
    %c0_i32 = arith.constant 0 : i32
    %c0_i32_0 = arith.constant 0 : i32
    %c0_i32_1 = arith.constant 0 : i32
    return %arg0, %c0_i32, %c0_i32_0 : i32, i32, i32
  }
  func.func @transform_2(%arg0: i32) -> (i32, i32, i32) {
    %c0_i32 = arith.constant 0 : i32
    %c0_i32_0 = arith.constant 0 : i32
    %c0_i32_1 = arith.constant 0 : i32
    return %arg0, %c0_i32, %c0_i32_0 : i32, i32, i32
  }
  func.func @transform_3(%arg0: i32) -> (i32, i32) {
    %c0_i32 = arith.constant 0 : i32
    %c0_i32_0 = arith.constant 0 : i32
    %c0_i32_1 = arith.constant 0 : i32
    return %c0_i32, %c0_i32_0 : i32, i32
  }
  func.func @transform_4(%arg0: i32) -> (i32, i32) {
    %c0_i32 = arith.constant 0 : i32
    %c0_i32_0 = arith.constant 0 : i32
    %c0_i32_1 = arith.constant 0 : i32
    return %c0_i32, %c0_i32_0 : i32, i32
  }
  func.func @transform_5(%arg0: i32) -> (i32, i32, i32) {
    %c0_i32 = arith.constant 0 : i32
    %c0_i32_0 = arith.constant 0 : i32
    %c0_i32_1 = arith.constant 0 : i32
    %c0_i32_2 = arith.constant 0 : i32
    return %c0_i32, %c0_i32_0, %c0_i32_1 : i32, i32, i32
  }
  func.func @transform_6(%arg0: i32) -> (i32, i32, i32) {
    %c0_i32 = arith.constant 0 : i32
    %c0_i32_0 = arith.constant 0 : i32
    %c0_i32_1 = arith.constant 0 : i32
    %c0_i32_2 = arith.constant 0 : i32
    return %c0_i32, %c0_i32_0, %c0_i32_1 : i32, i32, i32
  }
  func.func @transform_7(%arg0: i32) -> (i32, i32, i32) {
    %c0_i32 = arith.constant 0 : i32
    %c0_i32_0 = arith.constant 0 : i32
    %c0_i32_1 = arith.constant 0 : i32
    %c0_i32_2 = arith.constant 0 : i32
    return %c0_i32, %c0_i32_0, %c0_i32_1 : i32, i32, i32
  }
  func.func @transform_8(%arg0: i32) -> (i32, i32, i32) {
    %c0_i32 = arith.constant 0 : i32
    %c0_i32_0 = arith.constant 0 : i32
    %c0_i32_1 = arith.constant 0 : i32
    %c0_i32_2 = arith.constant 0 : i32
    return %c0_i32, %c0_i32_0, %c0_i32_1 : i32, i32, i32
  }
  func.func @transform_9(%arg0: i32) -> (i32, i32, i32) {
    %c0_i32 = arith.constant 0 : i32
    %c0_i32_0 = arith.constant 0 : i32
    %c0_i32_1 = arith.constant 0 : i32
    return %arg0, %c0_i32, %c0_i32_0 : i32, i32, i32
  }
}

</mosaic_0001>

<bundles_post_ra>
// kernel: tpu_custom_call.1
= control target key start
LH: loop header
LB: loop body
LE: loop exit
PB: predicated region body
PF: predicated region fallthrough
CT: control target
= control target key end

     0   :  { %14 = vsyncpa [#allocation3], 0  ;;  %s6725_s0 = inlined_call_operand.hbm [shape: f32[2,16,64], index: 0, kind: input, shape index: {}]   ;;  %s6726_s1 = inlined_call_operand.vmem [shape: f32[2,1,16], index: 1, kind: input, shape index: {}]   ;;  %s6727_s2 = inlined_call_operand.hbm [shape: f32[2,8,16], index: 2, kind: input, shape index: {}]   ;;  %s6728_s3 = inlined_call_operand.hbm [shape: f32[64,128], index: 3, kind: input, shape index: {}]   ;;  %s6729_s4 = inlined_call_operand.hbm [shape: f32[16,128], index: 4, kind: input, shape index: {}]   ;;  %s6730_s5 = inlined_call_operand.hbm [shape: bf16[2,128,768], index: 5, kind: input, shape index: {}]   ;;  %s6731_s6 = inlined_call_operand.vmem [shape: f32[2,1,768], index: 6, kind: input, shape index: {}]   ;;  %s6732_s7 = inlined_call_operand.hbm [shape: f32[2,16,128], index: 7, kind: input, shape index: {}]   ;;  %s6733_s8 = inlined_call_operand.hbm [shape: bf16[2,256,128], index: 8, kind: input, shape index: {}]   ;;  %s6734_s9 = inlined_call_operand.hbm [shape: f32[2,8,128], index: 9, kind: output, shape index: {}]  }
   0x1   :  { %15 = vsyncpa [#allocation6], 0 }
   0x2   :  { %16 = vsyncpa [#allocation9], 0 }
   0x3   :  { %17 = vsyncpa [#allocation12], 0 }
   0x4   :  { %18 = vsyncpa [#allocation4], 0  ;;  %s6005_s30 = smov [#allocation5]   ;;  %s6006_s11 = smov [#allocation8]  }
   0x5   :  { %s38_s10 = sshll.u32 %s6005_s30, 4  ;;  %s62_s12 = sshll.u32 %s6006_s11, 4  ;;  %s39_s10 = int_to_ptr.vmem [resolvable:$true] %s38_s10  ;;  %s6073_s12 = int_to_ptr.vmem [resolvable:$true] %s62_s12 }
   0x6   :  { %s5819_s15 = scalar_lea.hbm %s6727_s2, 256 }
   0x7   :  { %p5820_p0 = scmp.ne.s32.totalorder %s6727_s2, %s5819_s15  ;;  %p5823_p1 = scmp.lt.u32.totalorder %s5819_s15, %s6727_s2 }
   0x9   :  { %p5825_p2 = pnand %p5823_p1, %p5820_p0 }
   0xb   :  { %5828 = shalt.err (!%p5825_p2)
}
   0xc   :  { %s5829_s20 = scalar_lea.vmem %s39_s10, 256  ;;  %p5834_p4 = scmp.lt.s32.totalorder %s39_s10, %s39_s10 }
   0xd   :  { %p5830_p3 = scmp.ne.s32.totalorder %s39_s10, %s5829_s20  ;;  %p5835_p5 = scmp.lt.s32.totalorder %s5829_s20, %s5829_s20 }
   0xf   :  { %p5836_p6 = por %p5835_p5, %p5834_p4 }
  0x11   :  { %p5837_p7 = pnand %p5836_p6, %p5830_p3 }
  0x13   :  { %5840 = shalt.err (!%p5837_p7)
}
  0x14   :  { %s6007_s21 = smov 128   ;;  %s6008_s22 = smov 8  }
  0x15   :  { %44 = dma.hbm_to_vmem [thread:$0]  %s6727_s2, 256, %s39_s10, [#allocation6], %s6007_s21, %s6007_s21, %s6008_s22  }
  0x16   :  { %s5841_s27 = scalar_lea.hbm %s6729_s4, 256 }
  0x17   :  { %p5842_p8 = scmp.ne.s32.totalorder %s6729_s4, %s5841_s27  ;;  %p5845_p9 = scmp.lt.u32.totalorder %s5841_s27, %s6729_s4 }
  0x19   :  { %p5847_p10 = pnand %p5845_p9, %p5842_p8 }
  0x1b   :  { %5850 = shalt.err (!%p5847_p10)
}
  0x1c   :  { %s5851_s13 = scalar_lea.vmem %s6073_s12, 256  ;;  %p5856_p12 = scmp.lt.s32.totalorder %s6073_s12, %s6073_s12 }
  0x1d   :  { %p5852_p11 = scmp.ne.s32.totalorder %s6073_s12, %s5851_s13  ;;  %p5857_p13 = scmp.lt.s32.totalorder %s5851_s13, %s5851_s13 }
  0x1f   :  { %p5858_p0 = por %p5857_p13, %p5856_p12 }
  0x21   :  { %p5859_p1 = pnand %p5858_p0, %p5852_p11 }
  0x23   :  { %5862 = shalt.err (!%p5859_p1)
}
  0x24   :  { %68 = dma.hbm_to_vmem [thread:$0]  %s6729_s4, 256, %s6073_s12, [#allocation9], %s6007_s21, %s6007_s21, %s6008_s22  }
  0x25   :  { %s6009_s14 = smov [#allocation11]   ;;  %s6010_s16 = smov [#allocation2]  }
  0x26   :  { %s88_s15 = sshll.u32 %s6009_s14, 4  ;;  %s24_s17 = sshll.u32 %s6010_s16, 4  ;;  %s89_s15 = int_to_ptr.vmem [resolvable:$true] %s88_s15  ;;  %s6110_s17 = int_to_ptr.vmem [resolvable:$true] %s24_s17 }
  0x27   :  { %s5863_s20 = scalar_lea.hbm %s6732_s7, 512 }
  0x28   :  { %p5864_p2 = scmp.ne.s32.totalorder %s6732_s7, %s5863_s20  ;;  %p5867_p3 = scmp.lt.u32.totalorder %s5863_s20, %s6732_s7 }
  0x2a   :  { %p5869_p4 = pnand %p5867_p3, %p5864_p2 }
  0x2c   :  { %5872 = shalt.err (!%p5869_p4)
}
  0x2d   :  { %s5873_s4 = scalar_lea.vmem %s89_s15, 512  ;;  %p5878_p6 = scmp.lt.s32.totalorder %s89_s15, %s89_s15 }
  0x2e   :  { %p5874_p5 = scmp.ne.s32.totalorder %s89_s15, %s5873_s4  ;;  %p5879_p7 = scmp.lt.s32.totalorder %s5873_s4, %s5873_s4 }
  0x30   :  { %p5880_p8 = por %p5879_p7, %p5878_p6 }
  0x32   :  { %p5881_p9 = pnand %p5880_p8, %p5874_p5 }
  0x34   :  { %5884 = shalt.err (!%p5881_p9)
}
  0x35   :  { %94 = dma.hbm_to_vmem [thread:$0]  %s6732_s7, 512, %s89_s15, [#allocation12], %s6007_s21, %s6007_s21, %s6008_s22  }
  0x36   :  { %s5885_s30 = scalar_lea.hbm %s6725_s0, 512 }
  0x37   :  { %p5886_p10 = scmp.ne.s32.totalorder %s6725_s0, %s5885_s30  ;;  %p5889_p11 = scmp.lt.u32.totalorder %s5885_s30, %s6725_s0 }
  0x39   :  { %p5891_p12 = pnand %p5889_p11, %p5886_p10 }
  0x3b   :  { %5894 = shalt.err (!%p5891_p12)
}
  0x3c   :  { %s5895_s14 = scalar_lea.vmem %s6110_s17, 512  ;;  %p5900_p0 = scmp.lt.s32.totalorder %s6110_s17, %s6110_s17 }
  0x3d   :  { %p5896_p13 = scmp.ne.s32.totalorder %s6110_s17, %s5895_s14  ;;  %p5901_p1 = scmp.lt.s32.totalorder %s5895_s14, %s5895_s14 }
  0x3f   :  { %p5902_p2 = por %p5901_p1, %p5900_p0 }
  0x41   :  { %p5903_p3 = pnand %p5902_p2, %p5896_p13 }
  0x43   :  { %5906 = shalt.err (!%p5903_p3)
}
  0x44   :  { %30 = dma.hbm_to_vmem [thread:$0]  %s6725_s0, 512, %s6110_s17, [#allocation3], %s6007_s21, %s6007_s21, %s6008_s22  }
  0x45   :  { %s6011_s16 = smov [#allocation7]   ;;  %s6012_s19 = smov [#allocation10]  }
  0x46   :  { %s50_s18 = sshll.u32 %s6011_s16, 4  ;;  %s74_s20 = sshll.u32 %s6012_s19, 4  ;;  %s51_s18 = int_to_ptr.vmem [resolvable:$true] %s50_s18  ;;  %s6147_s20 = int_to_ptr.vmem [resolvable:$true] %s74_s20 }
  0x47   :  { %s5907_s25 = scalar_lea.hbm %s6728_s3, 1024 }
  0x48   :  { %p5908_p4 = scmp.ne.s32.totalorder %s6728_s3, %s5907_s25  ;;  %p5911_p5 = scmp.lt.u32.totalorder %s5907_s25, %s6728_s3 }
  0x4a   :  { %p5913_p6 = pnand %p5911_p5, %p5908_p4 }
  0x4c   :  { %5916 = shalt.err (!%p5913_p6)
}
  0x4d   :  { %s5917_s0 = scalar_lea.vmem %s51_s18, 1024  ;;  %p5922_p8 = scmp.lt.s32.totalorder %s51_s18, %s51_s18 }
  0x4e   :  { %p5918_p7 = scmp.ne.s32.totalorder %s51_s18, %s5917_s0  ;;  %p5923_p9 = scmp.lt.s32.totalorder %s5917_s0, %s5917_s0 }
  0x50   :  { %p5924_p10 = por %p5923_p9, %p5922_p8 }
  0x52   :  { %p5925_p11 = pnand %p5924_p10, %p5918_p7 }
  0x54   :  { %5928 = shalt.err (!%p5925_p11)
}
  0x55   :  { %56 = dma.hbm_to_vmem [thread:$0]  %s6728_s3, 1024, %s51_s18, [#allocation6], %s6007_s21, %s6007_s21, %s6008_s22  }
  0x56   :  { %s5929_s11 = scalar_lea.hbm %s6730_s5, 12288 }
  0x57   :  { %p5930_p12 = scmp.ne.s32.totalorder %s6730_s5, %s5929_s11  ;;  %p5933_p13 = scmp.lt.u32.totalorder %s5929_s11, %s6730_s5 }
  0x59   :  { %p5935_p0 = pnand %p5933_p13, %p5930_p12 }
  0x5b   :  { %5938 = shalt.err (!%p5935_p0)
}
  0x5c   :  { %s5939_s7 = scalar_lea.vmem %s6147_s20, 12288  ;;  %p5944_p2 = scmp.lt.s32.totalorder %s6147_s20, %s6147_s20 }
  0x5d   :  { %p5940_p1 = scmp.ne.s32.totalorder %s6147_s20, %s5939_s7  ;;  %p5945_p3 = scmp.lt.s32.totalorder %s5939_s7, %s5939_s7 }
  0x5f   :  { %p5946_p4 = por %p5945_p3, %p5944_p2 }
  0x61   :  { %p5947_p5 = pnand %p5946_p4, %p5940_p1 }
  0x63   :  { %5950 = shalt.err (!%p5947_p5)
}
  0x64   :  { %s6013_s3 = smov 384   ;;  %s6014_s15 = smov 24  }
  0x65   :  { %80 = dma.hbm_to_vmem [thread:$0]  %s6730_s5, 12288, %s6147_s20, [#allocation9], %s6013_s3, %s6013_s3, %s6014_s15  }
  0x66   :  { %s6015_s19 = smov [#allocation13]   ;;  %s5951_s26 = scalar_lea.hbm %s6733_s8, 4096 }
  0x67   :  { %s100_s23 = sshll.u32 %s6015_s19, 4  ;;  %p5952_p6 = scmp.ne.s32.totalorder %s6733_s8, %s5951_s26  ;;  %s101_s23 = int_to_ptr.vmem [resolvable:$true] %s100_s23 }
  0x68   :  { %p5955_p7 = scmp.lt.u32.totalorder %s5951_s26, %s6733_s8 }
  0x6a   :  { %p5957_p8 = pnand %p5955_p7, %p5952_p6 }
  0x6c   :  { %5960 = shalt.err (!%p5957_p8)
}
  0x6d   :  { %s5961_s17 = scalar_lea.vmem %s101_s23, 4096  ;;  %p5966_p10 = scmp.lt.s32.totalorder %s101_s23, %s101_s23 }
  0x6e   :  { %p5962_p9 = scmp.ne.s32.totalorder %s101_s23, %s5961_s17  ;;  %p5967_p11 = scmp.lt.s32.totalorder %s5961_s17, %s5961_s17 }
  0x70   :  { %p5968_p12 = por %p5967_p11, %p5966_p10 }
  0x72   :  { %p5969_p13 = pnand %p5968_p12, %p5962_p9 }
  0x74   :  { %5972 = shalt.err (!%p5969_p13)
}
  0x75   :  { %s6016_s5 = smov 64   ;;  %s6017_s20 = smov 4  }
  0x76   :  { %106 = dma.hbm_to_vmem [thread:$0]  %s6733_s8, 4096, %s101_s23, [#allocation12], %s6016_s5, %s6016_s5, %s6017_s20  }
  0x77   :  { %5995 = dma.done.wait [#allocation3], 512  }
  0x78   :  { %5996 = vsyncadd [#allocation3], 4294966784 }
  0x79   :  { %5997 = dma.done.wait [#allocation6], 1280  }
  0x7a   :  { %5998 = vsyncadd [#allocation6], 4294966016 }
  0x7b   :  { %5999 = dma.done.wait [#allocation9], 12544  }
  0x7c   :  { %6000 = vsyncadd [#allocation9], 4294954752 }
  0x7d   :  { %6001 = dma.done.wait [#allocation12], 4608  }
  0x7e   :  { %6002 = vsyncadd [#allocation12], 4294962688  ;;  %v129_v0 = vld [vmem:[#allocation7] sm:$0xff]  ;;  %v130_v1 = vld [vmem:[#allocation7 + $0x8] sm:$0xff]  ;;  %vm143_vm0 = vcmask 523264   ;;  %v6018_v48 = vmov 0  }
  0x7f   :  { %v131_v2 = vld [vmem:[#allocation7 + $0x10] sm:$0xff]  ;;  %v6193_v3 = vpack.c.bf16 %v130_v1, %v129_v0  ;;  %v132_v4 = vld [vmem:[#allocation7 + $0x18] sm:$0xff]  ;;  %v133_v6 = vld [vmem:[#allocation7 + $0x20] sm:$0xff]  ;;  %625 = vmatprep.mubr.bf16.mxu1 %v6018_v48  ;;  %vm6020_vm1 = vmmov 0   ;;  %vm766_vm2 = vcmask 130048  }
  0x80   :  { %v6195_v5 = vpack.c.bf16 %v132_v4, %v131_v2  ;;  %v134_v7 = vld [vmem:[#allocation7 + $0x28] sm:$0xff]  ;;  %v141_v8 = vld [vmem:[#allocation2] sm:$0xff]  ;;  %v136_v10 = vld [vmem:[#allocation7 + $0x38] sm:$0xff] }
  0x81   :  { %5290 = vmatprep.subr.bf16.mxu0 %v6193_v3  ;;  %4997 = vmatprep.mubr.msk.f32.mxu0 %vm143_vm0, %v141_v8  ;;  %v135_v9 = vld [vmem:[#allocation7 + $0x30] sm:$0xff]  ;;  %v6201_v11 = vpack.c.bf16 %v134_v7, %v133_v6  ;;  %v142_v13 = vld [vmem:[#allocation2 + $0x8] sm:$0xff]  ;;  %v137_v14 = vld [vmem:[#allocation8] sm:$0xff]  ;;  %v253_v8 = vlaneseq }
  0x82   :  { %5292 = vmatpush3.bf16.msra.mxu0 %v6193_v3  ;;  %v6205_v12 = vpack.c.bf16 %v136_v10, %v135_v9  ;;  %v138_v16 = vld [vmem:[#allocation8 + $0x8] sm:$0xff]  ;;  %v5350_v24 = vld [vmem:[#allocation10 + $0xc] ss:$24 sps:$4 sm:$0xff]   ;;  %v5348_v25 = vld [vmem:[#allocation10 + $0x8] ss:$24 sps:$4 sm:$0xff]  }
  0x83   :  { %5294 = vmatprep.subr.bf16.mxu0 %v6195_v5  ;;  %v5345_v22 = vld [vmem:[#allocation10 + $0x4] ss:$24 sps:$4 sm:$0xff]   ;;  %v5347_v23 = vld [vmem:[#allocation10] ss:$24 sps:$4 sm:$0xff]   ;;  %v5351_v26 = vld [vmem:[#allocation10 + $0x34] ss:$24 sps:$4 sm:$0xff]  }
  0x84   :  { %593 = vmatprep.subr.bf16.mxu1 %v5345_v22  ;;  %v5353_v27 = vld [vmem:[#allocation10 + $0x30] ss:$24 sps:$4 sm:$0xff]   ;;  %v5356_v28 = vld [vmem:[#allocation10 + $0x3c] ss:$24 sps:$4 sm:$0xff]   ;;  %v5359_v31 = vld [vmem:[#allocation10 + $0x60] ss:$24 sps:$4 sm:$0xff]  }
  0x85   :  { %594 = vmatpush1.bf16.msra.mxu1 %v5347_v23  ;;  %v5354_v29 = vld [vmem:[#allocation10 + $0x38] ss:$24 sps:$4 sm:$0xff]   ;;  %v5357_v30 = vld [vmem:[#allocation10 + $0x64] ss:$24 sps:$4 sm:$0xff]   ;;  %v5360_v33 = vld [vmem:[#allocation10 + $0x68] ss:$24 sps:$4 sm:$0xff]  }
  0x86   :  { %5296 = vmatpush3.bf16.msra.mxu0 %v6195_v5  ;;  %595 = vmatprep.subr.bf16.mxu1 %v5351_v26  ;;  %v5362_v32 = vld [vmem:[#allocation10 + $0x6c] ss:$24 sps:$4 sm:$0xff]   ;;  %v5365_v35 = vld [vmem:[#allocation10 + $0x90] ss:$24 sps:$4 sm:$0xff]   ;;  %v5368_v36 = vld [vmem:[#allocation10 + $0x9c] ss:$24 sps:$4 sm:$0xff]  }
  0x87   :  { %5298 = vmatprep.subr.bf16.mxu0 %v6201_v11  ;;  %v5363_v34 = vld [vmem:[#allocation10 + $0x94] ss:$24 sps:$4 sm:$0xff]   ;;  %v5366_v37 = vld [vmem:[#allocation10 + $0x98] ss:$24 sps:$4 sm:$0xff]   ;;  %v5369_v38 = vld [vmem:[#allocation10 + $0xc4] ss:$24 sps:$4 sm:$0xff]  }
  0x88   :  { %v5371_v39 = vld [vmem:[#allocation10 + $0xc0] ss:$24 sps:$4 sm:$0xff]   ;;  %v5374_v41 = vld [vmem:[#allocation10 + $0xcc] ss:$24 sps:$4 sm:$0xff]   ;;  %v5380_v43 = vld [vmem:[#allocation10 + $0xfc] ss:$24 sps:$4 sm:$0xff]  }
  0x89   :  { %596 = vmatpush1.bf16.msra.mxu1 %v5353_v27  ;;  %v5372_v40 = vld [vmem:[#allocation10 + $0xc8] ss:$24 sps:$4 sm:$0xff]   ;;  %v5375_v42 = vld [vmem:[#allocation10 + $0xf4] ss:$24 sps:$4 sm:$0xff]   ;;  %v5378_v45 = vld [vmem:[#allocation10 + $0xf8] ss:$24 sps:$4 sm:$0xff]  }
  0x8a   :  { %5300 = vmatpush3.bf16.msra.mxu0 %v6201_v11  ;;  %597 = vmatprep.subr.bf16.mxu1 %v5357_v30  ;;  %v5377_v44 = vld [vmem:[#allocation10 + $0xf0] ss:$24 sps:$4 sm:$0xff]   ;;  %v5381_v46 = vld [vmem:[#allocation10 + $0x124] ss:$24 sps:$4 sm:$0xff]   ;;  %v5383_v49 = vld [vmem:[#allocation10 + $0x120] ss:$24 sps:$4 sm:$0xff]  }
  0x8b   :  { %5302 = vmatprep.subr.bf16.mxu0 %v6205_v12  ;;  %v5386_v47 = vld [vmem:[#allocation10 + $0x12c] ss:$24 sps:$4 sm:$0xff]   ;;  %v5384_v50 = vld [vmem:[#allocation10 + $0x128] ss:$24 sps:$4 sm:$0xff]   ;;  %v5392_v52 = vld [vmem:[#allocation10 + $0x15c] ss:$24 sps:$4 sm:$0xff]  }
  0x8c   :  { %v5387_v51 = vld [vmem:[#allocation10 + $0x154] ss:$24 sps:$4 sm:$0xff]   ;;  %v5389_v53 = vld [vmem:[#allocation10 + $0x150] ss:$24 sps:$4 sm:$0xff]  }
  0x8d   :  { %598 = vmatpush1.bf16.msra.mxu1 %v5359_v31  ;;  %v5390_v54 = vld [vmem:[#allocation10 + $0x158] ss:$24 sps:$4 sm:$0xff]   ;;  %v5395_v55 = vld [vmem:[#allocation10 + $0x14] ss:$24 sps:$4 sm:$0xff]  }
  0x8e   :  { %5304 = vmatpush3.bf16.msra.mxu0 %v6205_v12  ;;  %599 = vmatprep.subr.bf16.mxu1 %v5363_v34  ;;  %v5393_v30 = vld [vmem:[#allocation10 + $0x10] ss:$24 sps:$4 sm:$0xff]  }
  0x8f   :  { %636 = vmatprep.subr.bf16.mxu0 %v5350_v24  ;;  %v5399_v34 = vld [vmem:[#allocation10 + $0x70] ss:$24 sps:$4 sm:$0xff]  }
  0x91   :  { %4998 = vmatmul.mubr.msk.f32.vlgmr.msra.gmra.mrb[0].mxu0 %vm143_vm0, %v142_v13  ;;  %600 = vmatpush1.bf16.msra.mxu1 %v5365_v35  ;;  %v6223_v13 = vshrl.u32 %v253_v8, 7  ;;  %v5404_v35 = vld [vmem:[#allocation10 + $0xa4] ss:$24 sps:$4 sm:$0xff]  }
  0x92   :  { %637 = vmatpush1.bf16.msra.mxu0 %v5348_v25  ;;  %601 = vmatprep.subr.bf16.mxu1 %v5369_v38  ;;  %v5405_v38 = vld [vmem:[#allocation10 + $0xd0] ss:$24 sps:$4 sm:$0xff]  }
  0x93   :  { %638 = vmatprep.subr.bf16.mxu0 %v5356_v28  ;;  %668 = vmatprep.mubr.bf16.mxu0 %v6018_v48  ;;  %v6233_v22 = vsub.s32 1, %v6223_v13 }
  0x95   :  { %602 = vmatpush1.bf16.msra.mxu1 %v5371_v39  ;;  %v5410_v39 = vld [vmem:[#allocation10 + $0x104] ss:$24 sps:$4 sm:$0xff]  }
  0x96   :  { %639 = vmatpush1.bf16.msra.mxu0 %v5354_v29  ;;  %603 = vmatprep.subr.bf16.mxu1 %v5375_v42  ;;  %v5411_v42 = vld [vmem:[#allocation10 + $0x130] ss:$24 sps:$4 sm:$0xff]  }
  0x97   :  { %640 = vmatprep.subr.bf16.mxu0 %v5362_v32  ;;  %v5396_v32 = vld [vmem:[#allocation10 + $0x40] ss:$24 sps:$4 sm:$0xff]  }
  0x99   :  { %604 = vmatpush1.bf16.msra.mxu1 %v5377_v44  ;;  %v5414_v44 = vld [vmem:[#allocation10 + $0x160] ss:$24 sps:$4 sm:$0xff]  }
  0x9a   :  { %641 = vmatpush1.bf16.msra.mxu0 %v5360_v33  ;;  %605 = vmatprep.subr.bf16.mxu1 %v5381_v46  ;;  %v5401_v33 = vld [vmem:[#allocation10 + $0x74] ss:$24 sps:$4 sm:$0xff]   ;;  %v6257_v46 = vsub.s32 2, %v6223_v13 }
  0x9b   :  { %642 = vmatprep.subr.bf16.mxu0 %v5368_v36  ;;  %v5402_v36 = vld [vmem:[#allocation10 + $0xa0] ss:$24 sps:$4 sm:$0xff]  }
  0x9d   :  { %606 = vmatpush1.bf16.msra.mxu1 %v5383_v49  ;;  %v6263_v49 = vsub.s32 3, %v6223_v13 }
  0x9e   :  { %643 = vmatpush1.bf16.msra.mxu0 %v5366_v37  ;;  %607 = vmatprep.subr.bf16.mxu1 %v5387_v51  ;;  %v5407_v37 = vld [vmem:[#allocation10 + $0xd4] ss:$24 sps:$4 sm:$0xff]  }
  0x9f   :  { %644 = vmatprep.subr.bf16.mxu0 %v5374_v41  ;;  %v5413_v41 = vld [vmem:[#allocation10 + $0x134] ss:$24 sps:$4 sm:$0xff]  }
  0xa1   :  { %608 = vmatpush1.bf16.msra.mxu1 %v5389_v53 }
  0xa2   :  { %645 = vmatpush1.bf16.msra.mxu0 %v5372_v40  ;;  %679 = vmatprep.subr.bf16.mxu1 %v5395_v55  ;;  %v5408_v40 = vld [vmem:[#allocation10 + $0x100] ss:$24 sps:$4 sm:$0xff]  }
  0xa3   :  { %646 = vmatprep.subr.bf16.mxu0 %v5380_v43  ;;  %v5416_v43 = vld [vmem:[#allocation10 + $0x164] ss:$24 sps:$4 sm:$0xff]  }
  0xa6   :  { %647 = vmatpush1.bf16.msra.mxu0 %v5378_v45  ;;  %v6019_v45 = vmov 0.0  }
  0xa7   :  { %648 = vmatprep.subr.bf16.mxu0 %v5386_v47  ;;  %v321_v47 = vld [vmem:[%s6731_s6] sm:$0x3f] }
  0xa8   :  { %v334_v51 = vrot.slane %v321_v47, %v6257_v46  ;;  %v338_v55 = vrot.slane %v321_v47, %v6263_v49 }
  0xaa   :  { %649 = vmatpush1.bf16.msra.mxu0 %v5384_v50 }
  0xab   :  { %650 = vmatprep.subr.bf16.mxu0 %v5392_v52 }
  0xae   :  { %651 = vmatpush1.bf16.msra.mxu0 %v5390_v54  ;;  %v330_v54 = vrot.slane %v321_v47, %v6233_v22 }
  0xaf   :  { %5000 = vmatprep.subr.bf16.mxu0 %v6019_v45 }
 0x164   :  { %v4999_v15 = vpop.f32.mrb[0].mxu0 }
 0x165   :  { %v216_v17 = vpop.f32.mrb[1].mxu0  ;;  %v6213_v19 = vadd.f32 %v4999_v15, %v138_v16  ;;  %v140_v15 = vld [vmem:[#allocation11 + $0x8] sm:$0xff] }
 0x166   :  { %v6211_v18 = vadd.f32 %v216_v17, %v137_v14  ;;  %v6226_v14 = vsub.s32 0, %v6223_v13  ;;  %v6238_v27 = vrot.slane %v140_v15, %v6233_v22 }
 0x167   :  { %v230_v21 = vmul.f32 %v6213_v19, %v6213_v19 }
 0x168   :  { %225 = vadd.xlane.f32.xlu0 %v6211_v18  ;;  %v229_v20 = vmul.f32 %v6211_v18, %v6211_v18  ;;  %v326_v50 = vrot.slane %v321_v47, %v6226_v14 }
 0x16a   :  { %231 = vadd.xlane.f32.xlu1 %v229_v20 }
 0x16c   :  { %227 = vadd.xlane.f32.xlu0 %v6213_v19 }
 0x16e   :  { %233 = vadd.xlane.f32.xlu1 %v230_v21  ;;  %v6230_v21 = vrot.slane %v140_v15, %v6226_v14 }
 0x1f5   :  { %v226_v56 = vpop.xlane.xlu0 %225 }
 0x1f6   :  { %v235_v57 = vmul.f32 0.03125, %v226_v56 }
 0x1f7   :  { %v232_v58 = vpop.xlane.xlu1 %231 }
 0x1f8   :  { %v239_v59 = vmul.f32 %v235_v57, %v235_v57  ;;  %v237_v60 = vmul.f32 0.03125, %v232_v58  ;;  %v245_v16 = vsub.f32 %v6211_v18, %v235_v57 }
 0x1f9   :  { %v228_v61 = vpop.xlane.xlu0 %227 }
 0x1fa   :  { %v241_v62 = vsub.f32 %v237_v60, %v239_v59  ;;  %v236_v63 = vmul.f32 0.03125, %v228_v61 }
 0x1fb   :  { %v234_v0 = vpop.xlane.xlu1 %233 }
 0x1fc   :  { %v243_v1 = vmax.f32 %v241_v62, 0.0  ;;  %v240_v2 = vmul.f32 %v236_v63, %v236_v63  ;;  %v238_v4 = vmul.f32 0.03125, %v234_v0  ;;  %v246_v23 = vsub.f32 %v6213_v19, %v236_v63  ;;  %v5398_v19 = vld [vmem:[#allocation10 + $0x44] ss:$24 sps:$4 sm:$0xff]  }
 0x1fe   :  { %v247_v6 = vadd.f32 1e-12, %v243_v1  ;;  %v242_v7 = vsub.f32 %v238_v4, %v240_v2 }
 0x200   :  { %5697 = vrsqrt.f32 %v247_v6  ;;  %v244_v9 = vmax.f32 %v242_v7, 0.0 }
 0x202   :  { %v248_v10 = vadd.f32 1e-12, %v244_v9 }
 0x204   :  { %5699 = vrsqrt.f32 %v248_v10 }
 0x20a   :  { %v5698_v17 = vpop.eup %5697 }
 0x20b   :  { %v251_v20 = vmul.f32 %v5698_v17, %v245_v16  ;;  %v6274_v16 = vsub.s32 4, %v6223_v13  ;;  %v6277_v17 = vsub.s32 5, %v6223_v13 }
 0x20d   :  { %v257_v26 = vmul.f32 %v6230_v21, %v251_v20  ;;  %v342_v20 = vrot.slane %v321_v47, %v6274_v16 }
 0x20e   :  { %v5700_v24 = vpop.eup %5699 }
 0x20f   :  { %v252_v25 = vmul.f32 %v5700_v24, %v246_v23  ;;  %v6242_v18 = vadd.f32 %v6238_v27, %v257_v26  ;;  %v346_v24 = vrot.slane %v321_v47, %v6277_v17 }
 0x211   :  { %v258_v28 = vmul.f32 %v6230_v21, %v252_v25 }
 0x213   :  { %v6245_v29 = vadd.f32 %v6238_v27, %v258_v28 }
 0x215   :  { %v272_v31 = vpack.c.bf16 %v6245_v29, %v6242_v18 }
 0x217   :  { %626 = vmatmul.mubr.bf16.vlgmr.msra.gmra.mrb[0].mxu1 %v272_v31  ;;  %669 = vmatmul.mubr.bf16.vlgmr.msra.gmra.mrb[4].mxu0 %v272_v31 }
 0x218   :  { %680 = vmatpush1.bf16.msra.mxu1 %v5393_v30  ;;  %711 = vmatprep.mubr.bf16.mxu1 %v6018_v48 }
 0x219   :  { %681 = vmatprep.subr.bf16.mxu1 %v5398_v19  ;;  %5002 = vmatprep.mubr.msk.bf16.mxu0 %vm6020_vm1, %v6019_v45 }
 0x21c   :  { %682 = vmatpush1.bf16.msra.mxu1 %v5396_v32 }
 0x21d   :  { %683 = vmatprep.subr.bf16.mxu1 %v5401_v33 }
 0x220   :  { %684 = vmatpush1.bf16.msra.mxu1 %v5399_v34 }
 0x221   :  { %685 = vmatprep.subr.bf16.mxu1 %v5404_v35  ;;  %v6288_v35 = vld [vmem:[%s6726_s1] ss:$0 sm:$0xff] }
 0x224   :  { %686 = vmatpush1.bf16.msra.mxu1 %v5402_v36 }
 0x225   :  { %687 = vmatprep.subr.bf16.mxu1 %v5407_v37 }
 0x228   :  { %688 = vmatpush1.bf16.msra.mxu1 %v5405_v38 }
 0x229   :  { %689 = vmatprep.subr.bf16.mxu1 %v5410_v39 }
 0x22c   :  { %690 = vmatpush1.bf16.msra.mxu1 %v5408_v40 }
 0x22d   :  { %691 = vmatprep.subr.bf16.mxu1 %v5413_v41 }
 0x230   :  { %692 = vmatpush1.bf16.msra.mxu1 %v5411_v42 }
 0x231   :  { %693 = vmatprep.subr.bf16.mxu1 %v5416_v43 }
 0x234   :  { %694 = vmatpush1.bf16.msra.mxu1 %v5414_v44 }
 0x235   :  { %5018 = vmatprep.subr.bf16.mxu1 %v6019_v45 }
 0x237   :  { %712 = vmatmul.mubr.bf16.vlgmr.msra.gmra.mrb[4].mxu1 %v272_v31 }
 0x238   :  { %5020 = vmatprep.mubr.msk.bf16.mxu1 %vm6020_vm1, %v6019_v45 }
 0x2ea   :  { %v627_v52 = vpop.f32.mrb[0].mxu1  ;;  %v670_v53 = vpop.f32.mrb[4].mxu0 }
 0x2eb   :  { %v629_v56 = vpop.f32.mrb[1].mxu1  ;;  %v672_v57 = vpop.f32.mrb[5].mxu0  ;;  %v628_v60 = vadd.f32 %v627_v52, %v326_v50  ;;  %v671_v61 = vadd.f32 %v670_v53, %v334_v51 }
 0x2ec   :  { %v631_v58 = vpop.f32.mrb[2].mxu1  ;;  %v674_v59 = vpop.f32.mrb[6].mxu0  ;;  %v630_v2 = vadd.f32 %v629_v56, %v330_v54  ;;  %v673_v4 = vadd.f32 %v672_v57, %v338_v55 }
 0x2ed   :  { %v632_v62 = vadd.f32 %v631_v58, %v326_v50  ;;  %v675_v63 = vadd.f32 %v674_v59, %v334_v51  ;;  %v633_v0 = vpop.f32.mrb[3].mxu1  ;;  %v676_v1 = vpop.f32.mrb[7].mxu0 }
 0x2ee   :  { %v634_v6 = vadd.f32 %v633_v0, %v330_v54  ;;  %v677_v7 = vadd.f32 %v676_v1, %v338_v55 }
 0x2ef   :  { %v722_v8 = vpack.c.bf16 %v632_v62, %v628_v60  ;;  %v724_v9 = vpack.c.bf16 %v675_v63, %v671_v61 }
 0x2f0   :  { %v723_v10 = vpack.c.bf16 %v634_v6, %v630_v2  ;;  %v790_v15 = vpack.c.bf16 %v677_v7, %v673_v4 }
 0x2f1   :  { %5019 = vmatpush3.bf16.msra.mxu1 %v724_v9 }
 0x2f2   :  { %5001 = vmatpush3.bf16.xpose.msra.mxu0 %v723_v10  ;;  %5044 = vmatprep.subr.bf16.mxu1 %v6019_v45 }
 0x2f3   :  { %5006 = vmatprep.subr.bf16.mxu0 %v6019_v45 }
 0x2f9   :  { %5003 = vmatmul.mubr.bf16.vlgmr.msra.gmra.mrb[8].mxu0 %v722_v8 }
 0x2fa   :  { %5008 = vmatprep.mubr.msk.bf16.mxu0 %vm6020_vm1, %v6019_v45 }
 0x30a   :  { %v713_v23 = vpop.f32.mrb[4].mxu1 }
 0x30b   :  { %v715_v25 = vpop.f32.mrb[5].mxu1  ;;  %v714_v28 = vadd.f32 %v713_v23, %v342_v20 }
 0x30c   :  { %v717_v26 = vpop.f32.mrb[6].mxu1  ;;  %v716_v19 = vadd.f32 %v715_v25, %v346_v24 }
 0x30d   :  { %v718_v30 = vadd.f32 %v717_v26, %v342_v20  ;;  %v719_v31 = vpop.f32.mrb[7].mxu1 }
 0x30e   :  { %v720_v32 = vadd.f32 %v719_v31, %v346_v24 }
 0x30f   :  { %v791_v33 = vpack.c.bf16 %v718_v30, %v714_v28 }
 0x310   :  { %v792_v34 = vpack.c.bf16 %v720_v32, %v716_v19 }
 0x311   :  { %5007 = vmatpush3.bf16.xpose.msra.mxu0 %v791_v33 }
 0x312   :  { %5012 = vmatprep.subr.bf16.mxu0 %v6019_v45 }
 0x318   :  { %5009 = vmatmul.mubr.bf16.vlgmr.msra.gmra.mrb[12].mxu0 %v790_v15 }
 0x319   :  { %5013 = vmatpush3.bf16.msra.mxu0 %v792_v34  ;;  %5014 = vmatprep.mubr.msk.bf16.mxu0 %vm6020_vm1, %v6019_v45 }
 0x31a   :  { %5024 = vmatprep.subr.bf16.mxu0 %v6019_v45 }
 0x3cc   :  { %v759_v36 = vpop.f32.mrb[8].mxu0 }
 0x3cd   :  { %v760_v37 = vadd.f32 %v6288_v35, %v759_v36  ;;  %v5004_v38 = vpop.f32.mrb[9].mxu0 }
 0x3ce   :  { %v762_v39 = vpop.f32.mrb[10].mxu0 }
 0x3cf   :  { %v763_v40 = vadd.f32 %v6288_v35, %v762_v39  ;;  %v5005_v41 = vpop.f32.mrb[11].mxu0  ;;  %v767_v42 = vsel %vm766_vm2, %v760_v37, -inf }
 0x3d0   :  { %768 = vmax.xlane.f32.xlu0 %v767_v42 }
 0x3d1   :  { %v770_v43 = vsel %vm766_vm2, %v763_v40, -inf }
 0x3d2   :  { %771 = vmax.xlane.f32.xlu1 %v770_v43 }
 0x3eb   :  { %v827_v44 = vpop.f32.mrb[12].mxu0 }
 0x3ec   :  { %v828_v47 = vadd.f32 %v6288_v35, %v827_v44  ;;  %v5010_v50 = vpop.f32.mrb[13].mxu0  ;;  %v6308_v44 = vld [vmem:[#allocation11] sm:$0xff] }
 0x3ed   :  { %v830_v51 = vpop.f32.mrb[14].mxu0 }
 0x3ee   :  { %v831_v52 = vadd.f32 %v6288_v35, %v830_v51  ;;  %v5011_v53 = vpop.f32.mrb[15].mxu0  ;;  %v834_v54 = vsel %vm766_vm2, %v828_v47, -inf }
 0x3ef   :  { %835 = vmax.xlane.f32.xlu0 %v834_v54 }
 0x3f0   :  { %v837_v55 = vsel %vm766_vm2, %v831_v52, -inf }
 0x3f1   :  { %838 = vmax.xlane.f32.xlu1 %v837_v55 }
 0x45d   :  { %v769_v56 = vpop.xlane.xlu0 %768 }
 0x45e   :  { %v773_v57 = vsub.f32 %v760_v37, %v769_v56 }
 0x45f   :  { %v772_v58 = vpop.xlane.xlu1 %771 }
 0x460   :  { %v775_v59 = vmul.f32 1.442695, %v773_v57  ;;  %v774_v60 = vsub.f32 %v763_v40, %v772_v58 }
 0x462   :  { %5701 = vpow2.f32 %v775_v59  ;;  %v777_v61 = vmul.f32 1.442695, %v774_v60 }
 0x464   :  { %5703 = vpow2.f32 %v777_v61 }
 0x46c   :  { %v5702_v62 = vpop.eup %5701 }
 0x46d   :  { %v779_v63 = vsel %vm766_vm2, %v5702_v62, 0.0 }
 0x46e   :  { %v5704_v0 = vpop.eup %5703  ;;  %780 = vadd.xlane.f32.xlu0 %v779_v63  ;;  %v5418_v63 = vld [vmem:[#allocation13 + $0x8] sm:$0xff]  }
 0x46f   :  { %v782_v1 = vsel %vm766_vm2, %v5704_v0, 0.0 }
 0x470   :  { %783 = vadd.xlane.f32.xlu1 %v782_v1  ;;  %v5422_v1 = vld [vmem:[#allocation13 + $0x28] sm:$0xff]  }
 0x47c   :  { %v836_v2 = vpop.xlane.xlu0 %835 }
 0x47d   :  { %v840_v4 = vsub.f32 %v828_v47, %v836_v2  ;;  %v948_v47 = vrot.slane %v6308_v44, %v6226_v14  ;;  %v5423_v2 = vld [vmem:[#allocation13 + $0x30] sm:$0xff]  }
 0x47e   :  { %v839_v6 = vpop.xlane.xlu1 %838 }
 0x47f   :  { %v842_v7 = vmul.f32 1.442695, %v840_v4  ;;  %v841_v8 = vsub.f32 %v831_v52, %v839_v6  ;;  %v5424_v4 = vld [vmem:[#allocation13 + $0x38] sm:$0xff]  }
 0x481   :  { %5705 = vpow2.f32 %v842_v7  ;;  %v844_v9 = vmul.f32 1.442695, %v841_v8 }
 0x483   :  { %5707 = vpow2.f32 %v844_v9 }
 0x48b   :  { %v5706_v10 = vpop.eup %5705 }
 0x48c   :  { %v846_v15 = vsel %vm766_vm2, %v5706_v10, 0.0 }
 0x48d   :  { %v5708_v20 = vpop.eup %5707  ;;  %847 = vadd.xlane.f32.xlu0 %v846_v15 }
 0x48e   :  { %v849_v23 = vsel %vm766_vm2, %v5708_v20, 0.0 }
 0x48f   :  { %850 = vadd.xlane.f32.xlu1 %v849_v23 }
 0x4fb   :  { %v781_v24 = vpop.xlane.xlu0 %780 }
 0x4fc   :  { %5709 = vrcp.f32 %v781_v24 }
 0x4fd   :  { %v784_v25 = vpop.xlane.xlu1 %783 }
 0x4fe   :  { %5711 = vrcp.f32 %v784_v25 }
 0x506   :  { %v5710_v26 = vpop.eup %5709 }
 0x507   :  { %v787_v30 = vmul.f32 %v5710_v26, %v5702_v62  ;;  %v5417_v62 = vld [vmem:[#allocation13] sm:$0xff]  }
 0x508   :  { %v5712_v28 = vpop.eup %5711 }
 0x509   :  { %v788_v31 = vmul.f32 %v5712_v28, %v5704_v0  ;;  %v5419_v0 = vld [vmem:[#allocation13 + $0x10] sm:$0xff]  }
 0x50b   :  { %v789_v19 = vpack.c.bf16 %v788_v31, %v787_v30 }
 0x50d   :  { %5021 = vmatmul.mubr.msk.bf16.vlgmr.msra.gmra.mrb[8].mxu1 %vm766_vm2, %v789_v19 }
 0x50e   :  { %5060 = vmatprep.mubr.msk.bf16.mxu1 %vm6020_vm1, %v6019_v45 }
 0x51a   :  { %v848_v32 = vpop.xlane.xlu0 %847 }
 0x51b   :  { %5713 = vrcp.f32 %v848_v32 }
 0x51c   :  { %v851_v33 = vpop.xlane.xlu1 %850 }
 0x51d   :  { %5715 = vrcp.f32 %v851_v33 }
 0x525   :  { %v5714_v34 = vpop.eup %5713 }
 0x526   :  { %v854_v37 = vmul.f32 %v5714_v34, %v5706_v10  ;;  %v984_v34 = vrot.slane %v6308_v44, %v6233_v22 }
 0x527   :  { %v5716_v36 = vpop.eup %5715 }
 0x528   :  { %v855_v38 = vmul.f32 %v5716_v36, %v5708_v20 }
 0x52a   :  { %v856_v39 = vpack.c.bf16 %v855_v38, %v854_v37 }
 0x52c   :  { %5015 = vmatmul.mubr.msk.bf16.vlgmr.msra.gmra.mrb[16].mxu0 %vm766_vm2, %v856_v39 }
 0x52d   :  { %5040 = vmatprep.mubr.msk.bf16.mxu0 %vm6020_vm1, %v6019_v45  ;;  %5025 = vmatpush3.bf16.msra.mxu0 %v5417_v62 }
 0x52e   :  { %5026 = vmatprep.subr.bf16.mxu0 %v6019_v45 }
 0x531   :  { %5027 = vmatpush3.bf16.msra.mxu0 %v5418_v63 }
 0x532   :  { %5028 = vmatprep.subr.bf16.mxu0 %v6019_v45 }
 0x535   :  { %5029 = vmatpush3.bf16.msra.mxu0 %v5419_v0 }
 0x536   :  { %5030 = vmatprep.subr.bf16.mxu0 %v6019_v45 }
 0x5e0   :  { %v938_v40 = vpop.f32.mrb[8].mxu1 }
 0x5e1   :  { %v5022_v41 = vpop.f32.mrb[9].mxu1 }
 0x5e2   :  { %v941_v42 = vpop.f32.mrb[10].mxu1 }
 0x5e3   :  { %v5023_v43 = vpop.f32.mrb[11].mxu1 }
 0x5ff   :  { %v894_v50 = vpop.f32.mrb[16].mxu0 }
 0x600   :  { %v939_v51 = vadd.f32 %v938_v40, %v894_v50  ;;  %v5016_v52 = vpop.f32.mrb[17].mxu0 }
 0x601   :  { %v897_v53 = vpop.f32.mrb[18].mxu0  ;;  %v5425_v52 = vld [vmem:[#allocation13 + $0x40] sm:$0xff]  }
 0x602   :  { %v949_v54 = vadd.f32 %v948_v47, %v939_v51  ;;  %v942_v55 = vadd.f32 %v941_v42, %v897_v53  ;;  %v5017_v56 = vpop.f32.mrb[19].mxu0  ;;  %v990_v42 = vrot.slane %v6308_v44, %v6257_v46  ;;  %5045 = vmatpush3.bf16.msra.mxu1 %v5425_v52  ;;  %v5426_v53 = vld [vmem:[#allocation13 + $0x48] sm:$0xff]   ;;  %v5435_v52 = vld [vmem:[#allocation10 + $0x184] ss:$24 sps:$4 sm:$0xff]  }
 0x603   :  { %5046 = vmatprep.subr.bf16.mxu1 %v6019_v45  ;;  %v5429_v56 = vld [vmem:[#allocation13 + $0x60] sm:$0xff]  }
 0x604   :  { %v950_v57 = vadd.f32 %v948_v47, %v942_v55  ;;  %v951_v58 = vadd.f32 %v949_v54, %v6242_v18  ;;  %v5420_v18 = vld [vmem:[#allocation13 + $0x18] sm:$0xff]   ;;  %v5427_v54 = vld [vmem:[#allocation13 + $0x50] sm:$0xff]  }
 0x605   :  { %5031 = vmatpush3.bf16.msra.mxu0 %v5420_v18  ;;  %v5428_v55 = vld [vmem:[#allocation13 + $0x58] sm:$0xff]  }
 0x606   :  { %953 = vadd.xlane.f32.xlu0 %v951_v58  ;;  %v952_v59 = vadd.f32 %v950_v57, %v6245_v29  ;;  %v957_v60 = vmul.f32 %v951_v58, %v951_v58  ;;  %v5421_v29 = vld [vmem:[#allocation13 + $0x20] sm:$0xff]   ;;  %5032 = vmatprep.subr.bf16.mxu0 %v6019_v45  ;;  %v5430_v57 = vld [vmem:[#allocation13 + $0x68] sm:$0xff]  }
 0x607   :  { %5047 = vmatpush3.bf16.msra.mxu1 %v5426_v53  ;;  %v5438_v53 = vld [vmem:[#allocation10 + $0x18c] ss:$24 sps:$4 sm:$0xff]  }
 0x608   :  { %955 = vadd.xlane.f32.xlu1 %v952_v59  ;;  %v958_v61 = vmul.f32 %v952_v59, %v952_v59  ;;  %5048 = vmatprep.subr.bf16.mxu1 %v6019_v45 }
 0x609   :  { %5033 = vmatpush3.bf16.msra.mxu0 %v5421_v29 }
 0x60a   :  { %959 = vadd.xlane.f32.xlu0 %v957_v60  ;;  %5034 = vmatprep.subr.bf16.mxu0 %v6019_v45  ;;  %v1029_v60 = vrot.slane %v6308_v44, %v6263_v49 }
 0x60b   :  { %5049 = vmatpush3.bf16.msra.mxu1 %v5427_v54  ;;  %v5436_v54 = vld [vmem:[#allocation10 + $0x188] ss:$24 sps:$4 sm:$0xff]  }
 0x60c   :  { %961 = vadd.xlane.f32.xlu1 %v958_v61  ;;  %5050 = vmatprep.subr.bf16.mxu1 %v6019_v45 }
 0x60d   :  { %5035 = vmatpush3.bf16.msra.mxu0 %v5422_v1 }
 0x60e   :  { %5036 = vmatprep.subr.bf16.mxu0 %v6019_v45 }
 0x60f   :  { %5051 = vmatpush3.bf16.msra.mxu1 %v5428_v55  ;;  %v5439_v55 = vld [vmem:[#allocation10 + $0x1b0] ss:$24 sps:$4 sm:$0xff]  }
 0x610   :  { %5052 = vmatprep.subr.bf16.mxu1 %v6019_v45 }
 0x611   :  { %5037 = vmatpush3.bf16.msra.mxu0 %v5423_v2 }
 0x612   :  { %5038 = vmatprep.subr.bf16.mxu0 %v6019_v45 }
 0x613   :  { %5053 = vmatpush3.bf16.msra.mxu1 %v5429_v56  ;;  %v5444_v56 = vld [vmem:[#allocation10 + $0x1bc] ss:$24 sps:$4 sm:$0xff]  }
 0x614   :  { %5054 = vmatprep.subr.bf16.mxu1 %v6019_v45 }
 0x615   :  { %5039 = vmatpush3.bf16.msra.mxu0 %v5424_v4 }
 0x616   :  { %1598 = vmatprep.subr.bf16.mxu0 %v5435_v52 }
 0x617   :  { %5055 = vmatpush3.bf16.msra.mxu1 %v5430_v57  ;;  %v5442_v57 = vld [vmem:[#allocation10 + $0x1b8] ss:$24 sps:$4 sm:$0xff]  }
 0x618   :  { %5056 = vmatprep.subr.bf16.mxu1 %v6019_v45 }
 0x693   :  { %v954_v6 = vpop.xlane.xlu0 %953 }
 0x694   :  { %v963_v7 = vmul.f32 0.03125, %v954_v6 }
 0x695   :  { %v956_v8 = vpop.xlane.xlu1 %955 }
 0x696   :  { %v964_v9 = vmul.f32 0.03125, %v956_v8  ;;  %v967_v15 = vmul.f32 %v963_v7, %v963_v7  ;;  %v973_v33 = vsub.f32 %v951_v58, %v963_v7  ;;  %v5431_v58 = vld [vmem:[#allocation13 + $0x70] sm:$0xff]  }
 0x697   :  { %v960_v10 = vpop.xlane.xlu0 %959  ;;  %5057 = vmatpush3.bf16.msra.mxu1 %v5431_v58  ;;  %v5447_v58 = vld [vmem:[#allocation10 + $0x1e4] ss:$24 sps:$4 sm:$0xff]  }
 0x698   :  { %v965_v20 = vmul.f32 0.03125, %v960_v10  ;;  %v968_v24 = vmul.f32 %v964_v9, %v964_v9  ;;  %v974_v37 = vsub.f32 %v952_v59, %v964_v9  ;;  %v5432_v59 = vld [vmem:[#allocation13 + $0x78] sm:$0xff]   ;;  %5058 = vmatprep.subr.bf16.mxu1 %v6019_v45 }
 0x699   :  { %v962_v23 = vpop.xlane.xlu1 %961 }
 0x69a   :  { %v969_v25 = vsub.f32 %v965_v20, %v967_v15  ;;  %v966_v26 = vmul.f32 0.03125, %v962_v23 }
 0x69b   :  { %5059 = vmatpush3.bf16.msra.mxu1 %v5432_v59  ;;  %v5445_v59 = vld [vmem:[#allocation10 + $0x1e0] ss:$24 sps:$4 sm:$0xff]  }
 0x69c   :  { %v971_v28 = vmax.f32 %v969_v25, 0.0  ;;  %v970_v30 = vsub.f32 %v966_v26, %v968_v24  ;;  %1641 = vmatprep.subr.bf16.mxu1 %v5438_v53 }
 0x69e   :  { %v975_v31 = vadd.f32 1e-12, %v971_v28  ;;  %v972_v19 = vmax.f32 %v970_v30, 0.0 }
 0x6a0   :  { %5717 = vrsqrt.f32 %v975_v31  ;;  %v976_v32 = vadd.f32 1e-12, %v972_v19 }
 0x6a2   :  { %5719 = vrsqrt.f32 %v976_v32 }
 0x6aa   :  { %v5718_v36 = vpop.eup %5717 }
 0x6ab   :  { %v979_v38 = vmul.f32 %v5718_v36, %v973_v33  ;;  %v1141_v33 = vrot.slane %v6308_v44, %v6274_v16 }
 0x6ac   :  { %v5720_v39 = vpop.eup %5719 }
 0x6ad   :  { %v980_v40 = vmul.f32 %v5720_v39, %v974_v37  ;;  %v985_v41 = vmul.f32 %v984_v34, %v979_v38 }
 0x6af   :  { %v986_v43 = vmul.f32 %v984_v34, %v980_v40  ;;  %v6325_v47 = vadd.f32 %v990_v42, %v985_v41 }
 0x6b1   :  { %v6327_v50 = vadd.f32 %v990_v42, %v986_v43 }
 0x6b3   :  { %v1025_v51 = vpack.c.bf16 %v6327_v50, %v6325_v47 }
 0x6b5   :  { %5041 = vmatmul.mubr.bf16.vlgmr.msra.gmra.mrb[20].mxu0 %v1025_v51 }
 0x6b6   :  { %1630 = vmatprep.mubr.bf16.mxu0 %v6018_v48 }
 0x788   :  { %v1112_v61 = vpop.f32.mrb[20].mxu0 }
 0x789   :  { %v1113_v62 = vadd.f32 %v1112_v61, %v1029_v60  ;;  %v5042_v63 = vpop.f32.mrb[21].mxu0  ;;  %v5448_v61 = vld [vmem:[#allocation10 + $0x1e8] ss:$24 sps:$4 sm:$0xff]  }
 0x78a   :  { %v1115_v0 = vpop.f32.mrb[22].mxu0  ;;  %v5451_v63 = vld [vmem:[#allocation10 + $0x210] ss:$24 sps:$4 sm:$0xff]  }
 0x78b   :  { %v1121_v18 = vmul.f32 0.044715, %v1113_v62  ;;  %v1116_v29 = vadd.f32 %v1115_v0, %v1029_v60  ;;  %v5043_v1 = vpop.f32.mrb[23].mxu0  ;;  %v1119_v26 = vmul.f32 0.5, %v1113_v62  ;;  %v5450_v60 = vld [vmem:[#allocation10 + $0x1ec] ss:$24 sps:$4 sm:$0xff]  }
 0x78c   :  { %v5456_v0 = vld [vmem:[#allocation10 + $0x21c] ss:$24 sps:$4 sm:$0xff]  }
 0x78d   :  { %v1123_v2 = vmul.f32 %v1121_v18, %v1113_v62  ;;  %v1122_v4 = vmul.f32 0.044715, %v1116_v29  ;;  %v1120_v28 = vmul.f32 0.5, %v1116_v29  ;;  %v5454_v18 = vld [vmem:[#allocation10 + $0x218] ss:$24 sps:$4 sm:$0xff]  }
 0x78e   :  { %v5459_v1 = vld [vmem:[#allocation10 + $0x244] ss:$24 sps:$4 sm:$0xff]  }
 0x78f   :  { %v1125_v6 = vmul.f32 %v1123_v2, %v1113_v62  ;;  %v1124_v7 = vmul.f32 %v1122_v4, %v1116_v29  ;;  %v5460_v2 = vld [vmem:[#allocation10 + $0x248] ss:$24 sps:$4 sm:$0xff]   ;;  %v5462_v4 = vld [vmem:[#allocation10 + $0x24c] ss:$24 sps:$4 sm:$0xff]  }
 0x791   :  { %v1127_v8 = vadd.f32 %v1125_v6, %v1113_v62  ;;  %v1126_v9 = vmul.f32 %v1124_v7, %v1116_v29  ;;  %v5453_v62 = vld [vmem:[#allocation10 + $0x214] ss:$24 sps:$4 sm:$0xff]  }
 0x792   :  { %v5465_v6 = vld [vmem:[#allocation10 + $0x274] ss:$24 sps:$4 sm:$0xff]  }
 0x793   :  { %v1129_v10 = vmul.f32 0.7978846, %v1127_v8  ;;  %v1128_v15 = vadd.f32 %v1126_v9, %v1116_v29  ;;  %v5457_v29 = vld [vmem:[#allocation10 + $0x240] ss:$24 sps:$4 sm:$0xff]   ;;  %v5468_v7 = vld [vmem:[#allocation10 + $0x27c] ss:$24 sps:$4 sm:$0xff]  }
 0x794   :  { %v5463_v8 = vld [vmem:[#allocation10 + $0x270] ss:$24 sps:$4 sm:$0xff]  }
 0x795   :  { %5721 = vtanh.f32 %v1129_v10  ;;  %v1130_v20 = vmul.f32 0.7978846, %v1128_v15  ;;  %v5466_v9 = vld [vmem:[#allocation10 + $0x278] ss:$24 sps:$4 sm:$0xff]   ;;  %v5471_v10 = vld [vmem:[#allocation10 + $0x2a4] ss:$24 sps:$4 sm:$0xff]  }
 0x796   :  { %v5474_v15 = vld [vmem:[#allocation10 + $0x2ac] ss:$24 sps:$4 sm:$0xff]  }
 0x797   :  { %5723 = vtanh.f32 %v1130_v20  ;;  %v5469_v20 = vld [vmem:[#allocation10 + $0x2a0] ss:$24 sps:$4 sm:$0xff]  }
 0x79f   :  { %v5722_v23 = vpop.eup %5721 }
 0x7a0   :  { %v1133_v24 = vadd.f32 1.0, %v5722_v23  ;;  %v5472_v23 = vld [vmem:[#allocation10 + $0x2a8] ss:$24 sps:$4 sm:$0xff]  }
 0x7a1   :  { %v5724_v25 = vpop.eup %5723 }
 0x7a2   :  { %v1134_v30 = vadd.f32 1.0, %v5724_v25  ;;  %v1135_v31 = vmul.f32 %v1133_v24, %v1119_v26  ;;  %v5477_v24 = vld [vmem:[#allocation10 + $0x2d4] ss:$24 sps:$4 sm:$0xff]   ;;  %v5475_v26 = vld [vmem:[#allocation10 + $0x2d0] ss:$24 sps:$4 sm:$0xff]  }
 0x7a3   :  { %v5480_v25 = vld [vmem:[#allocation10 + $0x2dc] ss:$24 sps:$4 sm:$0xff]  }
 0x7a4   :  { %v1136_v19 = vmul.f32 %v1134_v30, %v1120_v28  ;;  %v5478_v28 = vld [vmem:[#allocation10 + $0x2d8] ss:$24 sps:$4 sm:$0xff]   ;;  %v5483_v30 = vld [vmem:[#allocation10 + $0x194] ss:$24 sps:$4 sm:$0xff]  }
 0x7a6   :  { %v1137_v32 = vpack.c.bf16 %v1136_v19, %v1135_v31 }
 0x7a8   :  { %5061 = vmatmul.mubr.bf16.vlgmr.msra.gmra.mrb[12].mxu1 %v1137_v32 }
 0x7a9   :  { %1673 = vmatprep.mubr.bf16.mxu1 %v6018_v48  ;;  %1642 = vmatpush1.bf16.msra.mxu1 %v5436_v54 }
 0x7aa   :  { %1643 = vmatprep.subr.bf16.mxu1 %v5444_v56  ;;  %v6361_v56 = vsub.s32 6, %v6223_v13 }
 0x7ad   :  { %1644 = vmatpush1.bf16.msra.mxu1 %v5442_v57 }
 0x7ae   :  { %1645 = vmatprep.subr.bf16.mxu1 %v5450_v60 }
 0x7b1   :  { %1646 = vmatpush1.bf16.msra.mxu1 %v5448_v61 }
 0x7b2   :  { %1647 = vmatprep.subr.bf16.mxu1 %v5456_v0 }
 0x7b5   :  { %1648 = vmatpush1.bf16.msra.mxu1 %v5454_v18 }
 0x7b6   :  { %1649 = vmatprep.subr.bf16.mxu1 %v5462_v4  ;;  %v5492_v4 = vld [vmem:[#allocation10 + $0x224] ss:$24 sps:$4 sm:$0xff]  }
 0x7b9   :  { %1650 = vmatpush1.bf16.msra.mxu1 %v5460_v2  ;;  %v5489_v2 = vld [vmem:[#allocation10 + $0x1f4] ss:$24 sps:$4 sm:$0xff]  }
 0x7ba   :  { %1651 = vmatprep.subr.bf16.mxu1 %v5468_v7  ;;  %v5495_v7 = vld [vmem:[#allocation10 + $0x254] ss:$24 sps:$4 sm:$0xff]  }
 0x7bd   :  { %1652 = vmatpush1.bf16.msra.mxu1 %v5466_v9  ;;  %v5498_v9 = vld [vmem:[#allocation10 + $0x284] ss:$24 sps:$4 sm:$0xff]  }
 0x7be   :  { %1653 = vmatprep.subr.bf16.mxu1 %v5474_v15  ;;  %v5501_v15 = vld [vmem:[#allocation10 + $0x2b4] ss:$24 sps:$4 sm:$0xff]  }
 0x7c1   :  { %1654 = vmatpush1.bf16.msra.mxu1 %v5472_v23  ;;  %v5504_v23 = vld [vmem:[#allocation10 + $0x2e4] ss:$24 sps:$4 sm:$0xff]  }
 0x7c2   :  { %1655 = vmatprep.subr.bf16.mxu1 %v5480_v25  ;;  %v4645_v25 = vld [vmem:[%s6731_s6 + $0x6] sm:$0x3f] }
 0x7c5   :  { %1656 = vmatpush1.bf16.msra.mxu1 %v5478_v28  ;;  %v1339_v28 = vrot.slane %v4645_v25, %v6257_v46 }
 0x7c6   :  { %5064 = vmatprep.subr.bf16.mxu1 %v6019_v45 }
 0x87b   :  { %v1224_v34 = vpop.f32.mrb[12].mxu1 }
 0x87c   :  { %v1225_v36 = vadd.f32 %v1224_v34, %v1141_v33  ;;  %v5062_v37 = vpop.f32.mrb[13].mxu1 }
 0x87d   :  { %v1227_v38 = vpop.f32.mrb[14].mxu1 }
 0x87e   :  { %v6345_v39 = vadd.f32 %v1225_v36, %v6325_v47  ;;  %v1228_v40 = vadd.f32 %v1227_v38, %v1141_v33  ;;  %v5063_v41 = vpop.f32.mrb[15].mxu1  ;;  %v5433_v47 = vld [vmem:[#allocation10 + $0x180] ss:$24 sps:$4 sm:$0xff]  }
 0x87f   :  { %1599 = vmatpush1.bf16.msra.mxu0 %v5433_v47 }
 0x880   :  { %v6348_v42 = vadd.f32 %v1228_v40, %v6327_v50  ;;  %1233 = vadd.xlane.f32.xlu0 %v6345_v39  ;;  %v1237_v43 = vmul.f32 %v6345_v39, %v6345_v39  ;;  %v5441_v50 = vld [vmem:[#allocation10 + $0x1b4] ss:$24 sps:$4 sm:$0xff]  }
 0x881   :  { %1600 = vmatprep.subr.bf16.mxu0 %v5441_v50 }
 0x882   :  { %1235 = vadd.xlane.f32.xlu1 %v6348_v42  ;;  %v1238_v51 = vmul.f32 %v6348_v42, %v6348_v42 }
 0x883   :  { %1601 = vmatpush1.bf16.msra.mxu0 %v5439_v55  ;;  %v1264_v55 = vrot.slane %v6308_v44, %v6277_v17 }
 0x884   :  { %1239 = vadd.xlane.f32.xlu0 %v1237_v43  ;;  %1602 = vmatprep.subr.bf16.mxu0 %v5447_v58 }
 0x886   :  { %1241 = vadd.xlane.f32.xlu1 %v1238_v51 }
 0x887   :  { %1603 = vmatpush1.bf16.msra.mxu0 %v5445_v59 }
 0x888   :  { %1604 = vmatprep.subr.bf16.mxu0 %v5453_v62 }
 0x88b   :  { %1605 = vmatpush1.bf16.msra.mxu0 %v5451_v63  ;;  %v1270_v63 = vrot.slane %v6308_v44, %v6361_v56  ;;  %v5487_v44 = vld [vmem:[#allocation10 + $0x1f0] ss:$24 sps:$4 sm:$0xff]  }
 0x88c   :  { %1606 = vmatprep.subr.bf16.mxu0 %v5459_v1  ;;  %v5486_v1 = vld [vmem:[#allocation10 + $0x1c4] ss:$24 sps:$4 sm:$0xff]  }
 0x88f   :  { %1607 = vmatpush1.bf16.msra.mxu0 %v5457_v29  ;;  %v5481_v29 = vld [vmem:[#allocation10 + $0x190] ss:$24 sps:$4 sm:$0xff]  }
 0x890   :  { %1608 = vmatprep.subr.bf16.mxu0 %v5465_v6  ;;  %v5490_v6 = vld [vmem:[#allocation10 + $0x220] ss:$24 sps:$4 sm:$0xff]  }
 0x893   :  { %1609 = vmatpush1.bf16.msra.mxu0 %v5463_v8  ;;  %v5493_v8 = vld [vmem:[#allocation10 + $0x250] ss:$24 sps:$4 sm:$0xff]  }
 0x894   :  { %1610 = vmatprep.subr.bf16.mxu0 %v5471_v10  ;;  %v5496_v10 = vld [vmem:[#allocation10 + $0x280] ss:$24 sps:$4 sm:$0xff]  }
 0x897   :  { %1611 = vmatpush1.bf16.msra.mxu0 %v5469_v20  ;;  %v5499_v20 = vld [vmem:[#allocation10 + $0x2b0] ss:$24 sps:$4 sm:$0xff]  }
 0x898   :  { %1612 = vmatprep.subr.bf16.mxu0 %v5477_v24  ;;  %v5502_v24 = vld [vmem:[#allocation10 + $0x2e0] ss:$24 sps:$4 sm:$0xff]  }
 0x89b   :  { %1613 = vmatpush1.bf16.msra.mxu0 %v5475_v26  ;;  %v1331_v26 = vrot.slane %v4645_v25, %v6226_v14 }
 0x89c   :  { %1684 = vmatprep.subr.bf16.mxu0 %v5483_v30 }
 0x90d   :  { %v1234_v31 = vpop.xlane.xlu0 %1233 }
 0x90e   :  { %v1243_v19 = vmul.f32 0.03125, %v1234_v31 }
 0x90f   :  { %v1236_v32 = vpop.xlane.xlu1 %1235 }
 0x910   :  { %v1244_v33 = vmul.f32 0.03125, %v1236_v32  ;;  %v1247_v36 = vmul.f32 %v1243_v19, %v1243_v19  ;;  %v1253_v50 = vsub.f32 %v6345_v39, %v1243_v19  ;;  %v1335_v19 = vrot.slane %v4645_v25, %v6233_v22 }
 0x911   :  { %v1240_v34 = vpop.xlane.xlu0 %1239  ;;  %v1343_v32 = vrot.slane %v4645_v25, %v6263_v49 }
 0x912   :  { %v1245_v37 = vmul.f32 0.03125, %v1240_v34  ;;  %v1248_v40 = vmul.f32 %v1244_v33, %v1244_v33  ;;  %v1254_v58 = vsub.f32 %v6348_v42, %v1244_v33  ;;  %v5484_v42 = vld [vmem:[#allocation10 + $0x1c0] ss:$24 sps:$4 sm:$0xff]  }
 0x913   :  { %v1242_v38 = vpop.xlane.xlu1 %1241 }
 0x914   :  { %v1249_v41 = vsub.f32 %v1245_v37, %v1247_v36  ;;  %v1246_v43 = vmul.f32 0.03125, %v1242_v38 }
 0x916   :  { %v1251_v51 = vmax.f32 %v1249_v41, 0.0  ;;  %v1250_v52 = vsub.f32 %v1246_v43, %v1248_v40 }
 0x918   :  { %v1255_v47 = vadd.f32 1e-12, %v1251_v51  ;;  %v1252_v53 = vmax.f32 %v1250_v52, 0.0 }
 0x91a   :  { %5725 = vrsqrt.f32 %v1255_v47  ;;  %v1256_v54 = vadd.f32 1e-12, %v1252_v53 }
 0x91c   :  { %5727 = vrsqrt.f32 %v1256_v54 }
 0x924   :  { %v5726_v57 = vpop.eup %5725 }
 0x925   :  { %v1259_v59 = vmul.f32 %v5726_v57, %v1253_v50 }
 0x926   :  { %v5728_v60 = vpop.eup %5727 }
 0x927   :  { %v1260_v61 = vmul.f32 %v5728_v60, %v1254_v58  ;;  %v1265_v62 = vmul.f32 %v1264_v55, %v1259_v59  ;;  %v1347_v60 = vrot.slane %v4645_v25, %v6274_v16 }
 0x929   :  { %v1266_v0 = vmul.f32 %v1264_v55, %v1260_v61  ;;  %v6366_v18 = vadd.f32 %v1270_v63, %v1265_v62  ;;  %v1351_v62 = vrot.slane %v4645_v25, %v6277_v17 }
 0x92b   :  { %v6368_v39 = vadd.f32 %v1270_v63, %v1266_v0 }
 0x92d   :  { %v1275_v13 = vpack.c.bf16 %v6368_v39, %v6366_v18 }
 0x92f   :  { %1631 = vmatmul.mubr.bf16.vlgmr.msra.gmra.mrb[24].mxu0 %v1275_v13  ;;  %1674 = vmatmul.mubr.bf16.vlgmr.msra.gmra.mrb[16].mxu1 %v1275_v13 }
 0x930   :  { %1685 = vmatpush1.bf16.msra.mxu0 %v5481_v29  ;;  %1716 = vmatprep.mubr.bf16.mxu0 %v6018_v48 }
 0x931   :  { %1686 = vmatprep.subr.bf16.mxu0 %v5486_v1  ;;  %5066 = vmatprep.mubr.msk.bf16.mxu1 %vm6020_vm1, %v6019_v45 }
 0x934   :  { %1687 = vmatpush1.bf16.msra.mxu0 %v5484_v42 }
 0x935   :  { %1688 = vmatprep.subr.bf16.mxu0 %v5489_v2 }
 0x938   :  { %1689 = vmatpush1.bf16.msra.mxu0 %v5487_v44 }
 0x939   :  { %1690 = vmatprep.subr.bf16.mxu0 %v5492_v4 }
 0x93c   :  { %1691 = vmatpush1.bf16.msra.mxu0 %v5490_v6 }
 0x93d   :  { %1692 = vmatprep.subr.bf16.mxu0 %v5495_v7 }
 0x940   :  { %1693 = vmatpush1.bf16.msra.mxu0 %v5493_v8 }
 0x941   :  { %1694 = vmatprep.subr.bf16.mxu0 %v5498_v9 }
 0x944   :  { %1695 = vmatpush1.bf16.msra.mxu0 %v5496_v10 }
 0x945   :  { %1696 = vmatprep.subr.bf16.mxu0 %v5501_v15 }
 0x948   :  { %1697 = vmatpush1.bf16.msra.mxu0 %v5499_v20 }
 0x949   :  { %1698 = vmatprep.subr.bf16.mxu0 %v5504_v23 }
 0x94c   :  { %1699 = vmatpush1.bf16.msra.mxu0 %v5502_v24 }
 0x94d   :  { %5088 = vmatprep.subr.bf16.mxu0 %v6019_v45 }
 0x94f   :  { %1717 = vmatmul.mubr.bf16.vlgmr.msra.gmra.mrb[28].mxu0 %v1275_v13 }
 0x950   :  { %5104 = vmatprep.mubr.msk.bf16.mxu0 %vm6020_vm1, %v6019_v45 }
 0xa02   :  { %v1632_v30 = vpop.f32.mrb[24].mxu0  ;;  %v1675_v31 = vpop.f32.mrb[16].mxu1 }
 0xa03   :  { %v1634_v33 = vpop.f32.mrb[25].mxu0  ;;  %v1677_v34 = vpop.f32.mrb[17].mxu1  ;;  %v1633_v38 = vadd.f32 %v1632_v30, %v1331_v26  ;;  %v6385_v40 = vadd.f32 %v1675_v31, %v1339_v28 }
 0xa04   :  { %v1636_v36 = vpop.f32.mrb[26].mxu0  ;;  %v1679_v37 = vpop.f32.mrb[18].mxu1  ;;  %v1635_v47 = vadd.f32 %v1634_v33, %v1335_v19  ;;  %v1678_v53 = vadd.f32 %v1677_v34, %v1343_v32 }
 0xa05   :  { %v1637_v41 = vadd.f32 %v1636_v36, %v1331_v26  ;;  %v6387_v43 = vadd.f32 %v1679_v37, %v1339_v28  ;;  %v1638_v51 = vpop.f32.mrb[27].mxu0  ;;  %v1681_v52 = vpop.f32.mrb[19].mxu1 }
 0xa06   :  { %v1639_v54 = vadd.f32 %v1638_v51, %v1335_v19  ;;  %v1682_v50 = vadd.f32 %v1681_v52, %v1343_v32 }
 0xa07   :  { %v1727_v55 = vpack.c.bf16 %v1637_v41, %v1633_v38  ;;  %v1729_v57 = vpack.c.bf16 %v6387_v43, %v6385_v40 }
 0xa08   :  { %v1728_v58 = vpack.c.bf16 %v1639_v54, %v1635_v47  ;;  %v1794_v59 = vpack.c.bf16 %v1682_v50, %v1678_v53 }
 0xa0a   :  { %5065 = vmatpush3.bf16.xpose.msra.mxu1 %v1728_v58 }
 0xa0b   :  { %5070 = vmatprep.subr.bf16.mxu1 %v6019_v45 }
 0xa11   :  { %5067 = vmatmul.mubr.bf16.vlgmr.msra.gmra.mrb[20].mxu1 %v1727_v55 }
 0xa12   :  { %5072 = vmatprep.mubr.msk.bf16.mxu1 %vm6020_vm1, %v6019_v45 }
 0xa22   :  { %v1718_v61 = vpop.f32.mrb[28].mxu0 }
 0xa23   :  { %v1720_v63 = vpop.f32.mrb[29].mxu0  ;;  %v1719_v29 = vadd.f32 %v1718_v61, %v1347_v60 }
 0xa24   :  { %v1722_v0 = vpop.f32.mrb[30].mxu0  ;;  %v1721_v42 = vadd.f32 %v1720_v63, %v1351_v62 }
 0xa25   :  { %v1723_v13 = vadd.f32 %v1722_v0, %v1347_v60  ;;  %v1724_v1 = vpop.f32.mrb[31].mxu0 }
 0xa26   :  { %v1725_v2 = vadd.f32 %v1724_v1, %v1351_v62 }
 0xa27   :  { %v1795_v44 = vpack.c.bf16 %v1723_v13, %v1719_v29 }
 0xa28   :  { %v1796_v4 = vpack.c.bf16 %v1725_v2, %v1721_v42 }
 0xa29   :  { %5071 = vmatpush3.bf16.xpose.msra.mxu1 %v1795_v44 }
 0xa2a   :  { %5076 = vmatprep.subr.bf16.mxu1 %v6019_v45 }
 0xa30   :  { %5073 = vmatmul.mubr.bf16.vlgmr.msra.gmra.mrb[24].mxu1 %v1794_v59 }
 0xa31   :  { %5077 = vmatpush3.bf16.msra.mxu1 %v1796_v4  ;;  %5078 = vmatprep.mubr.msk.bf16.mxu1 %vm6020_vm1, %v6019_v45 }
 0xa32   :  { %5082 = vmatprep.subr.bf16.mxu1 %v6019_v45 }
 0xae4   :  { %v1764_v6 = vpop.f32.mrb[20].mxu1 }
 0xae5   :  { %v5068_v7 = vpop.f32.mrb[21].mxu1  ;;  %v1765_v24 = vadd.f32 %v6288_v35, %v1764_v6 }
 0xae6   :  { %v1767_v8 = vpop.f32.mrb[22].mxu1 }
 0xae7   :  { %v5069_v9 = vpop.f32.mrb[23].mxu1  ;;  %v1768_v30 = vadd.f32 %v6288_v35, %v1767_v8  ;;  %v1771_v19 = vsel %vm766_vm2, %v1765_v24, -inf }
 0xae9   :  { %v1774_v32 = vsel %vm766_vm2, %v1768_v30, -inf }
 0xb03   :  { %v1831_v10 = vpop.f32.mrb[24].mxu1 }
 0xb04   :  { %v1832_v15 = vadd.f32 %v6288_v35, %v1831_v10  ;;  %v5074_v20 = vpop.f32.mrb[25].mxu1 }
 0xb05   :  { %v1834_v23 = vpop.f32.mrb[26].mxu1 }
 0xb06   :  { %v1835_v25 = vadd.f32 %v6288_v35, %v1834_v23  ;;  %v5075_v26 = vpop.f32.mrb[27].mxu1  ;;  %v1838_v28 = vsel %vm766_vm2, %v1832_v15, -inf }
 0xb07   :  { %1839 = vmax.xlane.f32.xlu0 %v1838_v28  ;;  %v6422_v26 = vld [vmem:[#allocation11 + $0x10] sm:$0xff] }
 0xb08   :  { %v1841_v31 = vsel %vm766_vm2, %v1835_v25, -inf  ;;  %v1952_v40 = vrot.slane %v6422_v26, %v6226_v14 }
 0xb09   :  { %1842 = vmax.xlane.f32.xlu1 %v1841_v31 }
 0xb0b   :  { %1772 = vmax.xlane.f32.xlu0 %v1771_v19 }
 0xb0d   :  { %1775 = vmax.xlane.f32.xlu1 %v1774_v32 }
 0xb94   :  { %v1840_v33 = vpop.xlane.xlu0 %1839 }
 0xb95   :  { %v1844_v34 = vsub.f32 %v1832_v15, %v1840_v33 }
 0xb96   :  { %v1843_v36 = vpop.xlane.xlu1 %1842 }
 0xb97   :  { %v1846_v37 = vmul.f32 1.442695, %v1844_v34  ;;  %v1845_v38 = vsub.f32 %v1835_v25, %v1843_v36 }
 0xb98   :  { %v1773_v41 = vpop.xlane.xlu0 %1772 }
 0xb99   :  { %5729 = vpow2.f32 %v1846_v37  ;;  %v1848_v51 = vmul.f32 1.442695, %v1845_v38  ;;  %v1777_v52 = vsub.f32 %v1765_v24, %v1773_v41  ;;  %v5505_v41 = vld [vmem:[#allocation13 + $0x80] sm:$0xff]  }
 0xb9a   :  { %v1776_v47 = vpop.xlane.xlu1 %1775  ;;  %5089 = vmatpush3.bf16.msra.mxu0 %v5505_v41 }
 0xb9b   :  { %5731 = vpow2.f32 %v1848_v51  ;;  %v1779_v35 = vmul.f32 1.442695, %v1777_v52  ;;  %v1778_v53 = vsub.f32 %v1768_v30, %v1776_v47  ;;  %5090 = vmatprep.subr.bf16.mxu0 %v6019_v45  ;;  %v5506_v51 = vld [vmem:[#allocation13 + $0x88] sm:$0xff]   ;;  %v5507_v52 = vld [vmem:[#allocation13 + $0x90] sm:$0xff]  }
 0xb9c   :  { %v5510_v47 = vld [vmem:[#allocation13 + $0xa8] sm:$0xff]  }
 0xb9d   :  { %5733 = vpow2.f32 %v1779_v35  ;;  %v1781_v54 = vmul.f32 1.442695, %v1778_v53  ;;  %v5511_v35 = vld [vmem:[#allocation13 + $0xb0] sm:$0xff]   ;;  %v5512_v53 = vld [vmem:[#allocation13 + $0xb8] sm:$0xff]  }
 0xb9e   :  { %5091 = vmatpush3.bf16.msra.mxu0 %v5506_v51 }
 0xb9f   :  { %5735 = vpow2.f32 %v1781_v54  ;;  %5092 = vmatprep.subr.bf16.mxu0 %v6019_v45 }
 0xba2   :  { %5093 = vmatpush3.bf16.msra.mxu0 %v5507_v52 }
 0xba3   :  { %v5730_v50 = vpop.eup %5729  ;;  %5094 = vmatprep.subr.bf16.mxu0 %v6019_v45 }
 0xba4   :  { %v1850_v55 = vsel %vm766_vm2, %v5730_v50, 0.0 }
 0xba5   :  { %v5732_v58 = vpop.eup %5731  ;;  %1851 = vadd.xlane.f32.xlu0 %v1850_v55 }
 0xba6   :  { %v1853_v59 = vsel %vm766_vm2, %v5732_v58, 0.0 }
 0xba7   :  { %v5734_v60 = vpop.eup %5733  ;;  %1854 = vadd.xlane.f32.xlu1 %v1853_v59 }
 0xba8   :  { %v1783_v61 = vsel %vm766_vm2, %v5734_v60, 0.0 }
 0xba9   :  { %v5736_v62 = vpop.eup %5735  ;;  %1784 = vadd.xlane.f32.xlu0 %v1783_v61 }
 0xbaa   :  { %v1786_v63 = vsel %vm766_vm2, %v5736_v62, 0.0 }
 0xbab   :  { %1787 = vadd.xlane.f32.xlu1 %v1786_v63 }
 0xc32   :  { %v1852_v0 = vpop.xlane.xlu0 %1851 }
 0xc33   :  { %5737 = vrcp.f32 %v1852_v0 }
 0xc34   :  { %v1855_v29 = vpop.xlane.xlu1 %1854 }
 0xc35   :  { %5739 = vrcp.f32 %v1855_v29 }
 0xc36   :  { %v1785_v13 = vpop.xlane.xlu0 %1784 }
 0xc38   :  { %v1788_v1 = vpop.xlane.xlu1 %1787 }
 0xc39   :  { %5741 = vrcp.f32 %v1788_v1 }
 0xc3a   :  { %5743 = vrcp.f32 %v1785_v13 }
 0xc3d   :  { %v5738_v42 = vpop.eup %5737 }
 0xc3e   :  { %v1858_v44 = vmul.f32 %v5738_v42, %v5730_v50 }
 0xc3f   :  { %v5740_v2 = vpop.eup %5739 }
 0xc40   :  { %v1859_v4 = vmul.f32 %v5740_v2, %v5732_v58 }
 0xc42   :  { %v1860_v6 = vpack.c.bf16 %v1859_v4, %v1858_v44 }
 0xc43   :  { %v5742_v7 = vpop.eup %5741 }
 0xc44   :  { %5079 = vmatmul.mubr.msk.bf16.vlgmr.msra.gmra.mrb[28].mxu1 %vm766_vm2, %v1860_v6  ;;  %v5744_v8 = vpop.eup %5743  ;;  %v1792_v9 = vmul.f32 %v5742_v7, %v5736_v62  ;;  %v1988_v6 = vrot.slane %v6422_v26, %v6233_v22 }
 0xc45   :  { %5083 = vmatpush3.bf16.msra.mxu1 %v1729_v57  ;;  %5084 = vmatprep.mubr.msk.bf16.mxu1 %vm6020_vm1, %v6019_v45  ;;  %v1791_v10 = vmul.f32 %v5744_v8, %v5734_v60 }
 0xc46   :  { %5108 = vmatprep.subr.bf16.mxu1 %v6019_v45 }
 0xc47   :  { %v1793_v15 = vpack.c.bf16 %v1792_v9, %v1791_v10 }
 0xc4c   :  { %5085 = vmatmul.mubr.msk.bf16.vlgmr.msra.gmra.mrb[32].mxu1 %vm766_vm2, %v1793_v15 }
 0xc4d   :  { %5124 = vmatprep.mubr.msk.bf16.mxu1 %vm6020_vm1, %v6019_v45 }
 0xd17   :  { %v1898_v20 = vpop.f32.mrb[28].mxu1 }
 0xd18   :  { %v5080_v23 = vpop.f32.mrb[29].mxu1 }
 0xd19   :  { %v1901_v24 = vpop.f32.mrb[30].mxu1  ;;  %v1994_v23 = vrot.slane %v6422_v26, %v6257_v46 }
 0xd1a   :  { %v5081_v25 = vpop.f32.mrb[31].mxu1 }
 0xd1f   :  { %v1942_v43 = vpop.f32.mrb[32].mxu1 }
 0xd20   :  { %v1943_v57 = vadd.f32 %v1942_v43, %v1898_v20  ;;  %v5086_v28 = vpop.f32.mrb[33].mxu1 }
 0xd21   :  { %v1945_v30 = vpop.f32.mrb[34].mxu1  ;;  %v5514_v28 = vld [vmem:[#allocation13 + $0xc8] sm:$0xff]  }
 0xd22   :  { %v1953_v31 = vadd.f32 %v1952_v40, %v1943_v57  ;;  %v1946_v19 = vadd.f32 %v1945_v30, %v1901_v24  ;;  %v5087_v32 = vpop.f32.mrb[35].mxu1  ;;  %v5513_v57 = vld [vmem:[#allocation13 + $0xc0] sm:$0xff]   ;;  %v5515_v30 = vld [vmem:[#allocation13 + $0xd0] sm:$0xff]  }
 0xd23   :  { %5109 = vmatpush3.bf16.msra.mxu1 %v5513_v57  ;;  %v5518_v32 = vld [vmem:[#allocation13 + $0xe8] sm:$0xff]   ;;  %v5818_v57 = vld [vmem:[#allocation8] sm:$0xff] }
 0xd24   :  { %v1954_v33 = vadd.f32 %v1952_v40, %v1946_v19  ;;  %v1955_v34 = vadd.f32 %v1953_v31, %v6366_v18  ;;  %v5508_v18 = vld [vmem:[#allocation13 + $0x98] sm:$0xff]   ;;  %5110 = vmatprep.subr.bf16.mxu1 %v6019_v45  ;;  %v5517_v19 = vld [vmem:[#allocation13 + $0xe0] sm:$0xff]  }
 0xd25   :  { %5095 = vmatpush3.bf16.msra.mxu0 %v5508_v18  ;;  %v5516_v31 = vld [vmem:[#allocation13 + $0xd8] sm:$0xff]  }
 0xd26   :  { %1957 = vadd.xlane.f32.xlu0 %v1955_v34  ;;  %v1956_v36 = vadd.f32 %v1954_v33, %v6368_v39  ;;  %v1961_v37 = vmul.f32 %v1955_v34, %v1955_v34  ;;  %v5509_v39 = vld [vmem:[#allocation13 + $0xa0] sm:$0xff]   ;;  %5096 = vmatprep.subr.bf16.mxu0 %v6019_v45  ;;  %v5519_v33 = vld [vmem:[#allocation13 + $0xf0] sm:$0xff]  }
 0xd27   :  { %5111 = vmatpush3.bf16.msra.mxu1 %v5514_v28 }
 0xd28   :  { %1959 = vadd.xlane.f32.xlu1 %v1956_v36  ;;  %v1962_v38 = vmul.f32 %v1956_v36, %v1956_v36  ;;  %5112 = vmatprep.subr.bf16.mxu1 %v6019_v45 }
 0xd29   :  { %5097 = vmatpush3.bf16.msra.mxu0 %v5509_v39 }
 0xd2a   :  { %1963 = vadd.xlane.f32.xlu0 %v1961_v37  ;;  %5098 = vmatprep.subr.bf16.mxu0 %v6019_v45 }
 0xd2b   :  { %5113 = vmatpush3.bf16.msra.mxu1 %v5515_v30 }
 0xd2c   :  { %1965 = vadd.xlane.f32.xlu1 %v1962_v38  ;;  %5114 = vmatprep.subr.bf16.mxu1 %v6019_v45 }
 0xd2d   :  { %5099 = vmatpush3.bf16.msra.mxu0 %v5510_v47 }
 0xd2e   :  { %5100 = vmatprep.subr.bf16.mxu0 %v6019_v45 }
 0xd2f   :  { %5115 = vmatpush3.bf16.msra.mxu1 %v5516_v31  ;;  %v5523_v31 = vld [vmem:[#allocation10 + $0xc] ss:$24 sps:$4 sm:$0xff]  }
 0xd30   :  { %5116 = vmatprep.subr.bf16.mxu1 %v6019_v45 }
 0xd31   :  { %5101 = vmatpush3.bf16.msra.mxu0 %v5511_v35 }
 0xd32   :  { %5102 = vmatprep.subr.bf16.mxu0 %v6019_v45 }
 0xd33   :  { %5117 = vmatpush3.bf16.msra.mxu1 %v5517_v19  ;;  %v5521_v19 = vld [vmem:[#allocation10 + $0x8] ss:$24 sps:$4 sm:$0xff]  }
 0xd34   :  { %5118 = vmatprep.subr.bf16.mxu1 %v6019_v45 }
 0xd35   :  { %5103 = vmatpush3.bf16.msra.mxu0 %v5512_v53 }
 0xd37   :  { %5119 = vmatpush3.bf16.msra.mxu1 %v5518_v32  ;;  %v5526_v32 = vld [vmem:[#allocation10 + $0x3c] ss:$24 sps:$4 sm:$0xff]  }
 0xd38   :  { %5120 = vmatprep.subr.bf16.mxu1 %v6019_v45 }
 0xd3b   :  { %5121 = vmatpush3.bf16.msra.mxu1 %v5519_v33  ;;  %v5524_v33 = vld [vmem:[#allocation10 + $0x38] ss:$24 sps:$4 sm:$0xff]  }
 0xd3c   :  { %5122 = vmatprep.subr.bf16.mxu1 %v6019_v45 }
 0xdb3   :  { %v1958_v54 = vpop.xlane.xlu0 %1957 }
 0xdb4   :  { %v1967_v50 = vmul.f32 0.03125, %v1958_v54 }
 0xdb5   :  { %v1960_v55 = vpop.xlane.xlu1 %1959 }
 0xdb6   :  { %v1968_v58 = vmul.f32 0.03125, %v1960_v55  ;;  %v1971_v60 = vmul.f32 %v1967_v50, %v1967_v50  ;;  %v1977_v4 = vsub.f32 %v1955_v34, %v1967_v50  ;;  %v5520_v34 = vld [vmem:[#allocation13 + $0xf8] sm:$0xff]  }
 0xdb7   :  { %v1964_v59 = vpop.xlane.xlu0 %1963  ;;  %5123 = vmatpush3.bf16.msra.mxu1 %v5520_v34  ;;  %v5529_v34 = vld [vmem:[#allocation10 + $0x6c] ss:$24 sps:$4 sm:$0xff]  }
 0xdb8   :  { %v1969_v61 = vmul.f32 0.03125, %v1964_v59  ;;  %v1972_v63 = vmul.f32 %v1968_v58, %v1968_v58  ;;  %v1978_v8 = vsub.f32 %v1956_v36, %v1968_v58  ;;  %5309 = vmatprep.subr.bf16.mxu1 %v6193_v3  ;;  %v2034_v36 = vrot.slane %v6422_v26, %v6263_v49 }
 0xdb9   :  { %v1966_v62 = vpop.xlane.xlu1 %1965 }
 0xdba   :  { %v1973_v0 = vsub.f32 %v1969_v61, %v1971_v60  ;;  %v1970_v29 = vmul.f32 0.03125, %v1966_v62 }
 0xdbc   :  { %v1975_v13 = vmax.f32 %v1973_v0, 0.0  ;;  %v1974_v1 = vsub.f32 %v1970_v29, %v1972_v63 }
 0xdbe   :  { %v1979_v42 = vadd.f32 1e-12, %v1975_v13  ;;  %v1976_v2 = vmax.f32 %v1974_v1, 0.0 }
 0xdc0   :  { %5745 = vrsqrt.f32 %v1979_v42  ;;  %v1980_v44 = vadd.f32 1e-12, %v1976_v2 }
 0xdc2   :  { %5747 = vrsqrt.f32 %v1980_v44  ;;  %v2354_v44 = vld [vmem:[#allocation2 + $0x10] sm:$0xff] }
 0xdca   :  { %v5746_v7 = vpop.eup %5745 }
 0xdcb   :  { %v1983_v9 = vmul.f32 %v5746_v7, %v1977_v4  ;;  %v2355_v4 = vld [vmem:[#allocation2 + $0x18] sm:$0xff] }
 0xdcc   :  { %v5748_v10 = vpop.eup %5747 }
 0xdcd   :  { %v1984_v15 = vmul.f32 %v5748_v10, %v1978_v8  ;;  %v1989_v20 = vmul.f32 %v1988_v6, %v1983_v9 }
 0xdcf   :  { %v1990_v24 = vmul.f32 %v1988_v6, %v1984_v15  ;;  %v6439_v25 = vadd.f32 %v1994_v23, %v1989_v20 }
 0xdd1   :  { %v6441_v40 = vadd.f32 %v1994_v23, %v1990_v24  ;;  %v5817_v24 = vld [vmem:[#allocation8 + $0x8] sm:$0xff] }
 0xdd3   :  { %v2030_v43 = vpack.c.bf16 %v6441_v40, %v6439_v25 }
 0xdd5   :  { %5105 = vmatmul.mubr.bf16.vlgmr.msra.gmra.mrb[32].mxu0 %v2030_v43 }
 0xdd6   :  { %5132 = vmatprep.mubr.msk.f32.mxu0 %vm6020_vm1, %v6019_v45 }
 0xea8   :  { %v2117_v37 = vpop.f32.mrb[32].mxu0 }
 0xea9   :  { %v2118_v38 = vadd.f32 %v2117_v37, %v2034_v36  ;;  %v5106_v41 = vpop.f32.mrb[33].mxu0  ;;  %v5532_v37 = vld [vmem:[#allocation10 + $0x9c] ss:$24 sps:$4 sm:$0xff]  }
 0xeaa   :  { %v2120_v51 = vpop.f32.mrb[34].mxu0  ;;  %v5533_v41 = vld [vmem:[#allocation10 + $0xc8] ss:$24 sps:$4 sm:$0xff]  }
 0xeab   :  { %v2126_v52 = vmul.f32 0.044715, %v2118_v38  ;;  %v2121_v18 = vadd.f32 %v2120_v51, %v2034_v36  ;;  %v5107_v39 = vpop.f32.mrb[35].mxu0  ;;  %v2124_v0 = vmul.f32 0.5, %v2118_v38  ;;  %v5527_v36 = vld [vmem:[#allocation10 + $0x68] ss:$24 sps:$4 sm:$0xff]  }
 0xeac   :  { %v5535_v51 = vld [vmem:[#allocation10 + $0xcc] ss:$24 sps:$4 sm:$0xff]   ;;  %v5536_v39 = vld [vmem:[#allocation10 + $0xf8] ss:$24 sps:$4 sm:$0xff]  }
 0xead   :  { %v2128_v47 = vmul.f32 %v2126_v52, %v2118_v38  ;;  %v2127_v35 = vmul.f32 0.044715, %v2121_v18  ;;  %v2125_v29 = vmul.f32 0.5, %v2121_v18  ;;  %v6021_v52 = vmov 0.0|0.0  }
 0xeae   :  { %5305 = vmatprep.subr.bf16.mxu0 %v6021_v52 }
 0xeaf   :  { %v2130_v53 = vmul.f32 %v2128_v47, %v2118_v38  ;;  %v2129_v54 = vmul.f32 %v2127_v35, %v2121_v18  ;;  %v5544_v47 = vld [vmem:[#allocation10 + $0x12c] ss:$24 sps:$4 sm:$0xff]   ;;  %v5542_v35 = vld [vmem:[#allocation10 + $0x128] ss:$24 sps:$4 sm:$0xff]  }
 0xeb1   :  { %v2132_v50 = vadd.f32 %v2130_v53, %v2118_v38  ;;  %v2131_v55 = vmul.f32 %v2129_v54, %v2121_v18  ;;  %v5530_v38 = vld [vmem:[#allocation10 + $0x98] ss:$24 sps:$4 sm:$0xff]   ;;  %v5550_v53 = vld [vmem:[#allocation10 + $0x15c] ss:$24 sps:$4 sm:$0xff]  }
 0xeb2   :  { %v5548_v54 = vld [vmem:[#allocation10 + $0x158] ss:$24 sps:$4 sm:$0xff]  }
 0xeb3   :  { %v2134_v58 = vmul.f32 0.7978846, %v2132_v50  ;;  %v2133_v59 = vadd.f32 %v2131_v55, %v2121_v18  ;;  %v5538_v18 = vld [vmem:[#allocation10 + $0xfc] ss:$24 sps:$4 sm:$0xff]  }
 0xeb5   :  { %5749 = vtanh.f32 %v2134_v58  ;;  %v2135_v60 = vmul.f32 0.7978846, %v2133_v59 }
 0xeb7   :  { %5751 = vtanh.f32 %v2135_v60 }
 0xebf   :  { %v5750_v61 = vpop.eup %5749 }
 0xec0   :  { %v2138_v62 = vadd.f32 1.0, %v5750_v61 }
 0xec1   :  { %v5752_v63 = vpop.eup %5751 }
 0xec2   :  { %v2139_v13 = vadd.f32 1.0, %v5752_v63  ;;  %v2140_v1 = vmul.f32 %v2138_v62, %v2124_v0 }
 0xec4   :  { %v2141_v42 = vmul.f32 %v2139_v13, %v2125_v29 }
 0xec6   :  { %v2142_v2 = vpack.c.bf16 %v2141_v42, %v2140_v1 }
 0xec8   :  { %5125 = vmatmul.mubr.bf16.vlgmr.msra.gmra.mrb[36].mxu1 %v2142_v2 }
 0xec9   :  { %5311 = vmatpush3.bf16.msra.mxu1 %v6193_v3  ;;  %5151 = vmatprep.mubr.msk.f32.mxu1 %vm143_vm0, %v2354_v44  ;;  %v2146_v3 = vrot.slane %v6422_v26, %v6274_v16 }
 0xeca   :  { %5313 = vmatprep.subr.bf16.mxu1 %v6195_v5 }
 0xecd   :  { %5315 = vmatpush3.bf16.msra.mxu1 %v6195_v5 }
 0xece   :  { %5317 = vmatprep.subr.bf16.mxu1 %v6201_v11 }
 0xed1   :  { %5319 = vmatpush3.bf16.msra.mxu1 %v6201_v11 }
 0xed2   :  { %5321 = vmatprep.subr.bf16.mxu1 %v6205_v12 }
 0xed5   :  { %5323 = vmatpush3.bf16.msra.mxu1 %v6205_v12 }
 0xed6   :  { %2842 = vmatprep.subr.bf16.mxu1 %v5523_v31 }
 0xed8   :  { %5152 = vmatmul.mubr.msk.f32.vlgmr.msra.gmra.mrb[40].mxu1 %vm143_vm0, %v2355_v4 }
 0xed9   :  { %2874 = vmatprep.mubr.bf16.mxu1 %v6018_v48  ;;  %2843 = vmatpush1.bf16.msra.mxu1 %v5521_v19 }
 0xeda   :  { %2844 = vmatprep.subr.bf16.mxu1 %v5526_v32 }
 0xedd   :  { %2845 = vmatpush1.bf16.msra.mxu1 %v5524_v33 }
 0xede   :  { %2846 = vmatprep.subr.bf16.mxu1 %v5529_v34 }
 0xee1   :  { %2847 = vmatpush1.bf16.msra.mxu1 %v5527_v36 }
 0xee2   :  { %2848 = vmatprep.subr.bf16.mxu1 %v5532_v37 }
 0xee5   :  { %2849 = vmatpush1.bf16.msra.mxu1 %v5530_v38 }
 0xee6   :  { %2850 = vmatprep.subr.bf16.mxu1 %v5535_v51  ;;  %v2275_v51 = vrot.slane %v6422_v26, %v6361_v56 }
 0xee9   :  { %2851 = vmatpush1.bf16.msra.mxu1 %v5533_v41 }
 0xeea   :  { %2852 = vmatprep.subr.bf16.mxu1 %v5538_v18 }
 0xeed   :  { %2853 = vmatpush1.bf16.msra.mxu1 %v5536_v39 }
 0xeee   :  { %2854 = vmatprep.subr.bf16.mxu1 %v5544_v47  ;;  %v5541_v47 = vld [vmem:[#allocation10 + $0x4] ss:$24 sps:$4 sm:$0xff]  }
 0xef1   :  { %2855 = vmatpush1.bf16.msra.mxu1 %v5542_v35 }
 0xef2   :  { %2856 = vmatprep.subr.bf16.mxu1 %v5550_v53  ;;  %v2278_v53 = vld [vmem:[#allocation5] sm:$0xff] }
 0xef5   :  { %2857 = vmatpush1.bf16.msra.mxu1 %v5548_v54  ;;  %v5547_v54 = vld [vmem:[#allocation10 + $0x34] ss:$24 sps:$4 sm:$0xff]  }
 0xef6   :  { %5154 = vmatprep.subr.bf16.mxu1 %v6019_v45 }
 0xf9b   :  { %v2229_v6 = vpop.f32.mrb[36].mxu1 }
 0xf9c   :  { %v2230_v7 = vadd.f32 %v2229_v6, %v2146_v3  ;;  %v5126_v8 = vpop.f32.mrb[37].mxu1 }
 0xf9d   :  { %v2232_v5 = vpop.f32.mrb[38].mxu1 }
 0xf9e   :  { %v6470_v9 = vadd.f32 %v2230_v7, %v6439_v25  ;;  %v2233_v11 = vadd.f32 %v2232_v5, %v2146_v3  ;;  %v5127_v10 = vpop.f32.mrb[39].mxu1 }
 0xfa0   :  { %v6473_v15 = vadd.f32 %v2233_v11, %v6441_v40  ;;  %2238 = vadd.xlane.f32.xlu0 %v6470_v9  ;;  %v2242_v12 = vmul.f32 %v6470_v9, %v6470_v9 }
 0xfa2   :  { %2240 = vadd.xlane.f32.xlu1 %v6473_v15  ;;  %v2243_v20 = vmul.f32 %v6473_v15, %v6473_v15 }
 0xfa4   :  { %2244 = vadd.xlane.f32.xlu0 %v2242_v12 }
 0xfa6   :  { %2246 = vadd.xlane.f32.xlu1 %v2243_v20 }
 0xfab   :  { %v5153_v23 = vpop.f32.mrb[40].mxu1 }
 0xfac   :  { %v6481_v25 = vadd.f32 %v5817_v24, %v5153_v23  ;;  %v2428_v43 = vpop.f32.mrb[41].mxu1 }
 0xfad   :  { %v6483_v40 = vadd.f32 %v5818_v57, %v2428_v43 }
 0xfae   :  { %2439 = vadd.xlane.f32.xlu1 %v6481_v25  ;;  %v2442_v28 = vmul.f32 %v6481_v25, %v6481_v25 }
 0xfaf   :  { %2437 = vadd.xlane.f32.xlu0 %v6483_v40  ;;  %v2441_v30 = vmul.f32 %v6483_v40, %v6483_v40 }
 0xfb2   :  { %2445 = vadd.xlane.f32.xlu1 %v2442_v28  ;;  %v2269_v28 = vrot.slane %v6422_v26, %v6277_v17 }
 0xfb3   :  { %2443 = vadd.xlane.f32.xlu0 %v2441_v30 }
0x102d   :  { %v2239_v50 = vpop.xlane.xlu0 %2238 }
0x102e   :  { %v2248_v55 = vmul.f32 0.03125, %v2239_v50 }
0x102f   :  { %v2241_v58 = vpop.xlane.xlu1 %2240 }
0x1030   :  { %v2249_v59 = vmul.f32 0.03125, %v2241_v58  ;;  %v2252_v61 = vmul.f32 %v2248_v55, %v2248_v55  ;;  %v2258_v43 = vsub.f32 %v6470_v9, %v2248_v55 }
0x1031   :  { %v2245_v60 = vpop.xlane.xlu0 %2244 }
0x1032   :  { %v2250_v62 = vmul.f32 0.03125, %v2245_v60  ;;  %v2253_v0 = vmul.f32 %v2249_v59, %v2249_v59  ;;  %v2259_v19 = vsub.f32 %v6473_v15, %v2249_v59  ;;  %v5539_v15 = vld [vmem:[#allocation10] ss:$24 sps:$4 sm:$0xff]   ;;  %v5545_v59 = vld [vmem:[#allocation10 + $0x30] ss:$24 sps:$4 sm:$0xff]  }
0x1033   :  { %v2247_v63 = vpop.xlane.xlu1 %2246 }
0x1034   :  { %v2254_v29 = vsub.f32 %v2250_v62, %v2252_v61  ;;  %v2251_v13 = vmul.f32 0.03125, %v2247_v63  ;;  %v5553_v61 = vld [vmem:[#allocation10 + $0x64] ss:$24 sps:$4 sm:$0xff]  }
0x1036   :  { %v2256_v1 = vmax.f32 %v2254_v29, 0.0  ;;  %v2255_v42 = vsub.f32 %v2251_v13, %v2253_v0  ;;  %v5556_v13 = vld [vmem:[#allocation10 + $0x94] ss:$24 sps:$4 sm:$0xff]  }
0x1038   :  { %v2260_v2 = vadd.f32 1e-12, %v2256_v1  ;;  %v2257_v44 = vmax.f32 %v2255_v42, 0.0  ;;  %v5554_v42 = vld [vmem:[#allocation10 + $0x90] ss:$24 sps:$4 sm:$0xff]  }
0x103a   :  { %5753 = vrsqrt.f32 %v2260_v2  ;;  %v2261_v4 = vadd.f32 1e-12, %v2257_v44  ;;  %v5559_v2 = vld [vmem:[#allocation10 + $0xc4] ss:$24 sps:$4 sm:$0xff]   ;;  %v5562_v44 = vld [vmem:[#allocation10 + $0xf4] ss:$24 sps:$4 sm:$0xff]  }
0x103b   :  { %v2440_v3 = vpop.xlane.xlu1 %2439 }
0x103c   :  { %5755 = vrsqrt.f32 %v2261_v4  ;;  %v2448_v6 = vmul.f32 0.03125, %v2440_v3  ;;  %v2438_v7 = vpop.xlane.xlu0 %2437  ;;  %v5560_v4 = vld [vmem:[#allocation10 + $0xf0] ss:$24 sps:$4 sm:$0xff]   ;;  %v5563_v3 = vld [vmem:[#allocation10 + $0x120] ss:$24 sps:$4 sm:$0xff]  }
0x103d   :  { %v2447_v8 = vmul.f32 0.03125, %v2438_v7  ;;  %v5566_v7 = vld [vmem:[#allocation10 + $0x150] ss:$24 sps:$4 sm:$0xff]  }
0x103e   :  { %v2452_v5 = vmul.f32 %v2448_v6, %v2448_v6  ;;  %v2458_v50 = vsub.f32 %v6481_v25, %v2448_v6  ;;  %v5551_v25 = vld [vmem:[#allocation10 + $0x60] ss:$24 sps:$4 sm:$0xff]   ;;  %v5568_v6 = vld [vmem:[#allocation10 + $0x154] ss:$24 sps:$4 sm:$0xff]  }
0x103f   :  { %v2451_v11 = vmul.f32 %v2447_v8, %v2447_v8  ;;  %v2446_v10 = vpop.xlane.xlu1 %2445  ;;  %v2457_v58 = vsub.f32 %v6483_v40, %v2447_v8  ;;  %v5571_v8 = vld [vmem:[#allocation10 + $0x14] ss:$24 sps:$4 sm:$0xff]  }
0x1040   :  { %v2450_v12 = vmul.f32 0.03125, %v2446_v10  ;;  %v2444_v20 = vpop.xlane.xlu0 %2443  ;;  %v5572_v10 = vld [vmem:[#allocation10 + $0x40] ss:$24 sps:$4 sm:$0xff]  }
0x1041   :  { %v2449_v23 = vmul.f32 0.03125, %v2444_v20  ;;  %v5575_v20 = vld [vmem:[#allocation10 + $0x70] ss:$24 sps:$4 sm:$0xff]  }
0x1042   :  { %v2454_v24 = vsub.f32 %v2450_v12, %v2452_v5  ;;  %v5569_v5 = vld [vmem:[#allocation10 + $0x10] ss:$24 sps:$4 sm:$0xff]   ;;  %v5577_v12 = vld [vmem:[#allocation10 + $0x74] ss:$24 sps:$4 sm:$0xff]  }
0x1043   :  { %v2453_v57 = vsub.f32 %v2449_v23, %v2451_v11  ;;  %v5574_v11 = vld [vmem:[#allocation10 + $0x44] ss:$24 sps:$4 sm:$0xff]  }
0x1044   :  { %v5754_v30 = vpop.eup %5753  ;;  %v2456_v31 = vmax.f32 %v2454_v24, 0.0  ;;  %v5580_v23 = vld [vmem:[#allocation10 + $0xa4] ss:$24 sps:$4 sm:$0xff]   ;;  %v5578_v24 = vld [vmem:[#allocation10 + $0xa0] ss:$24 sps:$4 sm:$0xff]  }
0x1045   :  { %v2455_v32 = vmax.f32 %v2453_v57, 0.0  ;;  %v2264_v33 = vmul.f32 %v5754_v30, %v2258_v43  ;;  %v5583_v43 = vld [vmem:[#allocation10 + $0xd4] ss:$24 sps:$4 sm:$0xff]   ;;  %v5581_v57 = vld [vmem:[#allocation10 + $0xd0] ss:$24 sps:$4 sm:$0xff]  }
0x1046   :  { %v5756_v34 = vpop.eup %5755  ;;  %v2460_v36 = vadd.f32 1e-12, %v2456_v31  ;;  %v5584_v30 = vld [vmem:[#allocation10 + $0x100] ss:$24 sps:$4 sm:$0xff]   ;;  %v5589_v31 = vld [vmem:[#allocation10 + $0x134] ss:$24 sps:$4 sm:$0xff]  }
0x1047   :  { %v2459_v37 = vadd.f32 1e-12, %v2455_v32  ;;  %v2265_v38 = vmul.f32 %v5756_v34, %v2259_v19  ;;  %v2270_v41 = vmul.f32 %v2269_v28, %v2264_v33  ;;  %v5587_v19 = vld [vmem:[#allocation10 + $0x130] ss:$24 sps:$4 sm:$0xff]   ;;  %v5592_v32 = vld [vmem:[#allocation10 + $0x164] ss:$24 sps:$4 sm:$0xff]  }
0x1048   :  { %5757 = vrsqrt.f32 %v2460_v36  ;;  %v5590_v33 = vld [vmem:[#allocation10 + $0x160] ss:$24 sps:$4 sm:$0xff]  }
0x1049   :  { %5759 = vrsqrt.f32 %v2459_v37  ;;  %v2271_v9 = vmul.f32 %v2269_v28, %v2265_v38  ;;  %v2276_v18 = vadd.f32 %v2275_v51, %v2270_v41  ;;  %v5586_v28 = vld [vmem:[#allocation10 + $0x104] ss:$24 sps:$4 sm:$0xff]  }
0x104a   :  { %v2527_v37 = vld [vmem:[%s6731_s6] sm:$0x3f] }
0x104b   :  { %v2277_v39 = vadd.f32 %v2275_v51, %v2271_v9  ;;  %v2540_v38 = vrot.slane %v2527_v37, %v6257_v46  ;;  %v2544_v51 = vrot.slane %v2527_v37, %v6263_v49 }
0x104d   :  { %v5306_v35 = vpack.c.bf16 %v2277_v39, %v2276_v18 }
0x104f   :  { %5307 = vmatpush3.bf16.msra.mxu0 %v5306_v35 }
0x1050   :  { %2799 = vmatprep.subr.bf16.mxu0 %v5541_v47 }
0x1052   :  { %v5758_v55 = vpop.eup %5757  ;;  %5133 = vmatmul.mubr.msk.f32.vlgmr.msra.gmra.mrb[2].mxu0 %vm766_vm2, %v2278_v53 }
0x1053   :  { %v5760_v26 = vpop.eup %5759  ;;  %2800 = vmatpush1.bf16.msra.mxu0 %v5539_v15  ;;  %v2464_v60 = vmul.f32 %v5758_v55, %v2458_v50  ;;  %2831 = vmatprep.mubr.bf16.mxu0 %v6018_v48  ;;  %v2532_v55 = vrot.slane %v2527_v37, %v6226_v14 }
0x1054   :  { %2801 = vmatprep.subr.bf16.mxu0 %v5547_v54  ;;  %v2463_v62 = vmul.f32 %v5760_v26, %v2457_v58  ;;  %v2536_v26 = vrot.slane %v2527_v37, %v6233_v22 }
0x1055   :  { %v2466_v63 = vmul.f32 %v2464_v60, %v6230_v21 }
0x1056   :  { %v2465_v0 = vmul.f32 %v2463_v62, %v6230_v21  ;;  %v5557_v21 = vld [vmem:[#allocation10 + $0xc0] ss:$24 sps:$4 sm:$0xff]  }
0x1057   :  { %2802 = vmatpush1.bf16.msra.mxu0 %v5545_v59  ;;  %v6506_v29 = vadd.f32 %v2466_v63, %v6238_v27 }
0x1058   :  { %2803 = vmatprep.subr.bf16.mxu0 %v5553_v61  ;;  %v6509_v40 = vadd.f32 %v2465_v0, %v6238_v27  ;;  %v5565_v27 = vld [vmem:[#allocation10 + $0x124] ss:$24 sps:$4 sm:$0xff]  }
0x105a   :  { %v2478_v1 = vpack.c.bf16 %v6506_v29, %v6509_v40 }
0x105b   :  { %2804 = vmatpush1.bf16.msra.mxu0 %v5551_v25 }
0x105c   :  { %2875 = vmatmul.mubr.bf16.vlgmr.msra.gmra.mrb[44].mxu1 %v2478_v1  ;;  %2805 = vmatprep.subr.bf16.mxu0 %v5556_v13 }
0x105d   :  { %5156 = vmatprep.mubr.msk.bf16.mxu1 %vm6020_vm1, %v6019_v45 }
0x105f   :  { %2806 = vmatpush1.bf16.msra.mxu0 %v5554_v42  ;;  %v2548_v42 = vrot.slane %v2527_v37, %v6274_v16 }
0x1060   :  { %2807 = vmatprep.subr.bf16.mxu0 %v5559_v2 }
0x1063   :  { %2808 = vmatpush1.bf16.msra.mxu0 %v5557_v21  ;;  %v2552_v21 = vrot.slane %v2527_v37, %v6277_v17 }
0x1064   :  { %2809 = vmatprep.subr.bf16.mxu0 %v5562_v44 }
0x1067   :  { %2810 = vmatpush1.bf16.msra.mxu0 %v5560_v4 }
0x1068   :  { %2811 = vmatprep.subr.bf16.mxu0 %v5565_v27 }
0x106b   :  { %2812 = vmatpush1.bf16.msra.mxu0 %v5563_v3 }
0x106c   :  { %2813 = vmatprep.subr.bf16.mxu0 %v5568_v6 }
0x106f   :  { %2814 = vmatpush1.bf16.msra.mxu0 %v5566_v7 }
0x1070   :  { %2885 = vmatprep.subr.bf16.mxu0 %v5571_v8 }
0x1072   :  { %2832 = vmatmul.mubr.bf16.vlgmr.msra.gmra.mrb[36].mxu0 %v2478_v1 }
0x1073   :  { %2886 = vmatpush1.bf16.msra.mxu0 %v5569_v5  ;;  %2917 = vmatprep.mubr.bf16.mxu0 %v6018_v48 }
0x1074   :  { %2887 = vmatprep.subr.bf16.mxu0 %v5574_v11 }
0x1077   :  { %2888 = vmatpush1.bf16.msra.mxu0 %v5572_v10  ;;  %v6539_v10 = vld [vmem:[%s6726_s1 + $0x1] ss:$0 sm:$0xff] }
0x1078   :  { %2889 = vmatprep.subr.bf16.mxu0 %v5577_v12 }
0x107b   :  { %2890 = vmatpush1.bf16.msra.mxu0 %v5575_v20 }
0x107c   :  { %2891 = vmatprep.subr.bf16.mxu0 %v5580_v23 }
0x107f   :  { %2892 = vmatpush1.bf16.msra.mxu0 %v5578_v24 }
0x1080   :  { %2893 = vmatprep.subr.bf16.mxu0 %v5583_v43 }
0x1083   :  { %2894 = vmatpush1.bf16.msra.mxu0 %v5581_v57 }
0x1084   :  { %2895 = vmatprep.subr.bf16.mxu0 %v5586_v28 }
0x1087   :  { %2896 = vmatpush1.bf16.msra.mxu0 %v5584_v30 }
0x1088   :  { %2897 = vmatprep.subr.bf16.mxu0 %v5589_v31 }
0x108b   :  { %2898 = vmatpush1.bf16.msra.mxu0 %v5587_v19 }
0x108c   :  { %2899 = vmatprep.subr.bf16.mxu0 %v5592_v32 }
0x108f   :  { %2900 = vmatpush1.bf16.msra.mxu0 %v5590_v33 }
0x1090   :  { %5172 = vmatprep.subr.bf16.mxu0 %v6019_v45 }
0x1092   :  { %2918 = vmatmul.mubr.bf16.vlgmr.msra.gmra.mrb[40].mxu0 %v2478_v1 }
0x1093   :  { %5174 = vmatprep.mubr.msk.bf16.mxu0 %vm6020_vm1, %v6019_v45 }
0x1125   :  { %v2348_v34 = vpop.f32.mrb[2].mxu0 }
0x1126   :  { %2352 = vst [vmem:[#allocation14] sm:$0xff] %v2348_v34  ;;  %v5134_v36 = vpop.f32.mrb[3].mxu0 }
0x112f   :  { %v2876_v41 = vpop.f32.mrb[44].mxu1 }
0x1130   :  { %v2878_v9 = vpop.f32.mrb[45].mxu1  ;;  %v2877_v39 = vadd.f32 %v2876_v41, %v2540_v38 }
0x1131   :  { %v2880_v18 = vpop.f32.mrb[46].mxu1  ;;  %v2879_v53 = vadd.f32 %v2878_v9, %v2544_v51 }
0x1132   :  { %v2881_v47 = vadd.f32 %v2880_v18, %v2540_v38  ;;  %v2882_v35 = vpop.f32.mrb[47].mxu1 }
0x1133   :  { %v2883_v15 = vadd.f32 %v2882_v35, %v2544_v51 }
0x1134   :  { %v2930_v54 = vpack.c.bf16 %v2881_v47, %v2877_v39 }
0x1135   :  { %v2995_v50 = vpack.c.bf16 %v2883_v15, %v2879_v53 }
0x1136   :  { %5173 = vmatpush3.bf16.msra.mxu0 %v2930_v54 }
0x1137   :  { %5198 = vmatprep.subr.bf16.mxu0 %v6019_v45 }
0x1145   :  { %v2833_v58 = vpop.f32.mrb[36].mxu0 }
0x1146   :  { %v2835_v59 = vpop.f32.mrb[37].mxu0  ;;  %v2834_v61 = vadd.f32 %v2833_v58, %v2532_v55 }
0x1147   :  { %v2837_v60 = vpop.f32.mrb[38].mxu0  ;;  %v2836_v0 = vadd.f32 %v2835_v59, %v2536_v26 }
0x1148   :  { %v2838_v62 = vadd.f32 %v2837_v60, %v2532_v55  ;;  %v2839_v63 = vpop.f32.mrb[39].mxu0 }
0x1149   :  { %v2840_v25 = vadd.f32 %v2839_v63, %v2536_v26 }
0x114a   :  { %v2928_v13 = vpack.c.bf16 %v2838_v62, %v2834_v61 }
0x114b   :  { %v2929_v1 = vpack.c.bf16 %v2840_v25, %v2836_v0 }
0x114d   :  { %5155 = vmatpush3.bf16.xpose.msra.mxu1 %v2929_v1 }
0x114e   :  { %5160 = vmatprep.subr.bf16.mxu1 %v6019_v45 }
0x1154   :  { %5157 = vmatmul.mubr.bf16.vlgmr.msra.gmra.mrb[48].mxu1 %v2928_v13 }
0x1155   :  { %5162 = vmatprep.mubr.msk.bf16.mxu1 %vm6020_vm1, %v6019_v45 }
0x1165   :  { %v2919_v2 = vpop.f32.mrb[40].mxu0 }
0x1166   :  { %v2921_v44 = vpop.f32.mrb[41].mxu0  ;;  %v2920_v27 = vadd.f32 %v2919_v2, %v2548_v42 }
0x1167   :  { %v2923_v4 = vpop.f32.mrb[42].mxu0  ;;  %v2922_v7 = vadd.f32 %v2921_v44, %v2552_v21 }
0x1168   :  { %v2924_v3 = vadd.f32 %v2923_v4, %v2548_v42  ;;  %v2925_v6 = vpop.f32.mrb[43].mxu0 }
0x1169   :  { %v2926_v8 = vadd.f32 %v2925_v6, %v2552_v21 }
0x116a   :  { %v2996_v5 = vpack.c.bf16 %v2924_v3, %v2920_v27 }
0x116b   :  { %v2997_v11 = vpack.c.bf16 %v2926_v8, %v2922_v7 }
0x116c   :  { %5161 = vmatpush3.bf16.xpose.msra.mxu1 %v2996_v5 }
0x116d   :  { %5166 = vmatprep.subr.bf16.mxu1 %v6019_v45 }
0x1173   :  { %5163 = vmatmul.mubr.bf16.vlgmr.msra.gmra.mrb[52].mxu1 %v2995_v50 }
0x1174   :  { %5167 = vmatpush3.bf16.msra.mxu1 %v2997_v11  ;;  %5168 = vmatprep.mubr.msk.bf16.mxu1 %vm6020_vm1, %v6019_v45 }
0x1175   :  { %5178 = vmatprep.subr.bf16.mxu1 %v6019_v45 }
0x1227   :  { %v2965_v12 = vpop.f32.mrb[48].mxu1 }
0x1228   :  { %v2966_v20 = vadd.f32 %v6539_v10, %v2965_v12  ;;  %v5158_v23 = vpop.f32.mrb[49].mxu1 }
0x1229   :  { %v2968_v24 = vpop.f32.mrb[50].mxu1 }
0x122a   :  { %v2969_v43 = vadd.f32 %v6539_v10, %v2968_v24  ;;  %v5159_v57 = vpop.f32.mrb[51].mxu1  ;;  %v2972_v28 = vsel %vm766_vm2, %v2966_v20, -inf  ;;  %v6559_v24 = vld [vmem:[#allocation11] sm:$0xff] }
0x122b   :  { %2973 = vmax.xlane.f32.xlu0 %v2972_v28 }
0x122c   :  { %v2975_v30 = vsel %vm766_vm2, %v2969_v43, -inf }
0x122d   :  { %2976 = vmax.xlane.f32.xlu1 %v2975_v30 }
0x1246   :  { %v3032_v31 = vpop.f32.mrb[52].mxu1 }
0x1247   :  { %v3033_v19 = vadd.f32 %v6539_v10, %v3032_v31  ;;  %v5164_v32 = vpop.f32.mrb[53].mxu1 }
0x1248   :  { %v3035_v33 = vpop.f32.mrb[54].mxu1 }
0x1249   :  { %v3036_v34 = vadd.f32 %v6539_v10, %v3035_v33  ;;  %v5165_v36 = vpop.f32.mrb[55].mxu1  ;;  %v3039_v37 = vsel %vm766_vm2, %v3033_v19, -inf }
0x124a   :  { %3040 = vmax.xlane.f32.xlu0 %v3039_v37 }
0x124b   :  { %v3042_v38 = vsel %vm766_vm2, %v3036_v34, -inf }
0x124c   :  { %3043 = vmax.xlane.f32.xlu1 %v3042_v38 }
0x12b8   :  { %v2974_v41 = vpop.xlane.xlu0 %2973 }
0x12b9   :  { %v2978_v51 = vsub.f32 %v2966_v20, %v2974_v41 }
0x12ba   :  { %v2977_v9 = vpop.xlane.xlu1 %2976 }
0x12bb   :  { %v2980_v18 = vmul.f32 1.442695, %v2978_v51  ;;  %v2979_v39 = vsub.f32 %v2969_v43, %v2977_v9  ;;  %v3153_v43 = vrot.slane %v6559_v24, %v6226_v14  ;;  %v5593_v51 = vld [vmem:[#allocation13] sm:$0xff]   ;;  %v5594_v9 = vld [vmem:[#allocation13 + $0x8] sm:$0xff]  }
0x12bd   :  { %5761 = vpow2.f32 %v2980_v18  ;;  %v2982_v47 = vmul.f32 1.442695, %v2979_v39  ;;  %v5595_v18 = vld [vmem:[#allocation13 + $0x10] sm:$0xff]   ;;  %v5598_v39 = vld [vmem:[#allocation13 + $0x28] sm:$0xff]  }
0x12bf   :  { %5763 = vpow2.f32 %v2982_v47  ;;  %v5599_v47 = vld [vmem:[#allocation13 + $0x30] sm:$0xff]  }
0x12c7   :  { %v5762_v35 = vpop.eup %5761 }
0x12c8   :  { %v2984_v53 = vsel %vm766_vm2, %v5762_v35, 0.0 }
0x12c9   :  { %v5764_v15 = vpop.eup %5763  ;;  %2985 = vadd.xlane.f32.xlu0 %v2984_v53 }
0x12ca   :  { %v2987_v54 = vsel %vm766_vm2, %v5764_v15, 0.0 }
0x12cb   :  { %2988 = vadd.xlane.f32.xlu1 %v2987_v54 }
0x12d7   :  { %v3041_v50 = vpop.xlane.xlu0 %3040 }
0x12d8   :  { %v3045_v55 = vsub.f32 %v3033_v19, %v3041_v50 }
0x12d9   :  { %v3044_v58 = vpop.xlane.xlu1 %3043 }
0x12da   :  { %v3047_v26 = vmul.f32 1.442695, %v3045_v55  ;;  %v3046_v59 = vsub.f32 %v3036_v34, %v3044_v58 }
0x12dc   :  { %5765 = vpow2.f32 %v3047_v26  ;;  %v3049_v60 = vmul.f32 1.442695, %v3046_v59 }
0x12de   :  { %5767 = vpow2.f32 %v3049_v60 }
0x12e6   :  { %v5766_v61 = vpop.eup %5765 }
0x12e7   :  { %v3051_v62 = vsel %vm766_vm2, %v5766_v61, 0.0 }
0x12e8   :  { %v5768_v63 = vpop.eup %5767  ;;  %3052 = vadd.xlane.f32.xlu0 %v3051_v62 }
0x12e9   :  { %v3054_v0 = vsel %vm766_vm2, %v5768_v63, 0.0 }
0x12ea   :  { %3055 = vadd.xlane.f32.xlu1 %v3054_v0 }
0x1356   :  { %v2986_v25 = vpop.xlane.xlu0 %2985 }
0x1357   :  { %5769 = vrcp.f32 %v2986_v25 }
0x1358   :  { %v2989_v13 = vpop.xlane.xlu1 %2988 }
0x1359   :  { %5771 = vrcp.f32 %v2989_v13 }
0x1361   :  { %v5770_v1 = vpop.eup %5769 }
0x1362   :  { %v2992_v2 = vmul.f32 %v5770_v1, %v5762_v35  ;;  %v5600_v35 = vld [vmem:[#allocation13 + $0x38] sm:$0xff]  }
0x1363   :  { %v5772_v42 = vpop.eup %5771 }
0x1364   :  { %v2993_v21 = vmul.f32 %v5772_v42, %v5764_v15 }
0x1366   :  { %v2994_v44 = vpack.c.bf16 %v2993_v21, %v2992_v2  ;;  %v3189_v2 = vrot.slane %v6559_v24, %v6233_v22 }
0x1368   :  { %5175 = vmatmul.mubr.msk.bf16.vlgmr.msra.gmra.mrb[44].mxu0 %vm766_vm2, %v2994_v44 }
0x1369   :  { %5214 = vmatprep.mubr.msk.bf16.mxu0 %vm6020_vm1, %v6019_v45 }
0x1375   :  { %v3053_v4 = vpop.xlane.xlu0 %3052 }
0x1376   :  { %5773 = vrcp.f32 %v3053_v4 }
0x1377   :  { %v3056_v27 = vpop.xlane.xlu1 %3055 }
0x1378   :  { %5775 = vrcp.f32 %v3056_v27 }
0x1380   :  { %v5774_v3 = vpop.eup %5773 }
0x1381   :  { %v3059_v7 = vmul.f32 %v5774_v3, %v5766_v61 }
0x1382   :  { %v5776_v6 = vpop.eup %5775 }
0x1383   :  { %v3060_v8 = vmul.f32 %v5776_v6, %v5768_v63 }
0x1385   :  { %v3061_v5 = vpack.c.bf16 %v3060_v8, %v3059_v7  ;;  %v3195_v7 = vrot.slane %v6559_v24, %v6257_v46 }
0x1387   :  { %5169 = vmatmul.mubr.msk.bf16.vlgmr.msra.gmra.mrb[56].mxu1 %vm766_vm2, %v3061_v5 }
0x1388   :  { %5194 = vmatprep.mubr.msk.bf16.mxu1 %vm6020_vm1, %v6019_v45  ;;  %5179 = vmatpush3.bf16.msra.mxu1 %v5593_v51 }
0x1389   :  { %5180 = vmatprep.subr.bf16.mxu1 %v6019_v45 }
0x138c   :  { %5181 = vmatpush3.bf16.msra.mxu1 %v5594_v9 }
0x138d   :  { %5182 = vmatprep.subr.bf16.mxu1 %v6019_v45 }
0x1390   :  { %5183 = vmatpush3.bf16.msra.mxu1 %v5595_v18 }
0x1391   :  { %5184 = vmatprep.subr.bf16.mxu1 %v6019_v45 }
0x143b   :  { %v3143_v11 = vpop.f32.mrb[44].mxu0 }
0x143c   :  { %v5176_v12 = vpop.f32.mrb[45].mxu0 }
0x143d   :  { %v3146_v20 = vpop.f32.mrb[46].mxu0 }
0x143e   :  { %v5177_v23 = vpop.f32.mrb[47].mxu0 }
0x143f   :  { %v5602_v23 = vld [vmem:[#allocation13 + $0x48] sm:$0xff]  }
0x145a   :  { %v3099_v57 = vpop.f32.mrb[56].mxu1 }
0x145b   :  { %v3144_v28 = vadd.f32 %v3143_v11, %v3099_v57  ;;  %v5170_v30 = vpop.f32.mrb[57].mxu1  ;;  %v5604_v57 = vld [vmem:[#allocation13 + $0x58] sm:$0xff]  }
0x145c   :  { %v3102_v31 = vpop.f32.mrb[58].mxu1  ;;  %v5606_v30 = vld [vmem:[#allocation13 + $0x68] sm:$0xff]  }
0x145d   :  { %v3154_v19 = vadd.f32 %v3153_v43, %v3144_v28  ;;  %v3147_v32 = vadd.f32 %v3146_v20, %v3102_v31  ;;  %v5171_v33 = vpop.f32.mrb[59].mxu1  ;;  %v5601_v20 = vld [vmem:[#allocation13 + $0x40] sm:$0xff]   ;;  %v5607_v31 = vld [vmem:[#allocation13 + $0x70] sm:$0xff]  }
0x145e   :  { %5199 = vmatpush3.bf16.msra.mxu0 %v5601_v20  ;;  %v5605_v28 = vld [vmem:[#allocation13 + $0x60] sm:$0xff]   ;;  %v5618_v20 = vld [vmem:[#allocation10 + $0x1b8] ss:$24 sps:$4 sm:$0xff]  }
0x145f   :  { %v3155_v34 = vadd.f32 %v3153_v43, %v3147_v32  ;;  %v3156_v36 = vadd.f32 %v3154_v19, %v6509_v40  ;;  %v5596_v40 = vld [vmem:[#allocation13 + $0x18] sm:$0xff]   ;;  %5200 = vmatprep.subr.bf16.mxu0 %v6019_v45  ;;  %v5603_v43 = vld [vmem:[#allocation13 + $0x50] sm:$0xff]   ;;  %v3234_v32 = vrot.slane %v6559_v24, %v6263_v49 }
0x1460   :  { %5185 = vmatpush3.bf16.msra.mxu1 %v5596_v40  ;;  %v5608_v19 = vld [vmem:[#allocation13 + $0x78] sm:$0xff]  }
0x1461   :  { %3158 = vadd.xlane.f32.xlu0 %v3156_v36  ;;  %v3157_v37 = vadd.f32 %v3155_v34, %v6506_v29  ;;  %v3162_v38 = vmul.f32 %v3156_v36, %v3156_v36  ;;  %v5597_v29 = vld [vmem:[#allocation13 + $0x20] sm:$0xff]   ;;  %5186 = vmatprep.subr.bf16.mxu1 %v6019_v45 }
0x1462   :  { %5201 = vmatpush3.bf16.msra.mxu0 %v5602_v23  ;;  %v5623_v23 = vld [vmem:[#allocation10 + $0x1e4] ss:$24 sps:$4 sm:$0xff]  }
0x1463   :  { %3160 = vadd.xlane.f32.xlu1 %v3157_v37  ;;  %v3163_v41 = vmul.f32 %v3157_v37, %v3157_v37  ;;  %5202 = vmatprep.subr.bf16.mxu0 %v6019_v45 }
0x1464   :  { %5187 = vmatpush3.bf16.msra.mxu1 %v5597_v29 }
0x1465   :  { %3164 = vadd.xlane.f32.xlu0 %v3162_v38  ;;  %5188 = vmatprep.subr.bf16.mxu1 %v6019_v45 }
0x1466   :  { %5203 = vmatpush3.bf16.msra.mxu0 %v5603_v43  ;;  %v5621_v43 = vld [vmem:[#allocation10 + $0x1e0] ss:$24 sps:$4 sm:$0xff]  }
0x1467   :  { %3166 = vadd.xlane.f32.xlu1 %v3163_v41  ;;  %5204 = vmatprep.subr.bf16.mxu0 %v6019_v45 }
0x1468   :  { %5189 = vmatpush3.bf16.msra.mxu1 %v5598_v39 }
0x1469   :  { %5190 = vmatprep.subr.bf16.mxu1 %v6019_v45 }
0x146a   :  { %5205 = vmatpush3.bf16.msra.mxu0 %v5604_v57  ;;  %v5626_v57 = vld [vmem:[#allocation10 + $0x1ec] ss:$24 sps:$4 sm:$0xff]  }
0x146b   :  { %5206 = vmatprep.subr.bf16.mxu0 %v6019_v45 }
0x146c   :  { %5191 = vmatpush3.bf16.msra.mxu1 %v5599_v47 }
0x146d   :  { %5192 = vmatprep.subr.bf16.mxu1 %v6019_v45 }
0x146e   :  { %5207 = vmatpush3.bf16.msra.mxu0 %v5605_v28  ;;  %v5624_v28 = vld [vmem:[#allocation10 + $0x1e8] ss:$24 sps:$4 sm:$0xff]  }
0x146f   :  { %5208 = vmatprep.subr.bf16.mxu0 %v6019_v45 }
0x1470   :  { %5193 = vmatpush3.bf16.msra.mxu1 %v5600_v35 }
0x1472   :  { %5209 = vmatpush3.bf16.msra.mxu0 %v5606_v30  ;;  %v5629_v30 = vld [vmem:[#allocation10 + $0x214] ss:$24 sps:$4 sm:$0xff]  }
0x1473   :  { %5210 = vmatprep.subr.bf16.mxu0 %v6019_v45 }
0x1476   :  { %5211 = vmatpush3.bf16.msra.mxu0 %v5607_v31  ;;  %v5627_v31 = vld [vmem:[#allocation10 + $0x210] ss:$24 sps:$4 sm:$0xff]  }
0x1477   :  { %5212 = vmatprep.subr.bf16.mxu0 %v6019_v45 }
0x147a   :  { %5213 = vmatpush3.bf16.msra.mxu0 %v5608_v19  ;;  %v5632_v19 = vld [vmem:[#allocation10 + $0x21c] ss:$24 sps:$4 sm:$0xff]  }
0x14ee   :  { %v3159_v53 = vpop.xlane.xlu0 %3158 }
0x14ef   :  { %v3168_v15 = vmul.f32 0.03125, %v3159_v53 }
0x14f0   :  { %v3161_v54 = vpop.xlane.xlu1 %3160 }
0x14f1   :  { %v3169_v50 = vmul.f32 0.03125, %v3161_v54  ;;  %v3172_v58 = vmul.f32 %v3168_v15, %v3168_v15  ;;  %v3178_v42 = vsub.f32 %v3156_v36, %v3168_v15 }
0x14f2   :  { %v3165_v55 = vpop.xlane.xlu0 %3164 }
0x14f3   :  { %v3170_v26 = vmul.f32 0.03125, %v3165_v55  ;;  %v3173_v60 = vmul.f32 %v3169_v50, %v3169_v50  ;;  %v3179_v44 = vsub.f32 %v3157_v37, %v3169_v50 }
0x14f4   :  { %v3167_v59 = vpop.xlane.xlu1 %3166 }
0x14f5   :  { %v3174_v61 = vsub.f32 %v3170_v26, %v3172_v58  ;;  %v3171_v62 = vmul.f32 0.03125, %v3167_v59 }
0x14f7   :  { %v3176_v63 = vmax.f32 %v3174_v61, 0.0  ;;  %v3175_v0 = vsub.f32 %v3171_v62, %v3173_v60 }
0x14f9   :  { %v3180_v25 = vadd.f32 1e-12, %v3176_v63  ;;  %v3177_v13 = vmax.f32 %v3175_v0, 0.0  ;;  %v3346_v63 = vrot.slane %v6559_v24, %v6274_v16 }
0x14fb   :  { %5777 = vrsqrt.f32 %v3180_v25  ;;  %v3181_v1 = vadd.f32 1e-12, %v3177_v13 }
0x14fd   :  { %5779 = vrsqrt.f32 %v3181_v1 }
0x1505   :  { %v5778_v21 = vpop.eup %5777 }
0x1506   :  { %v3184_v4 = vmul.f32 %v5778_v21, %v3178_v42 }
0x1507   :  { %v5780_v27 = vpop.eup %5779 }
0x1508   :  { %v3185_v3 = vmul.f32 %v5780_v27, %v3179_v44  ;;  %v3190_v6 = vmul.f32 %v3189_v2, %v3184_v4 }
0x150a   :  { %v3191_v8 = vmul.f32 %v3189_v2, %v3185_v3  ;;  %v6576_v5 = vadd.f32 %v3195_v7, %v3190_v6  ;;  %v5611_v3 = vld [vmem:[#allocation10 + $0x184] ss:$24 sps:$4 sm:$0xff]   ;;  %v5609_v6 = vld [vmem:[#allocation10 + $0x180] ss:$24 sps:$4 sm:$0xff]  }
0x150b   :  { %3800 = vmatprep.subr.bf16.mxu1 %v5611_v3  ;;  %v3469_v3 = vrot.slane %v6559_v24, %v6277_v17 }
0x150c   :  { %v6578_v11 = vadd.f32 %v3195_v7, %v3191_v8  ;;  %v5614_v7 = vld [vmem:[#allocation10 + $0x18c] ss:$24 sps:$4 sm:$0xff]   ;;  %v5612_v8 = vld [vmem:[#allocation10 + $0x188] ss:$24 sps:$4 sm:$0xff]  }
0x150d   :  { %3843 = vmatprep.subr.bf16.mxu0 %v5614_v7 }
0x150e   :  { %v3230_v12 = vpack.c.bf16 %v6578_v11, %v6576_v5 }
0x1510   :  { %5195 = vmatmul.mubr.bf16.vlgmr.msra.gmra.mrb[60].mxu1 %v3230_v12  ;;  %v5620_v12 = vld [vmem:[#allocation10 + $0x1bc] ss:$24 sps:$4 sm:$0xff]  }
0x1511   :  { %3832 = vmatprep.mubr.bf16.mxu1 %v6018_v48  ;;  %3801 = vmatpush1.bf16.msra.mxu1 %v5609_v6 }
0x15e3   :  { %v3317_v33 = vpop.f32.mrb[60].mxu1 }
0x15e4   :  { %v3318_v34 = vadd.f32 %v3317_v33, %v3234_v32  ;;  %v5196_v36 = vpop.f32.mrb[61].mxu1  ;;  %v5633_v33 = vld [vmem:[#allocation10 + $0x240] ss:$24 sps:$4 sm:$0xff]  }
0x15e5   :  { %v3320_v37 = vpop.f32.mrb[62].mxu1  ;;  %v5636_v36 = vld [vmem:[#allocation10 + $0x248] ss:$24 sps:$4 sm:$0xff]  }
0x15e6   :  { %v3326_v38 = vmul.f32 0.044715, %v3318_v34  ;;  %v3321_v41 = vadd.f32 %v3320_v37, %v3234_v32  ;;  %v5197_v51 = vpop.f32.mrb[63].mxu1  ;;  %v3324_v58 = vmul.f32 0.5, %v3318_v34  ;;  %v5630_v32 = vld [vmem:[#allocation10 + $0x218] ss:$24 sps:$4 sm:$0xff]  }
0x15e7   :  { %v5638_v37 = vld [vmem:[#allocation10 + $0x24c] ss:$24 sps:$4 sm:$0xff]   ;;  %v5639_v51 = vld [vmem:[#allocation10 + $0x270] ss:$24 sps:$4 sm:$0xff]  }
0x15e8   :  { %v3328_v9 = vmul.f32 %v3326_v38, %v3318_v34  ;;  %v3327_v18 = vmul.f32 0.044715, %v3321_v41  ;;  %v3325_v26 = vmul.f32 0.5, %v3321_v41  ;;  %v5641_v38 = vld [vmem:[#allocation10 + $0x274] ss:$24 sps:$4 sm:$0xff]  }
0x15ea   :  { %v3330_v40 = vmul.f32 %v3328_v9, %v3318_v34  ;;  %v3329_v29 = vmul.f32 %v3327_v18, %v3321_v41  ;;  %v5642_v9 = vld [vmem:[#allocation10 + $0x278] ss:$24 sps:$4 sm:$0xff]   ;;  %v5647_v18 = vld [vmem:[#allocation10 + $0x2a4] ss:$24 sps:$4 sm:$0xff]  }
0x15ec   :  { %v3332_v39 = vadd.f32 %v3330_v40, %v3318_v34  ;;  %v3331_v47 = vmul.f32 %v3329_v29, %v3321_v41  ;;  %v5635_v34 = vld [vmem:[#allocation10 + $0x244] ss:$24 sps:$4 sm:$0xff]   ;;  %v5645_v29 = vld [vmem:[#allocation10 + $0x2a0] ss:$24 sps:$4 sm:$0xff]  }
0x15ed   :  { %v5650_v40 = vld [vmem:[#allocation10 + $0x2ac] ss:$24 sps:$4 sm:$0xff]  }
0x15ee   :  { %v3334_v35 = vmul.f32 0.7978846, %v3332_v39  ;;  %v3333_v53 = vadd.f32 %v3331_v47, %v3321_v41  ;;  %v5644_v41 = vld [vmem:[#allocation10 + $0x27c] ss:$24 sps:$4 sm:$0xff]   ;;  %v5648_v39 = vld [vmem:[#allocation10 + $0x2a8] ss:$24 sps:$4 sm:$0xff]  }
0x15ef   :  { %v5653_v47 = vld [vmem:[#allocation10 + $0x2d4] ss:$24 sps:$4 sm:$0xff]  }
0x15f0   :  { %5781 = vtanh.f32 %v3334_v35  ;;  %v3335_v15 = vmul.f32 0.7978846, %v3333_v53  ;;  %v5656_v35 = vld [vmem:[#allocation10 + $0x2dc] ss:$24 sps:$4 sm:$0xff]   ;;  %v5651_v53 = vld [vmem:[#allocation10 + $0x2d0] ss:$24 sps:$4 sm:$0xff]  }
0x15f2   :  { %5783 = vtanh.f32 %v3335_v15  ;;  %v5654_v15 = vld [vmem:[#allocation10 + $0x2d8] ss:$24 sps:$4 sm:$0xff]  }
0x15fa   :  { %v5782_v54 = vpop.eup %5781 }
0x15fb   :  { %v3338_v50 = vadd.f32 1.0, %v5782_v54  ;;  %v5659_v54 = vld [vmem:[#allocation10 + $0x194] ss:$24 sps:$4 sm:$0xff]  }
0x15fc   :  { %v5784_v55 = vpop.eup %5783 }
0x15fd   :  { %v3339_v59 = vadd.f32 1.0, %v5784_v55  ;;  %v3340_v60 = vmul.f32 %v3338_v50, %v3324_v58 }
0x15ff   :  { %v3341_v61 = vmul.f32 %v3339_v59, %v3325_v26 }
0x1601   :  { %v3342_v62 = vpack.c.bf16 %v3341_v61, %v3340_v60 }
0x1603   :  { %5215 = vmatmul.mubr.bf16.vlgmr.msra.gmra.mrb[48].mxu0 %v3342_v62 }
0x1604   :  { %3875 = vmatprep.mubr.bf16.mxu0 %v6018_v48  ;;  %3844 = vmatpush1.bf16.msra.mxu0 %v5612_v8 }
0x1605   :  { %3845 = vmatprep.subr.bf16.mxu0 %v5620_v12 }
0x1608   :  { %3846 = vmatpush1.bf16.msra.mxu0 %v5618_v20  ;;  %v3475_v20 = vrot.slane %v6559_v24, %v6361_v56  ;;  %v5663_v24 = vld [vmem:[#allocation10 + $0x1f0] ss:$24 sps:$4 sm:$0xff]  }
0x1609   :  { %3847 = vmatprep.subr.bf16.mxu0 %v5626_v57 }
0x160c   :  { %3848 = vmatpush1.bf16.msra.mxu0 %v5624_v28  ;;  %v5657_v28 = vld [vmem:[#allocation10 + $0x190] ss:$24 sps:$4 sm:$0xff]  }
0x160d   :  { %3849 = vmatprep.subr.bf16.mxu0 %v5632_v19  ;;  %v5668_v19 = vld [vmem:[#allocation10 + $0x224] ss:$24 sps:$4 sm:$0xff]  }
0x1610   :  { %3850 = vmatpush1.bf16.msra.mxu0 %v5630_v32  ;;  %v5666_v32 = vld [vmem:[#allocation10 + $0x220] ss:$24 sps:$4 sm:$0xff]  }
0x1611   :  { %3851 = vmatprep.subr.bf16.mxu0 %v5638_v37  ;;  %v5672_v37 = vld [vmem:[#allocation10 + $0x280] ss:$24 sps:$4 sm:$0xff]  }
0x1614   :  { %3852 = vmatpush1.bf16.msra.mxu0 %v5636_v36  ;;  %v5674_v36 = vld [vmem:[#allocation10 + $0x284] ss:$24 sps:$4 sm:$0xff]  }
0x1615   :  { %3853 = vmatprep.subr.bf16.mxu0 %v5644_v41  ;;  %v5680_v41 = vld [vmem:[#allocation10 + $0x2e4] ss:$24 sps:$4 sm:$0xff]  }
0x1618   :  { %3854 = vmatpush1.bf16.msra.mxu0 %v5642_v9  ;;  %v4783_v9 = vld [vmem:[%s6731_s6 + $0x6] sm:$0x3f]  ;;  %s6022_s6 = smov [#allocation14]  }
0x1619   :  { %3855 = vmatprep.subr.bf16.mxu0 %v5650_v40  ;;  %v3541_v40 = vrot.slane %v4783_v9, %v6257_v46  ;;  %s4561_s18 = sshll.u32 %s6022_s6, 4  ;;  %s4562_s18 = int_to_ptr.vmem [resolvable:$true] %s4561_s18 }
0x161a   :  { %s5973_s19 = scalar_lea.vmem %s4562_s18, 256  ;;  %p5978_p1 = scmp.lt.s32.totalorder %s4562_s18, %s4562_s18 }
0x161b   :  { %p5974_p0 = scmp.ne.s32.totalorder %s4562_s18, %s5973_s19  ;;  %p5979_p2 = scmp.lt.s32.totalorder %s5973_s19, %s5973_s19 }
0x161c   :  { %3856 = vmatpush1.bf16.msra.mxu0 %v5648_v39 }
0x161d   :  { %3857 = vmatprep.subr.bf16.mxu0 %v5656_v35  ;;  %v3545_v35 = vrot.slane %v4783_v9, %v6263_v49  ;;  %p5980_p3 = por %p5979_p2, %p5978_p1 }
0x161f   :  { %p5981_p4 = pnand %p5980_p3, %p5974_p0 }
0x1620   :  { %3858 = vmatpush1.bf16.msra.mxu0 %v5654_v15 }
0x1621   :  { %5218 = vmatprep.subr.bf16.mxu0 %v6019_v45 }
0x16d6   :  { %v3429_v0 = vpop.f32.mrb[48].mxu0 }
0x16d7   :  { %v3430_v25 = vadd.f32 %v3429_v0, %v3346_v63  ;;  %v5216_v13 = vpop.f32.mrb[49].mxu0 }
0x16d8   :  { %v3432_v1 = vpop.f32.mrb[50].mxu0 }
0x16d9   :  { %v6596_v42 = vadd.f32 %v3430_v25, %v6576_v5  ;;  %v3433_v2 = vadd.f32 %v3432_v1, %v3346_v63  ;;  %v5217_v21 = vpop.f32.mrb[51].mxu0  ;;  %v5617_v5 = vld [vmem:[#allocation10 + $0x1b4] ss:$24 sps:$4 sm:$0xff]  }
0x16da   :  { %3802 = vmatprep.subr.bf16.mxu1 %v5617_v5 }
0x16db   :  { %v6599_v44 = vadd.f32 %v3433_v2, %v6578_v11  ;;  %3438 = vadd.xlane.f32.xlu0 %v6596_v42  ;;  %v3442_v4 = vmul.f32 %v6596_v42, %v6596_v42  ;;  %v5615_v11 = vld [vmem:[#allocation10 + $0x1b0] ss:$24 sps:$4 sm:$0xff]  }
0x16dc   :  { %3803 = vmatpush1.bf16.msra.mxu1 %v5615_v11 }
0x16dd   :  { %3440 = vadd.xlane.f32.xlu1 %v6599_v44  ;;  %v3443_v27 = vmul.f32 %v6599_v44, %v6599_v44  ;;  %3804 = vmatprep.subr.bf16.mxu1 %v5623_v23 }
0x16df   :  { %3444 = vadd.xlane.f32.xlu0 %v3442_v4 }
0x16e0   :  { %3805 = vmatpush1.bf16.msra.mxu1 %v5621_v43 }
0x16e1   :  { %3446 = vadd.xlane.f32.xlu1 %v3443_v27  ;;  %3806 = vmatprep.subr.bf16.mxu1 %v5629_v30  ;;  %v5662_v30 = vld [vmem:[#allocation10 + $0x1c4] ss:$24 sps:$4 sm:$0xff]  }
0x16e4   :  { %3807 = vmatpush1.bf16.msra.mxu1 %v5627_v31  ;;  %v5665_v31 = vld [vmem:[#allocation10 + $0x1f4] ss:$24 sps:$4 sm:$0xff]  }
0x16e5   :  { %3808 = vmatprep.subr.bf16.mxu1 %v5635_v34  ;;  %v5669_v34 = vld [vmem:[#allocation10 + $0x250] ss:$24 sps:$4 sm:$0xff]  }
0x16e8   :  { %3809 = vmatpush1.bf16.msra.mxu1 %v5633_v33  ;;  %v5671_v33 = vld [vmem:[#allocation10 + $0x254] ss:$24 sps:$4 sm:$0xff]  }
0x16e9   :  { %3810 = vmatprep.subr.bf16.mxu1 %v5641_v38  ;;  %v5675_v38 = vld [vmem:[#allocation10 + $0x2b0] ss:$24 sps:$4 sm:$0xff]  }
0x16ec   :  { %3811 = vmatpush1.bf16.msra.mxu1 %v5639_v51  ;;  %v5678_v51 = vld [vmem:[#allocation10 + $0x2e0] ss:$24 sps:$4 sm:$0xff]  }
0x16ed   :  { %3812 = vmatprep.subr.bf16.mxu1 %v5647_v18  ;;  %v3533_v18 = vrot.slane %v4783_v9, %v6226_v14 }
0x16f0   :  { %3813 = vmatpush1.bf16.msra.mxu1 %v5645_v29 }
0x16f1   :  { %3814 = vmatprep.subr.bf16.mxu1 %v5653_v47  ;;  %v3537_v47 = vrot.slane %v4783_v9, %v6233_v22 }
0x16f4   :  { %3815 = vmatpush1.bf16.msra.mxu1 %v5651_v53 }
0x16f5   :  { %3886 = vmatprep.subr.bf16.mxu1 %v5659_v54 }
0x1768   :  { %v3439_v50 = vpop.xlane.xlu0 %3438 }
0x1769   :  { %v3448_v55 = vmul.f32 0.03125, %v3439_v50 }
0x176a   :  { %v3441_v58 = vpop.xlane.xlu1 %3440 }
0x176b   :  { %v3449_v26 = vmul.f32 0.03125, %v3441_v58  ;;  %v3452_v60 = vmul.f32 %v3448_v55, %v3448_v55  ;;  %v3458_v27 = vsub.f32 %v6596_v42, %v3448_v55 }
0x176c   :  { %v3445_v59 = vpop.xlane.xlu0 %3444 }
0x176d   :  { %v3450_v61 = vmul.f32 0.03125, %v3445_v59  ;;  %v3453_v63 = vmul.f32 %v3449_v26, %v3449_v26  ;;  %v3459_v7 = vsub.f32 %v6599_v44, %v3449_v26  ;;  %v5660_v44 = vld [vmem:[#allocation10 + $0x1c0] ss:$24 sps:$4 sm:$0xff]  }
0x176e   :  { %v3447_v62 = vpop.xlane.xlu1 %3446 }
0x176f   :  { %v3454_v0 = vsub.f32 %v3450_v61, %v3452_v60  ;;  %v3451_v25 = vmul.f32 0.03125, %v3447_v62 }
0x1771   :  { %v3456_v13 = vmax.f32 %v3454_v0, 0.0  ;;  %v3455_v1 = vsub.f32 %v3451_v25, %v3453_v63 }
0x1773   :  { %v3460_v2 = vadd.f32 1e-12, %v3456_v13  ;;  %v3457_v21 = vmax.f32 %v3455_v1, 0.0 }
0x1775   :  { %5785 = vrsqrt.f32 %v3460_v2  ;;  %v3461_v4 = vadd.f32 1e-12, %v3457_v21 }
0x1777   :  { %5787 = vrsqrt.f32 %v3461_v4  ;;  %v3549_v4 = vrot.slane %v4783_v9, %v6274_v16 }
0x177f   :  { %v5786_v6 = vpop.eup %5785 }
0x1780   :  { %v3464_v8 = vmul.f32 %v5786_v6, %v3458_v27 }
0x1781   :  { %v5788_v5 = vpop.eup %5787 }
0x1782   :  { %v3465_v11 = vmul.f32 %v5788_v5, %v3459_v7  ;;  %v3470_v12 = vmul.f32 %v3469_v3, %v3464_v8 }
0x1784   :  { %v3471_v23 = vmul.f32 %v3469_v3, %v3465_v11  ;;  %v6614_v43 = vadd.f32 %v3475_v20, %v3470_v12  ;;  %v3553_v3 = vrot.slane %v4783_v9, %v6277_v17 }
0x1786   :  { %v6616_v57 = vadd.f32 %v3475_v20, %v3471_v23 }
0x1788   :  { %v3479_v42 = vpack.c.bf16 %v6616_v57, %v6614_v43 }
0x178a   :  { %3833 = vmatmul.mubr.bf16.vlgmr.msra.gmra.mrb[64].mxu1 %v3479_v42  ;;  %3876 = vmatmul.mubr.bf16.vlgmr.msra.gmra.mrb[52].mxu0 %v3479_v42 }
0x178b   :  { %3887 = vmatpush1.bf16.msra.mxu1 %v5657_v28  ;;  %3918 = vmatprep.mubr.bf16.mxu1 %v6018_v48  ;;  %v5677_v48 = vld [vmem:[#allocation10 + $0x2b4] ss:$24 sps:$4 sm:$0xff]  }
0x178c   :  { %3888 = vmatprep.subr.bf16.mxu1 %v5662_v30  ;;  %5220 = vmatprep.mubr.msk.bf16.mxu0 %vm6020_vm1, %v6019_v45 }
0x178f   :  { %3889 = vmatpush1.bf16.msra.mxu1 %v5660_v44 }
0x1790   :  { %3890 = vmatprep.subr.bf16.mxu1 %v5665_v31 }
0x1793   :  { %3891 = vmatpush1.bf16.msra.mxu1 %v5663_v24 }
0x1794   :  { %3892 = vmatprep.subr.bf16.mxu1 %v5668_v19 }
0x1797   :  { %3893 = vmatpush1.bf16.msra.mxu1 %v5666_v32 }
0x1798   :  { %3894 = vmatprep.subr.bf16.mxu1 %v5671_v33 }
0x179b   :  { %3895 = vmatpush1.bf16.msra.mxu1 %v5669_v34 }
0x179c   :  { %3896 = vmatprep.subr.bf16.mxu1 %v5674_v36 }
0x179f   :  { %3897 = vmatpush1.bf16.msra.mxu1 %v5672_v37 }
0x17a0   :  { %3898 = vmatprep.subr.bf16.mxu1 %v5677_v48 }
0x17a3   :  { %3899 = vmatpush1.bf16.msra.mxu1 %v5675_v38 }
0x17a4   :  { %3900 = vmatprep.subr.bf16.mxu1 %v5680_v41 }
0x17a7   :  { %3901 = vmatpush1.bf16.msra.mxu1 %v5678_v51 }
0x17a8   :  { %5242 = vmatprep.subr.bf16.mxu1 %v6019_v45 }
0x17aa   :  { %3919 = vmatmul.mubr.bf16.vlgmr.msra.gmra.mrb[68].mxu1 %v3479_v42 }
0x17ab   :  { %5258 = vmatprep.mubr.msk.bf16.mxu1 %vm6020_vm1, %v6019_v45 }
0x185d   :  { %v3834_v29 = vpop.f32.mrb[64].mxu1  ;;  %v3877_v39 = vpop.f32.mrb[52].mxu0 }
0x185e   :  { %v3836_v53 = vpop.f32.mrb[65].mxu1  ;;  %v3879_v15 = vpop.f32.mrb[53].mxu0  ;;  %v3835_v55 = vadd.f32 %v3834_v29, %v3533_v18  ;;  %v6633_v58 = vadd.f32 %v3877_v39, %v3541_v40 }
0x185f   :  { %v3838_v54 = vpop.f32.mrb[66].mxu1  ;;  %v3881_v50 = vpop.f32.mrb[54].mxu0  ;;  %v3837_v62 = vadd.f32 %v3836_v53, %v3537_v47  ;;  %v3880_v63 = vadd.f32 %v3879_v15, %v3545_v35 }
0x1860   :  { %v3839_v26 = vadd.f32 %v3838_v54, %v3533_v18  ;;  %v6635_v59 = vadd.f32 %v3881_v50, %v3541_v40  ;;  %v3840_v60 = vpop.f32.mrb[67].mxu1  ;;  %v3883_v61 = vpop.f32.mrb[55].mxu0 }
0x1861   :  { %v3841_v0 = vadd.f32 %v3840_v60, %v3537_v47  ;;  %v3884_v25 = vadd.f32 %v3883_v61, %v3545_v35 }
0x1862   :  { %v3929_v13 = vpack.c.bf16 %v3839_v26, %v3835_v55  ;;  %v3931_v1 = vpack.c.bf16 %v6635_v59, %v6633_v58 }
0x1863   :  { %v3930_v2 = vpack.c.bf16 %v3841_v0, %v3837_v62  ;;  %v3996_v21 = vpack.c.bf16 %v3884_v25, %v3880_v63 }
0x1865   :  { %5219 = vmatpush3.bf16.xpose.msra.mxu0 %v3930_v2 }
0x1866   :  { %5224 = vmatprep.subr.bf16.mxu0 %v6019_v45 }
0x186c   :  { %5221 = vmatmul.mubr.bf16.vlgmr.msra.gmra.mrb[56].mxu0 %v3929_v13 }
0x186d   :  { %5226 = vmatprep.mubr.msk.bf16.mxu0 %vm6020_vm1, %v6019_v45 }
0x187d   :  { %v3920_v27 = vpop.f32.mrb[68].mxu1 }
0x187e   :  { %v3922_v6 = vpop.f32.mrb[69].mxu1  ;;  %v3921_v8 = vadd.f32 %v3920_v27, %v3549_v4 }
0x187f   :  { %v3924_v7 = vpop.f32.mrb[70].mxu1  ;;  %v3923_v12 = vadd.f32 %v3922_v6, %v3553_v3 }
0x1880   :  { %v3925_v5 = vadd.f32 %v3924_v7, %v3549_v4  ;;  %v3926_v11 = vpop.f32.mrb[71].mxu1 }
0x1881   :  { %v3927_v20 = vadd.f32 %v3926_v11, %v3553_v3 }
0x1882   :  { %v3997_v23 = vpack.c.bf16 %v3925_v5, %v3921_v8 }
0x1883   :  { %v3998_v28 = vpack.c.bf16 %v3927_v20, %v3923_v12 }
0x1884   :  { %5225 = vmatpush3.bf16.xpose.msra.mxu0 %v3997_v23 }
0x1885   :  { %5230 = vmatprep.subr.bf16.mxu0 %v6019_v45 }
0x188b   :  { %5227 = vmatmul.mubr.bf16.vlgmr.msra.gmra.mrb[60].mxu0 %v3996_v21 }
0x188c   :  { %5231 = vmatpush3.bf16.msra.mxu0 %v3998_v28  ;;  %5232 = vmatprep.mubr.msk.bf16.mxu0 %vm6020_vm1, %v6019_v45 }
0x188d   :  { %5236 = vmatprep.subr.bf16.mxu0 %v6019_v45 }
0x193f   :  { %v3966_v42 = vpop.f32.mrb[56].mxu0 }
0x1940   :  { %v5222_v30 = vpop.f32.mrb[57].mxu0  ;;  %v3967_v34 = vadd.f32 %v6539_v10, %v3966_v42 }
0x1941   :  { %v3969_v44 = vpop.f32.mrb[58].mxu0 }
0x1942   :  { %v5223_v31 = vpop.f32.mrb[59].mxu0  ;;  %v3970_v38 = vadd.f32 %v6539_v10, %v3969_v44  ;;  %v3973_v51 = vsel %vm766_vm2, %v3967_v34, -inf }
0x1944   :  { %v3976_v9 = vsel %vm766_vm2, %v3970_v38, -inf }
0x195e   :  { %v4033_v24 = vpop.f32.mrb[60].mxu0 }
0x195f   :  { %v4034_v19 = vadd.f32 %v6539_v10, %v4033_v24  ;;  %v5228_v32 = vpop.f32.mrb[61].mxu0  ;;  %v6670_v24 = vld [vmem:[#allocation11 + $0x10] sm:$0xff] }
0x1960   :  { %v4036_v33 = vpop.f32.mrb[62].mxu0  ;;  %v4154_v58 = vrot.slane %v6670_v24, %v6226_v14  ;;  %v5682_v14 = vld [vmem:[#allocation13 + $0x88] sm:$0xff]  }
0x1961   :  { %v4037_v36 = vadd.f32 %v6539_v10, %v4036_v33  ;;  %v5229_v37 = vpop.f32.mrb[63].mxu0  ;;  %v4040_v48 = vsel %vm766_vm2, %v4034_v19, -inf }
0x1962   :  { %4041 = vmax.xlane.f32.xlu0 %v4040_v48 }
0x1963   :  { %v4043_v41 = vsel %vm766_vm2, %v4037_v36, -inf }
0x1964   :  { %4044 = vmax.xlane.f32.xlu1 %v4043_v41 }
0x1966   :  { %3974 = vmax.xlane.f32.xlu0 %v3973_v51 }
0x1968   :  { %3977 = vmax.xlane.f32.xlu1 %v3976_v9  ;;  %v5681_v9 = vld [vmem:[#allocation13 + $0x80] sm:$0xff]  }
0x1969   :  { %5243 = vmatpush3.bf16.msra.mxu1 %v5681_v9 }
0x196a   :  { %5244 = vmatprep.subr.bf16.mxu1 %v6019_v45 }
0x196d   :  { %5245 = vmatpush3.bf16.msra.mxu1 %v5682_v14 }
0x196e   :  { %5246 = vmatprep.subr.bf16.mxu1 %v6019_v45 }
0x19ef   :  { %v4042_v18 = vpop.xlane.xlu0 %4041 }
0x19f0   :  { %v4046_v40 = vsub.f32 %v4034_v19, %v4042_v18  ;;  %v5683_v18 = vld [vmem:[#allocation13 + $0x90] sm:$0xff]  }
0x19f1   :  { %v4045_v29 = vpop.xlane.xlu1 %4044  ;;  %5247 = vmatpush3.bf16.msra.mxu1 %v5683_v18 }
0x19f2   :  { %v4048_v39 = vmul.f32 1.442695, %v4046_v40  ;;  %v4047_v47 = vsub.f32 %v4037_v36, %v4045_v29  ;;  %5248 = vmatprep.subr.bf16.mxu1 %v6019_v45  ;;  %v5686_v40 = vld [vmem:[#allocation13 + $0xa8] sm:$0xff]   ;;  %v5687_v29 = vld [vmem:[#allocation13 + $0xb0] sm:$0xff]  }
0x19f3   :  { %v3975_v35 = vpop.xlane.xlu0 %3974 }
0x19f4   :  { %5789 = vpow2.f32 %v4048_v39  ;;  %v4050_v53 = vmul.f32 1.442695, %v4047_v47  ;;  %v3979_v15 = vsub.f32 %v3967_v34, %v3975_v35  ;;  %v5688_v39 = vld [vmem:[#allocation13 + $0xb8] sm:$0xff]  }
0x19f5   :  { %v3978_v54 = vpop.xlane.xlu1 %3977 }
0x19f6   :  { %5791 = vpow2.f32 %v4050_v53  ;;  %v3981_v10 = vmul.f32 1.442695, %v3979_v15  ;;  %v3980_v50 = vsub.f32 %v3970_v38, %v3978_v54 }
0x19f8   :  { %5793 = vpow2.f32 %v3981_v10  ;;  %v3983_v55 = vmul.f32 1.442695, %v3980_v50 }
0x19fa   :  { %5795 = vpow2.f32 %v3983_v55 }
0x19fe   :  { %v5790_v26 = vpop.eup %5789 }
0x19ff   :  { %v4052_v60 = vsel %vm766_vm2, %v5790_v26, 0.0 }
0x1a00   :  { %v5792_v61 = vpop.eup %5791  ;;  %4053 = vadd.xlane.f32.xlu0 %v4052_v60 }
0x1a01   :  { %v4055_v62 = vsel %vm766_vm2, %v5792_v61, 0.0 }
0x1a02   :  { %v5794_v63 = vpop.eup %5793  ;;  %4056 = vadd.xlane.f32.xlu1 %v4055_v62 }
0x1a03   :  { %v3985_v0 = vsel %vm766_vm2, %v5794_v63, 0.0 }
0x1a04   :  { %v5796_v25 = vpop.eup %5795  ;;  %3986 = vadd.xlane.f32.xlu0 %v3985_v0 }
0x1a05   :  { %v3988_v13 = vsel %vm766_vm2, %v5796_v25, 0.0 }
0x1a06   :  { %3989 = vadd.xlane.f32.xlu1 %v3988_v13 }
0x1a8d   :  { %v4054_v2 = vpop.xlane.xlu0 %4053 }
0x1a8e   :  { %5797 = vrcp.f32 %v4054_v2 }
0x1a8f   :  { %v4057_v21 = vpop.xlane.xlu1 %4056 }
0x1a90   :  { %5799 = vrcp.f32 %v4057_v21 }
0x1a91   :  { %v3987_v4 = vpop.xlane.xlu0 %3986 }
0x1a93   :  { %v3990_v27 = vpop.xlane.xlu1 %3989 }
0x1a94   :  { %5801 = vrcp.f32 %v3990_v27 }
0x1a95   :  { %5803 = vrcp.f32 %v3987_v4 }
0x1a98   :  { %v5798_v3 = vpop.eup %5797 }
0x1a99   :  { %v4060_v7 = vmul.f32 %v5798_v3, %v5790_v26 }
0x1a9a   :  { %v5800_v6 = vpop.eup %5799 }
0x1a9b   :  { %v4061_v8 = vmul.f32 %v5800_v6, %v5792_v61 }
0x1a9d   :  { %v4062_v5 = vpack.c.bf16 %v4061_v8, %v4060_v7  ;;  %v4196_v8 = vrot.slane %v6670_v24, %v6257_v46  ;;  %v5692_v46 = vld [vmem:[#allocation13 + $0xd8] sm:$0xff]  }
0x1a9e   :  { %v5802_v11 = vpop.eup %5801 }
0x1a9f   :  { %5233 = vmatmul.mubr.msk.bf16.vlgmr.msra.gmra.mrb[64].mxu0 %vm766_vm2, %v4062_v5  ;;  %v5804_v12 = vpop.eup %5803  ;;  %v3994_v20 = vmul.f32 %v5802_v11, %v5796_v25 }
0x1aa0   :  { %5237 = vmatpush3.bf16.msra.mxu0 %v3931_v1  ;;  %5238 = vmatprep.mubr.msk.bf16.mxu0 %vm6020_vm1, %v6019_v45  ;;  %v3993_v23 = vmul.f32 %v5804_v12, %v5794_v63 }
0x1aa1   :  { %5262 = vmatprep.subr.bf16.mxu0 %v6019_v45 }
0x1aa2   :  { %v3995_v28 = vpack.c.bf16 %v3994_v20, %v3993_v23  ;;  %v5690_v23 = vld [vmem:[#allocation13 + $0xc8] sm:$0xff]  }
0x1aa7   :  { %5239 = vmatmul.mubr.msk.bf16.vlgmr.msra.gmra.mrb[68].mxu0 %vm766_vm2, %v3995_v28  ;;  %v5691_v28 = vld [vmem:[#allocation13 + $0xd0] sm:$0xff]  }
0x1aa8   :  { %5278 = vmatprep.mubr.msk.bf16.mxu0 %vm6020_vm1, %v6019_v45 }
0x1b72   :  { %v4100_v42 = vpop.f32.mrb[64].mxu0 }
0x1b73   :  { %v5234_v30 = vpop.f32.mrb[65].mxu0 }
0x1b74   :  { %v4103_v44 = vpop.f32.mrb[66].mxu0  ;;  %v5694_v30 = vld [vmem:[#allocation13 + $0xe8] sm:$0xff]  }
0x1b75   :  { %v5235_v31 = vpop.f32.mrb[67].mxu0 }
0x1b76   :  { %v5696_v31 = vld [vmem:[#allocation13 + $0xf8] sm:$0xff]  }
0x1b7a   :  { %v4144_v59 = vpop.f32.mrb[68].mxu0 }
0x1b7b   :  { %v4145_v1 = vadd.f32 %v4144_v59, %v4100_v42  ;;  %v5240_v19 = vpop.f32.mrb[69].mxu0  ;;  %v5693_v42 = vld [vmem:[#allocation13 + $0xe0] sm:$0xff]  }
0x1b7c   :  { %v4147_v32 = vpop.f32.mrb[70].mxu0 }
0x1b7d   :  { %v4155_v33 = vadd.f32 %v4154_v58, %v4145_v1  ;;  %v4148_v34 = vadd.f32 %v4147_v32, %v4103_v44  ;;  %v5241_v36 = vpop.f32.mrb[71].mxu0  ;;  %v5695_v44 = vld [vmem:[#allocation13 + $0xf0] sm:$0xff]  }
0x1b7f   :  { %v4156_v37 = vadd.f32 %v4154_v58, %v4148_v34  ;;  %v4157_v48 = vadd.f32 %v4155_v33, %v6614_v43  ;;  %v5684_v43 = vld [vmem:[#allocation13 + $0x98] sm:$0xff]   ;;  %v4235_v58 = vrot.slane %v6670_v24, %v6263_v49 }
0x1b80   :  { %5249 = vmatpush3.bf16.msra.mxu1 %v5684_v43 }
0x1b81   :  { %4159 = vadd.xlane.f32.xlu0 %v4157_v48  ;;  %v4158_v38 = vadd.f32 %v4156_v37, %v6616_v57  ;;  %v4163_v41 = vmul.f32 %v4157_v48, %v4157_v48  ;;  %v5685_v57 = vld [vmem:[#allocation13 + $0xa0] sm:$0xff]   ;;  %5250 = vmatprep.subr.bf16.mxu1 %v6019_v45 }
0x1b83   :  { %4161 = vadd.xlane.f32.xlu1 %v4158_v38  ;;  %v4164_v51 = vmul.f32 %v4158_v38, %v4158_v38 }
0x1b84   :  { %5251 = vmatpush3.bf16.msra.mxu1 %v5685_v57 }
0x1b85   :  { %4165 = vadd.xlane.f32.xlu0 %v4163_v41  ;;  %5252 = vmatprep.subr.bf16.mxu1 %v6019_v45 }
0x1b87   :  { %4167 = vadd.xlane.f32.xlu1 %v4164_v51 }
0x1b88   :  { %5253 = vmatpush3.bf16.msra.mxu1 %v5686_v40 }
0x1b89   :  { %5254 = vmatprep.subr.bf16.mxu1 %v6019_v45 }
0x1b8c   :  { %5255 = vmatpush3.bf16.msra.mxu1 %v5687_v29 }
0x1b8d   :  { %5256 = vmatprep.subr.bf16.mxu1 %v6019_v45 }
0x1b90   :  { %5257 = vmatpush3.bf16.msra.mxu1 %v5688_v39 }
0x1b91   :  { %5324 = vmatprep.subr.bf16.mxu1 %v6021_v52  ;;  %v4190_v52 = vrot.slane %v6670_v24, %v6233_v22  ;;  %v5689_v22 = vld [vmem:[#allocation13 + $0xc0] sm:$0xff]  }
0x1b92   :  { %5263 = vmatpush3.bf16.msra.mxu0 %v5689_v22 }
0x1b93   :  { %5264 = vmatprep.subr.bf16.mxu0 %v6019_v45 }
0x1b96   :  { %5265 = vmatpush3.bf16.msra.mxu0 %v5690_v23  ;;  %v4470_v23 = vrot.slane %v6670_v24, %v6277_v17 }
0x1b97   :  { %5266 = vmatprep.subr.bf16.mxu0 %v6019_v45 }
0x1b9a   :  { %5267 = vmatpush3.bf16.msra.mxu0 %v5691_v28 }
0x1b9b   :  { %5268 = vmatprep.subr.bf16.mxu0 %v6019_v45 }
0x1b9e   :  { %5269 = vmatpush3.bf16.msra.mxu0 %v5692_v46 }
0x1b9f   :  { %5270 = vmatprep.subr.bf16.mxu0 %v6019_v45 }
0x1ba2   :  { %5271 = vmatpush3.bf16.msra.mxu0 %v5693_v42 }
0x1ba3   :  { %5272 = vmatprep.subr.bf16.mxu0 %v6019_v45 }
0x1ba6   :  { %5273 = vmatpush3.bf16.msra.mxu0 %v5694_v30 }
0x1ba7   :  { %5274 = vmatprep.subr.bf16.mxu0 %v6019_v45 }
0x1baa   :  { %5275 = vmatpush3.bf16.msra.mxu0 %v5695_v44 }
0x1bab   :  { %5276 = vmatprep.subr.bf16.mxu0 %v6019_v45 }
0x1bae   :  { %5277 = vmatpush3.bf16.msra.mxu0 %v5696_v31 }
0x1c0e   :  { %v4160_v47 = vpop.xlane.xlu0 %4159 }
0x1c0f   :  { %v4169_v35 = vmul.f32 0.03125, %v4160_v47 }
0x1c10   :  { %v4162_v53 = vpop.xlane.xlu1 %4161 }
0x1c11   :  { %v4170_v15 = vmul.f32 0.03125, %v4162_v53  ;;  %v4173_v10 = vmul.f32 %v4169_v35, %v4169_v35  ;;  %v4179_v2 = vsub.f32 %v4157_v48, %v4169_v35 }
0x1c12   :  { %v4166_v54 = vpop.xlane.xlu0 %4165 }
0x1c13   :  { %v4171_v50 = vmul.f32 0.03125, %v4166_v54  ;;  %v4174_v26 = vmul.f32 %v4170_v15, %v4170_v15  ;;  %v4180_v4 = vsub.f32 %v4158_v38, %v4170_v15  ;;  %v4347_v15 = vrot.slane %v6670_v24, %v6274_v16 }
0x1c14   :  { %v4168_v55 = vpop.xlane.xlu1 %4167 }
0x1c15   :  { %v4175_v60 = vsub.f32 %v4171_v50, %v4173_v10  ;;  %v4172_v61 = vmul.f32 0.03125, %v4168_v55 }
0x1c17   :  { %v4177_v62 = vmax.f32 %v4175_v60, 0.0  ;;  %v4176_v63 = vsub.f32 %v4172_v61, %v4174_v26 }
0x1c19   :  { %v4181_v0 = vadd.f32 1e-12, %v4177_v62  ;;  %v4178_v25 = vmax.f32 %v4176_v63, 0.0 }
0x1c1b   :  { %5805 = vrsqrt.f32 %v4181_v0  ;;  %v4182_v13 = vadd.f32 1e-12, %v4178_v25 }
0x1c1d   :  { %5807 = vrsqrt.f32 %v4182_v13 }
0x1c25   :  { %v5806_v21 = vpop.eup %5805 }
0x1c26   :  { %v4185_v27 = vmul.f32 %v5806_v21, %v4179_v2 }
0x1c27   :  { %v5808_v3 = vpop.eup %5807 }
0x1c28   :  { %v4186_v6 = vmul.f32 %v5808_v3, %v4180_v4  ;;  %v4191_v7 = vmul.f32 %v4190_v52, %v4185_v27 }
0x1c2a   :  { %v4192_v5 = vmul.f32 %v4190_v52, %v4186_v6  ;;  %v4197_v11 = vadd.f32 %v4196_v8, %v4191_v7 }
0x1c2c   :  { %v6688_v12 = vadd.f32 %v4196_v8, %v4192_v5 }
0x1c2e   :  { %v4231_v20 = vpack.c.bf16 %v6688_v12, %v4197_v11 }
0x1c30   :  { %5259 = vmatmul.mubr.bf16.vlgmr.msra.gmra.mrb[72].mxu1 %v4231_v20 }
0x1c31   :  { %5286 = vmatprep.mubr.msk.f32.mxu1 %vm6020_vm1, %v6019_v45 }
0x1d03   :  { %v4318_v59 = vpop.f32.mrb[72].mxu1 }
0x1d04   :  { %v4319_v1 = vadd.f32 %v4318_v59, %v4235_v58  ;;  %v5260_v19 = vpop.f32.mrb[73].mxu1 }
0x1d05   :  { %v4321_v32 = vpop.f32.mrb[74].mxu1 }
0x1d06   :  { %v4327_v33 = vmul.f32 0.044715, %v4319_v1  ;;  %v4322_v34 = vadd.f32 %v4321_v32, %v4235_v58  ;;  %v5261_v36 = vpop.f32.mrb[75].mxu1  ;;  %v4325_v40 = vmul.f32 0.5, %v4319_v1  ;;  %v4476_v58 = vrot.slane %v6670_v24, %v6361_v56 }
0x1d08   :  { %v4329_v37 = vmul.f32 %v4327_v33, %v4319_v1  ;;  %v4328_v48 = vmul.f32 0.044715, %v4322_v34  ;;  %v4326_v29 = vmul.f32 0.5, %v4322_v34  ;;  %v4480_v33 = vld [vmem:[#allocation5 + $0x8] sm:$0xff] }
0x1d0a   :  { %v4331_v38 = vmul.f32 %v4329_v37, %v4319_v1  ;;  %v4330_v41 = vmul.f32 %v4328_v48, %v4322_v34 }
0x1d0c   :  { %v4333_v51 = vadd.f32 %v4331_v38, %v4319_v1  ;;  %v4332_v9 = vmul.f32 %v4330_v41, %v4322_v34 }
0x1d0e   :  { %v4335_v14 = vmul.f32 0.7978846, %v4333_v51  ;;  %v4334_v18 = vadd.f32 %v4332_v9, %v4322_v34 }
0x1d10   :  { %5809 = vtanh.f32 %v4335_v14  ;;  %v4336_v45 = vmul.f32 0.7978846, %v4334_v18 }
0x1d12   :  { %5811 = vtanh.f32 %v4336_v45 }
0x1d1a   :  { %v5810_v43 = vpop.eup %5809 }
0x1d1b   :  { %v4339_v49 = vadd.f32 1.0, %v5810_v43 }
0x1d1c   :  { %v5812_v57 = vpop.eup %5811 }
0x1d1d   :  { %v4340_v39 = vadd.f32 1.0, %v5812_v57  ;;  %v4341_v47 = vmul.f32 %v4339_v49, %v4325_v40 }
0x1d1f   :  { %v4342_v35 = vmul.f32 %v4340_v39, %v4326_v29 }
0x1d21   :  { %v4343_v53 = vpack.c.bf16 %v4342_v35, %v4341_v47 }
0x1d23   :  { %5279 = vmatmul.mubr.bf16.vlgmr.msra.gmra.mrb[72].mxu0 %v4343_v53 }
0x1df6   :  { %v4430_v54 = vpop.f32.mrb[72].mxu0 }
0x1df7   :  { %v4431_v10 = vadd.f32 %v4430_v54, %v4347_v15  ;;  %v5280_v50 = vpop.f32.mrb[73].mxu0 }
0x1df8   :  { %v4433_v55 = vpop.f32.mrb[74].mxu0 }
0x1df9   :  { %v4437_v26 = vadd.f32 %v4431_v10, %v4197_v11  ;;  %v4434_v60 = vadd.f32 %v4433_v55, %v4347_v15  ;;  %v5281_v61 = vpop.f32.mrb[75].mxu0 }
0x1dfb   :  { %v4438_v62 = vadd.f32 %v4434_v60, %v6688_v12  ;;  %4439 = vadd.xlane.f32.xlu0 %v4437_v26  ;;  %v4443_v63 = vmul.f32 %v4437_v26, %v4437_v26 }
0x1dfd   :  { %4441 = vadd.xlane.f32.xlu1 %v4438_v62  ;;  %v4444_v0 = vmul.f32 %v4438_v62, %v4438_v62 }
0x1dff   :  { %4445 = vadd.xlane.f32.xlu0 %v4443_v63 }
0x1e01   :  { %4447 = vadd.xlane.f32.xlu1 %v4444_v0 }
0x1e88   :  { %v4440_v25 = vpop.xlane.xlu0 %4439 }
0x1e89   :  { %v4449_v13 = vmul.f32 0.03125, %v4440_v25 }
0x1e8a   :  { %v4442_v2 = vpop.xlane.xlu1 %4441 }
0x1e8b   :  { %v4450_v52 = vmul.f32 0.03125, %v4442_v2  ;;  %v4453_v21 = vmul.f32 %v4449_v13, %v4449_v13  ;;  %v4459_v22 = vsub.f32 %v4437_v26, %v4449_v13 }
0x1e8c   :  { %v4446_v16 = vpop.xlane.xlu0 %4445 }
0x1e8d   :  { %v4451_v4 = vmul.f32 0.03125, %v4446_v16  ;;  %v4454_v3 = vmul.f32 %v4450_v52, %v4450_v52  ;;  %v4460_v46 = vsub.f32 %v4438_v62, %v4450_v52 }
0x1e8e   :  { %v4448_v27 = vpop.xlane.xlu1 %4447 }
0x1e8f   :  { %v4455_v6 = vsub.f32 %v4451_v4, %v4453_v21  ;;  %v4452_v7 = vmul.f32 0.03125, %v4448_v27 }
0x1e91   :  { %v4457_v8 = vmax.f32 %v4455_v6, 0.0  ;;  %v4456_v5 = vsub.f32 %v4452_v7, %v4454_v3 }
0x1e93   :  { %v4461_v11 = vadd.f32 1e-12, %v4457_v8  ;;  %v4458_v12 = vmax.f32 %v4456_v5, 0.0 }
0x1e95   :  { %5813 = vrsqrt.f32 %v4461_v11  ;;  %v4462_v20 = vadd.f32 1e-12, %v4458_v12 }
0x1e97   :  { %5815 = vrsqrt.f32 %v4462_v20 }
0x1e9f   :  { %v5814_v28 = vpop.eup %5813 }
0x1ea0   :  { %v4465_v42 = vmul.f32 %v5814_v28, %v4459_v22 }
0x1ea1   :  { %v5816_v30 = vpop.eup %5815 }
0x1ea2   :  { %v4466_v44 = vmul.f32 %v5816_v30, %v4460_v46  ;;  %v4471_v31 = vmul.f32 %v4470_v23, %v4465_v42 }
0x1ea4   :  { %v4472_v59 = vmul.f32 %v4470_v23, %v4466_v44  ;;  %v4477_v1 = vadd.f32 %v4476_v58, %v4471_v31 }
0x1ea6   :  { %v4478_v19 = vadd.f32 %v4476_v58, %v4472_v59 }
0x1ea8   :  { %v5325_v32 = vpack.c.bf16 %v4478_v19, %v4477_v1 }
0x1eaa   :  { %5326 = vmatpush3.bf16.msra.mxu1 %v5325_v32 }
0x1ead   :  { %5287 = vmatmul.mubr.msk.f32.vlgmr.msra.gmra.mrb[42].mxu1 %vm766_vm2, %v4480_v33 }
0x1f80   :  { %v4550_v17 = vpop.f32.mrb[42].mxu1 }
0x1f81   :  { %4555 = vst [vmem:[#allocation14 + $0x8] sm:$0xff] %v4550_v17  ;;  %v5288_v34 = vpop.f32.mrb[43].mxu1 }
0x1f82   :  { %5984 = shalt.err (!%p5981_p4)
}
0x1f83   :  { %s5985_s25 = scalar_lea.hbm %s6734_s9, 256 }
0x1f84   :  { %p5986_p5 = scmp.ne.s32.totalorder %s6734_s9, %s5985_s25  ;;  %p5989_p6 = scmp.lt.u32.totalorder %s5985_s25, %s6734_s9 }
0x1f86   :  { %p5991_p7 = pnand %p5989_p6, %p5986_p5 }
0x1f88   :  { %5994 = shalt.err (!%p5991_p7)
}
0x1f89   :  { %4567 = dma.vmem_to_hbm [thread:$0]  %s4562_s18, 256, %s6734_s9, [#allocation4], %s6007_s21, %s6007_s21, %s6008_s22  }
0x1f8a   :  { %6003 = dma.done.wait [#allocation4], 256  }
0x1f8b   :  { %6004 = vsyncadd [#allocation4], 4294967040 }
0x1f8c   :  { %4571 = vsyncpa [#allocation3], 1 }
0x1f8d   :  { %4572 = vsyncpa [#allocation6], 1 }
0x1f8e   :  { %4573 = vsyncpa [#allocation9], 1 }
0x1f8f   :  { %4574 = vsyncpa [#allocation12], 1 }
0x1f90   :  { %4575 = vsyncpa [#allocation4], 1 }

</bundles_post_ra>
